<compile_context>
chip_gen: v5e
topology: v5e:2x2
jax: 0.10.0
libtpu: 0.0.40
codegen_flags: <defaults>
</compile_context>

<pallas_src>
import functools

import jax
import jax.numpy as jnp
from jax import lax
from jax.experimental import pallas as pl
from jax.experimental.pallas import tpu as pltpu


# ------------------------------ fused kernel --------------------------------

def _make_kernel(T, P, H, Bc, compute_dtype):
    H2, H4, H6 = 2 * H, 4 * H, 6 * H
    f32 = jnp.float32
    unroll = True if T <= 16 else 8     # full unroll only for small compile-time T

    def recurrence(gate_ref, whh_ref, hseq_ref):
        whh = whh_ref[...]                                      # (2H, 8H) f32, held in vregs

        def step(s, carry):
            h, c = carry                                        # (P, 2H) f32 each
            off = pl.multiple_of(s * P, P)
            gx = gate_ref[pl.ds(off, P), :]                     # (P, 8H): one unmasked slab load
            gates = gx + jnp.dot(h, whh, preferred_element_type=f32)
            sig = jax.nn.sigmoid(gates[:, :H6])                 # one EUP stream: i, f, o (both dirs)
            g = jnp.tanh(gates[:, H6:])                         # one EUP stream: g (both dirs)
            c_new = sig[:, H2:H4] * c + sig[:, :H2] * g         # lanes already [fwd | bwd]
            h_new = sig[:, H4:H6] * jnp.tanh(c_new)             # (P, 2H) == next-step carry layout
            # Off-dependency-chain stores; hseq ends up laid out as the NEXT layer's input
            # slab: slab s = [h(step s) | h(step T-1-s)] along lanes.
            hseq_ref[pl.ds(off, P), 0:H2] = h_new
            roff = pl.multiple_of((T - 1 - s) * P, P)
            hseq_ref[pl.ds(roff, P), H2:H4] = h_new
            return h_new, c_new

        zero = jnp.zeros((P, H2), f32)
        lax.fori_loop(0, T, step, (zero, zero), unroll=unroll)

    def kernel(x_ref, w0_ref, whh0_ref, b0_ref, w1_ref, whh1_ref, b1_ref,
               wd_ref, bd_ref, out_ref, gate_scr, hseq_scr):
        # ---- layer 0: hoisted input projection written straight into the gate scratch.
        gate_scr[...] = (jnp.dot(x_ref[...], w0_ref[...], preferred_element_type=f32)
                         + b0_ref[...])
        recurrence(gate_scr, whh0_ref, hseq_scr)

        # ---- layer 1: hseq already has the layer-1 input-slab layout (W1 rows were
        # permuted in the wrapper to match), so this is a single matmul.
        gate_scr[...] = (jnp.dot(hseq_scr[...].astype(compute_dtype), w1_ref[...],
                                 preferred_element_type=f32) + b1_ref[...])
        recurrence(gate_scr, whh1_ref, hseq_scr)

        # ---- ReLU(last timestep) -> Linear.  Slab T-1 holds
        # [h2_fwd(T-1), ., ., h2_bwd@pos(T-1)]; wd has zero rows for the unused blocks.
        last = hseq_scr[(T - 1) * P:T * P, :]                   # (P, 4H)
        feat = jnp.maximum(last, 0.0)
        out = jnp.dot(feat, wd_ref[...], preferred_element_type=f32) + bd_ref[...]
        out_ref[...] = out[:Bc, :].astype(out_ref.dtype)

    return kernel


# ----------------------------- weight packing --------------------------------

def pack_params(params, hidden_size):
    """Pack per-direction weights into the kernel's fused interleaved-gate layout.
    Call ONCE; the result is reused across forward calls."""
    required = {"l0_fwd", "l0_bwd", "l1_fwd", "l1_bwd", "dense_w", "dense_b"}
    missing = required - set(params)
    if missing:     # only num_layers=2, bidirectional=True is implemented
        raise ValueError(f"missing params for 2-layer bidirectional LSTM: {missing}")
    H = hidden_size
    assert params["l0_fwd"]["whh"].shape == (H, 4 * H)
    assert params["l1_fwd"]["wih"].shape[0] == 2 * H

    def scatter(w, direction):
        # w: (K, 4H) in per-direction [i, f, g, o] order ->
        # (K, 8H) with columns at interleaved lanes [i_f,i_b, f_f,f_b, o_f,o_b, g_f,g_b].
        z = jnp.zeros((w.shape[0], H), w.dtype)
        i_, f_, g_, o_ = w[:, :H], w[:, H:2 * H], w[:, 2 * H:3 * H], w[:, 3 * H:]
        blocks = [i_, z, f_, z, o_, z, g_, z] if direction == 0 else [z, i_, z, f_, z, o_, z, g_]
        return jnp.concatenate(blocks, axis=1)

    l0f, l0b = params["l0_fwd"], params["l0_bwd"]
    l1f, l1b = params["l1_fwd"], params["l1_bwd"]

    w0 = jnp.concatenate([scatter(l0f["wih"], 0), scatter(l0b["wih"], 1)], axis=0)    # (2F, 8H)
    whh0 = jnp.concatenate([scatter(l0f["whh"], 0), scatter(l0b["whh"], 1)], axis=0)  # (2H, 8H)
    b0 = scatter(l0f["b"], 0) + scatter(l0b["b"], 1)                                  # (1, 8H)

    w1f = scatter(l1f["wih"], 0)                                                      # (2H, 8H)
    w1b = scatter(l1b["wih"], 1)
    # Row order matches the hseq slab lane layout [h(s)_f, h(s)_b, h(T-1-s)_f, h(T-1-s)_b].
    w1 = jnp.concatenate([w1f[:H], w1b[H:2 * H], w1b[:H], w1f[H:2 * H]], axis=0)      # (4H, 8H)
    whh1 = jnp.concatenate([scatter(l1f["whh"], 0), scatter(l1b["whh"], 1)], axis=0)  # (2H, 8H)
    b1 = scatter(l1f["b"], 0) + scatter(l1b["b"], 1)

    dw = params["dense_w"]                                                            # (2H, O)
    out_dim = dw.shape[1]
    wd = jnp.concatenate([dw[:H], jnp.zeros((2 * H, out_dim), dw.dtype), dw[H:]], axis=0)  # (4H, O)

    return {
        "w0": w0.astype(jnp.bfloat16), "whh0": whh0.astype(jnp.float32), "b0": b0.astype(jnp.float32),
        "w1": w1.astype(jnp.bfloat16), "whh1": whh1.astype(jnp.float32), "b1": b1.astype(jnp.float32),
        "wd": wd.astype(jnp.float32), "bd": params["dense_b"].astype(jnp.float32),
    }


# --------------------------- model forward (wrapper) -------------------------

def lstm_anomaly_detector_forward(x, packed, *, batch_chunks=1):
    """x: (B, T, input_size), batch_first, eval mode (matches the PyTorch module).
    batch_chunks > 1 splits the batch over grid steps marked "parallel" so v7x can use
    its second TensorCore; keep 1 on single-TC parts (v5e/v6e)."""
    B, T, F = x.shape
    H = packed["whh0"].shape[0] // 2
    O = packed["wd"].shape[1]
    C = int(batch_chunks)
    if B % C != 0:
        raise ValueError("batch_chunks must divide the batch size")
    Bc = B // C
    P = max(8, ((Bc + 7) // 8) * 8)            # pad chunk batch to whole sublane groups

    # Pre-interleaved, time-reversed, sublane-padded input slab: row s*P + b holds
    # [x(b, s) | x(b, T-1-s)], so one matmul produces both directions' input gates already
    # in per-step slab order (the time reversal is done once here, not per step).
    xc = x.reshape(C, Bc, T, F)
    xf = jnp.transpose(xc, (0, 2, 1, 3))                       # (C, T, Bc, F) time-major
    pair = jnp.concatenate([xf, xf[:, ::-1]], axis=-1)         # (C, T, Bc, 2F)
    pair = jnp.pad(pair, ((0, 0), (0, 0), (0, P - Bc), (0, 0)))
    x_slab = pair.reshape(C, T * P, 2 * F).astype(jnp.bfloat16)

    kernel = _make_kernel(T, P, H, Bc, jnp.bfloat16)

    grid_spec = pltpu.PrefetchScalarGridSpec(
        num_scalar_prefetch=0,
        grid=(C,),
        in_specs=[
            pl.BlockSpec((None, T * P, 2 * F), lambda c: (c, 0, 0)),   # per-chunk input slab
            pl.BlockSpec((2 * F, 8 * H), lambda c: (0, 0)),            # w0
            pl.BlockSpec((2 * H, 8 * H), lambda c: (0, 0)),            # whh0
            pl.BlockSpec((1, 8 * H), lambda c: (0, 0)),                # b0
            pl.BlockSpec((4 * H, 8 * H), lambda c: (0, 0)),            # w1 (row-permuted)
            pl.BlockSpec((2 * H, 8 * H), lambda c: (0, 0)),            # whh1
            pl.BlockSpec((1, 8 * H), lambda c: (0, 0)),                # b1
            pl.BlockSpec((4 * H, O), lambda c: (0, 0)),                # wd (zero-padded rows)
            pl.BlockSpec((1, O), lambda c: (0, 0)),                    # bd
        ],
        out_specs=pl.BlockSpec((None, Bc, O), lambda c: (c, 0, 0)),
        scratch_shapes=[
            pltpu.VMEM((T * P, 8 * H), jnp.float32),   # pre-interleaved gate slabs (reused by both layers)
            pltpu.VMEM((T * P, 4 * H), jnp.float32),   # hidden-sequence slabs == next layer's input slab
        ],
    )

    flops = C * (2 * T * P * (2 * F) * (8 * H)           # layer-0 input projection
                 + 2 * T * P * (4 * H) * (8 * H)         # layer-1 input projection
                 + 2 * 2 * T * P * (2 * H) * (8 * H)     # recurrent matmuls (both layers)
                 + 2 * P * (4 * H) * O)                  # dense head
    transcendentals = C * 2 * T * P * 10 * H
    bytes_accessed = int(x_slab.size) * 2 + C * Bc * O * 4 + sum(
        int(v.size) * v.dtype.itemsize for v in packed.values())

    out = pl.pallas_call(
        kernel,
        out_shape=jax.ShapeDtypeStruct((C, Bc, O), jnp.float32),
        grid_spec=grid_spec,
        compiler_params=pltpu.CompilerParams(
            dimension_semantics=("parallel",),           # chunks are independent (v7x megacore)
            vmem_limit_bytes=32 * 1024 * 1024,           # explicit: v5e scoped default is 16 MiB
        ),
        cost_estimate=pl.CostEstimate(flops=flops, transcendentals=transcendentals,
                                      bytes_accessed=bytes_accessed),
    )(x_slab, packed["w0"], packed["whh0"], packed["b0"],
      packed["w1"], packed["whh1"], packed["b1"], packed["wd"], packed["bd"])
    return out.reshape(B, O)


# --------------------------- pure-JAX f32 reference --------------------------

def _hdot(a, b):
    return jnp.dot(a, b, precision=jax.lax.Precision.HIGHEST)


def _ref_lstm_layer(x_bt, wih, whh, b, H):
    B, T, _ = x_bt.shape
    h = jnp.zeros((B, H), jnp.float32)
    c = jnp.zeros((B, H), jnp.float32)
    outs = []
    for t in range(T):
        g = _hdot(x_bt[:, t], wih) + _hdot(h, whh) + b
        i_g = jax.nn.sigmoid(g[:, :H])
        f_g = jax.nn.sigmoid(g[:, H:2 * H])
        g_g = jnp.tanh(g[:, 2 * H:3 * H])
        o_g = jax.nn.sigmoid(g[:, 3 * H:])
        c = f_g * c + i_g * g_g
        h = o_g * jnp.tanh(c)
        outs.append(h)
    return jnp.stack(outs, axis=1)


def reference_forward(x, params, *, num_layers=2, hidden=32):
    out = x
    for layer in range(num_layers):
        pf = params[f"l{layer}_fwd"]
        fwd = _ref_lstm_layer(out, pf["wih"], pf["whh"], pf["b"], hidden)
        pb = params[f"l{layer}_bwd"]
        bwd = _ref_lstm_layer(out[:, ::-1], pb["wih"], pb["whh"], pb["b"], hidden)[:, ::-1]
        out = jnp.concatenate([fwd, bwd], axis=-1)
    h_last = jnp.maximum(out[:, -1, :], 0.0)
    return _hdot(h_last, params["dense_w"]) + params["dense_b"]


# ------------------------------- param init ---------------------------------

def init_params(key, input_size, hidden_size, output_size, *, num_layers=2):
    k = 1.0 / jnp.sqrt(hidden_size)
    params = {}
    for layer in range(num_layers):
        in_f = input_size if layer == 0 else hidden_size * 2
        for d in ("fwd", "bwd"):
            key, k1, k2, k3 = jax.random.split(key, 4)
            params[f"l{layer}_{d}"] = {
                "wih": jax.random.uniform(k1, (in_f, 4 * hidden_size), jnp.float32, -k, k),
                "whh": jax.random.uniform(k2, (hidden_size, 4 * hidden_size), jnp.float32, -k, k),
                "b": jax.random.uniform(k3, (1, 4 * hidden_size), jnp.float32, -k, k),
            }
    d_in = hidden_size * 2
    key, k1, k2 = jax.random.split(key, 3)
    kd = 1.0 / jnp.sqrt(d_in)
    params["dense_w"] = jax.random.uniform(k1, (d_in, output_size), jnp.float32, -kd, kd)
    params["dense_b"] = jax.random.uniform(k2, (1, output_size), jnp.float32, -kd, kd)
    return params


# ----------------------------------- main ------------------------------------

if __name__ == "__main__":
    B, T = 2, 8
    input_size, hidden_size, output_size = 16, 32, 4

    key = jax.random.PRNGKey(0)
    key, xk = jax.random.split(key)
    x = jax.random.normal(xk, (B, T, input_size), jnp.float32)
    params = init_params(key, input_size, hidden_size, output_size)
    packed = pack_params(params, hidden_size)           # packed once, outside the per-call path

    ref = jax.block_until_ready(reference_forward(x, params, hidden=hidden_size))

    # batch_chunks=1 is the single-TC path; batch_chunks=2 exercises the v7x two-core grid.
    for chunks in (1, 2):
        fwd_fn = jax.jit(functools.partial(lstm_anomaly_detector_forward, batch_chunks=chunks))
        out = jax.block_until_ready(fwd_fn(x, packed))
        assert out.shape == (B, output_size), out.shape
        # bf16 projection operands (f32 accumulation, f32 recurrence) vs. f32-HIGHEST reference.
        assert jnp.allclose(out, ref, atol=2e-2, rtol=2e-2), (chunks, out, ref)

    print("KERNEL_OK")
</pallas_src>

<mosaic_0001>
module attributes {stable_mosaic.version = 11 : i64} {
  func.func @kernel(%arg0: i32, %arg1: memref<1x64x32xbf16, #tpu.memory_space<vmem>>, %arg2: memref<32x256xbf16, #tpu.memory_space<vmem>>, %arg3: memref<64x256xf32, #tpu.memory_space<vmem>>, %arg4: memref<1x256xf32, #tpu.memory_space<vmem>>, %arg5: memref<128x256xbf16, #tpu.memory_space<vmem>>, %arg6: memref<64x256xf32, #tpu.memory_space<vmem>>, %arg7: memref<1x256xf32, #tpu.memory_space<vmem>>, %arg8: memref<128x4xf32, #tpu.memory_space<vmem>>, %arg9: memref<1x4xf32, #tpu.memory_space<vmem>>, %arg10: memref<1x2x4xf32, #tpu.memory_space<vmem>>, %arg11: memref<64x256xf32, #tpu.memory_space<vmem>>, %arg12: memref<64x128xf32, #tpu.memory_space<vmem>>) attributes {dimension_semantics = [#tpu.dimension_semantics<parallel>], iteration_bounds = array<i64: 1>, scalar_prefetch = 0 : i64, scratch_operands = 2 : i64, tpu.core_type = #tpu.core_type<tc>, window_params = [{transform_indices = @transform_0, window_bounds = array<i64: 1, 64, 32>}, {pipeline_mode = #tpu.pipeline_mode<synchronous>, transform_indices = @transform_1, window_bounds = array<i64: 32, 256>}, {pipeline_mode = #tpu.pipeline_mode<synchronous>, transform_indices = @transform_2, window_bounds = array<i64: 64, 256>}, {pipeline_mode = #tpu.pipeline_mode<synchronous>, transform_indices = @transform_3, window_bounds = array<i64: 1, 256>}, {pipeline_mode = #tpu.pipeline_mode<synchronous>, transform_indices = @transform_4, window_bounds = array<i64: 128, 256>}, {pipeline_mode = #tpu.pipeline_mode<synchronous>, transform_indices = @transform_5, window_bounds = array<i64: 64, 256>}, {pipeline_mode = #tpu.pipeline_mode<synchronous>, transform_indices = @transform_6, window_bounds = array<i64: 1, 256>}, {pipeline_mode = #tpu.pipeline_mode<synchronous>, transform_indices = @transform_7, window_bounds = array<i64: 128, 4>}, {pipeline_mode = #tpu.pipeline_mode<synchronous>, transform_indices = @transform_8, window_bounds = array<i64: 1, 4>}, {transform_indices = @transform_9, window_bounds = array<i64: 1, 2, 4>}]} {
    %c0 = arith.constant 0 : index
    %c0_0 = arith.constant 0 : index
    %c0_1 = arith.constant 0 : index
    %0 = vector.load %arg1[%c0, %c0_0, %c0_1] : memref<1x64x32xbf16, #tpu.memory_space<vmem>>, vector<1x64x32xbf16>
    %1 = vector.shape_cast %0 : vector<1x64x32xbf16> to vector<64x32xbf16>
    %c0_2 = arith.constant 0 : index
    %c0_3 = arith.constant 0 : index
    %2 = vector.load %arg2[%c0_2, %c0_3] : memref<32x256xbf16, #tpu.memory_space<vmem>>, vector<32x256xbf16>
    %cst = arith.constant dense<0.000000e+00> : vector<64x256xf32>
    %3 = tpu.matmul %1, %2, %cst {dimension_numbers = #tpu.dot_dimension_numbers<[1], [0], [0], [1], [0, 0, 1, 1], [], []>} : vector<64x32xbf16>, vector<32x256xbf16>, vector<64x256xf32> -> vector<64x256xf32>
    %c0_4 = arith.constant 0 : index
    %c0_5 = arith.constant 0 : index
    %4 = vector.load %arg4[%c0_4, %c0_5] : memref<1x256xf32, #tpu.memory_space<vmem>>, vector<1x256xf32>
    %5 = vector.broadcast %4 : vector<1x256xf32> to vector<64x256xf32>
    %6 = arith.addf %3, %5 : vector<64x256xf32>
    %c0_6 = arith.constant 0 : index
    %c0_7 = arith.constant 0 : index
    %7 = vector.load %arg11[%c0_6, %c0_7] : memref<64x256xf32, #tpu.memory_space<vmem>>, vector<64x256xf32>
    tpu.vector_store %arg11[%c0_6, %c0_7], %6 {strides = array<i32>} : memref<64x256xf32, #tpu.memory_space<vmem>>, vector<64x256xf32>,
    %c0_8 = arith.constant 0 : index
    %c0_9 = arith.constant 0 : index
    %8 = vector.load %arg3[%c0_8, %c0_9] : memref<64x256xf32, #tpu.memory_space<vmem>>, vector<64x256xf32>
    %cst_10 = arith.constant 0.000000e+00 : f32
    %9 = vector.broadcast %cst_10 : f32 to vector<8x64xf32>
    %c0_i32 = arith.constant 0 : i32
    %c8_i32 = arith.constant 8 : i32
    %10 = arith.muli %c0_i32, %c8_i32 : i32
    %11 = tpu.assume_multiple %10, 8 : i32
    %12 = arith.index_cast %11 : i32 to index
    %c0_11 = arith.constant 0 : index
    %13 = vector.load %arg11[%12, %c0_11] : memref<64x256xf32, #tpu.memory_space<vmem>>, vector<8x256xf32>
    %cst_12 = arith.constant dense<0.000000e+00> : vector<8x256xf32>
    %14 = tpu.matmul %9, %8, %cst_12 {dimension_numbers = #tpu.dot_dimension_numbers<[1], [0], [0], [1], [0, 0, 1, 1], [], []>} : vector<8x64xf32>, vector<64x256xf32>, vector<8x256xf32> -> vector<8x256xf32>
    %15 = arith.addf %13, %14 : vector<8x256xf32>
    %16 = vector.extract_strided_slice %15 {offsets = [0, 0], sizes = [8, 192], strides = [1, 1]} : vector<8x256xf32> to vector<8x192xf32>
    %17 = arith.negf %16 : vector<8x192xf32>
    %18 = math.exp %17 : vector<8x192xf32>
    %cst_13 = arith.constant 1.000000e+00 : f32
    %19 = vector.broadcast %cst_13 : f32 to vector<8x192xf32>
    %20 = arith.addf %19, %18 : vector<8x192xf32>
    %21 = arith.divf %19, %20 : vector<8x192xf32>
    %22 = vector.extract_strided_slice %15 {offsets = [0, 192], sizes = [8, 64], strides = [1, 1]} : vector<8x256xf32> to vector<8x64xf32>
    %23 = math.tanh %22 : vector<8x64xf32>
    %24 = vector.extract_strided_slice %21 {offsets = [0, 64], sizes = [8, 64], strides = [1, 1]} : vector<8x192xf32> to vector<8x64xf32>
    %25 = arith.mulf %24, %9 : vector<8x64xf32>
    %26 = vector.extract_strided_slice %21 {offsets = [0, 0], sizes = [8, 64], strides = [1, 1]} : vector<8x192xf32> to vector<8x64xf32>
    %27 = arith.mulf %26, %23 : vector<8x64xf32>
    %28 = arith.addf %25, %27 : vector<8x64xf32>
    %29 = vector.extract_strided_slice %21 {offsets = [0, 128], sizes = [8, 64], strides = [1, 1]} : vector<8x192xf32> to vector<8x64xf32>
    %30 = math.tanh %28 : vector<8x64xf32>
    %31 = arith.mulf %29, %30 : vector<8x64xf32>
    %32 = arith.index_cast %11 : i32 to index
    %c0_14 = arith.constant 0 : index
    %33 = vector.load %arg12[%32, %c0_14] : memref<64x128xf32, #tpu.memory_space<vmem>>, vector<8x64xf32>
    tpu.vector_store %arg12[%32, %c0_14], %31 {strides = array<i32>} : memref<64x128xf32, #tpu.memory_space<vmem>>, vector<8x64xf32>,
    %c7_i32 = arith.constant 7 : i32
    %34 = arith.subi %c7_i32, %c0_i32 : i32
    %c8_i32_15 = arith.constant 8 : i32
    %35 = arith.muli %34, %c8_i32_15 : i32
    %36 = tpu.assume_multiple %35, 8 : i32
    %37 = arith.index_cast %36 : i32 to index
    %c64 = arith.constant 64 : index
    %38 = vector.load %arg12[%37, %c64] : memref<64x128xf32, #tpu.memory_space<vmem>>, vector<8x64xf32>
    tpu.vector_store %arg12[%37, %c64], %31 {strides = array<i32>} : memref<64x128xf32, #tpu.memory_space<vmem>>, vector<8x64xf32>,
    %c1_i32 = arith.constant 1 : i32
    %c8_i32_16 = arith.constant 8 : i32
    %39 = arith.muli %c1_i32, %c8_i32_16 : i32
    %40 = tpu.assume_multiple %39, 8 : i32
    %41 = arith.index_cast %40 : i32 to index
    %c0_17 = arith.constant 0 : index
    %42 = vector.load %arg11[%41, %c0_17] : memref<64x256xf32, #tpu.memory_space<vmem>>, vector<8x256xf32>
    %cst_18 = arith.constant dense<0.000000e+00> : vector<8x256xf32>
    %43 = tpu.matmul %31, %8, %cst_18 {dimension_numbers = #tpu.dot_dimension_numbers<[1], [0], [0], [1], [0, 0, 1, 1], [], []>} : vector<8x64xf32>, vector<64x256xf32>, vector<8x256xf32> -> vector<8x256xf32>
    %44 = arith.addf %42, %43 : vector<8x256xf32>
    %45 = vector.extract_strided_slice %44 {offsets = [0, 0], sizes = [8, 192], strides = [1, 1]} : vector<8x256xf32> to vector<8x192xf32>
    %46 = arith.negf %45 : vector<8x192xf32>
    %47 = math.exp %46 : vector<8x192xf32>
    %cst_19 = arith.constant 1.000000e+00 : f32
    %48 = vector.broadcast %cst_19 : f32 to vector<8x192xf32>
    %49 = arith.addf %48, %47 : vector<8x192xf32>
    %50 = arith.divf %48, %49 : vector<8x192xf32>
    %51 = vector.extract_strided_slice %44 {offsets = [0, 192], sizes = [8, 64], strides = [1, 1]} : vector<8x256xf32> to vector<8x64xf32>
    %52 = math.tanh %51 : vector<8x64xf32>
    %53 = vector.extract_strided_slice %50 {offsets = [0, 64], sizes = [8, 64], strides = [1, 1]} : vector<8x192xf32> to vector<8x64xf32>
    %54 = arith.mulf %53, %28 : vector<8x64xf32>
    %55 = vector.extract_strided_slice %50 {offsets = [0, 0], sizes = [8, 64], strides = [1, 1]} : vector<8x192xf32> to vector<8x64xf32>
    %56 = arith.mulf %55, %52 : vector<8x64xf32>
    %57 = arith.addf %54, %56 : vector<8x64xf32>
    %58 = vector.extract_strided_slice %50 {offsets = [0, 128], sizes = [8, 64], strides = [1, 1]} : vector<8x192xf32> to vector<8x64xf32>
    %59 = math.tanh %57 : vector<8x64xf32>
    %60 = arith.mulf %58, %59 : vector<8x64xf32>
    %61 = arith.index_cast %40 : i32 to index
    %c0_20 = arith.constant 0 : index
    %62 = vector.load %arg12[%61, %c0_20] : memref<64x128xf32, #tpu.memory_space<vmem>>, vector<8x64xf32>
    tpu.vector_store %arg12[%61, %c0_20], %60 {strides = array<i32>} : memref<64x128xf32, #tpu.memory_space<vmem>>, vector<8x64xf32>,
    %c7_i32_21 = arith.constant 7 : i32
    %63 = arith.subi %c7_i32_21, %c1_i32 : i32
    %c8_i32_22 = arith.constant 8 : i32
    %64 = arith.muli %63, %c8_i32_22 : i32
    %65 = tpu.assume_multiple %64, 8 : i32
    %66 = arith.index_cast %65 : i32 to index
    %c64_23 = arith.constant 64 : index
    %67 = vector.load %arg12[%66, %c64_23] : memref<64x128xf32, #tpu.memory_space<vmem>>, vector<8x64xf32>
    tpu.vector_store %arg12[%66, %c64_23], %60 {strides = array<i32>} : memref<64x128xf32, #tpu.memory_space<vmem>>, vector<8x64xf32>,
    %c2_i32 = arith.constant 2 : i32
    %c8_i32_24 = arith.constant 8 : i32
    %68 = arith.muli %c2_i32, %c8_i32_24 : i32
    %69 = tpu.assume_multiple %68, 8 : i32
    %70 = arith.index_cast %69 : i32 to index
    %c0_25 = arith.constant 0 : index
    %71 = vector.load %arg11[%70, %c0_25] : memref<64x256xf32, #tpu.memory_space<vmem>>, vector<8x256xf32>
    %cst_26 = arith.constant dense<0.000000e+00> : vector<8x256xf32>
    %72 = tpu.matmul %60, %8, %cst_26 {dimension_numbers = #tpu.dot_dimension_numbers<[1], [0], [0], [1], [0, 0, 1, 1], [], []>} : vector<8x64xf32>, vector<64x256xf32>, vector<8x256xf32> -> vector<8x256xf32>
    %73 = arith.addf %71, %72 : vector<8x256xf32>
    %74 = vector.extract_strided_slice %73 {offsets = [0, 0], sizes = [8, 192], strides = [1, 1]} : vector<8x256xf32> to vector<8x192xf32>
    %75 = arith.negf %74 : vector<8x192xf32>
    %76 = math.exp %75 : vector<8x192xf32>
    %cst_27 = arith.constant 1.000000e+00 : f32
    %77 = vector.broadcast %cst_27 : f32 to vector<8x192xf32>
    %78 = arith.addf %77, %76 : vector<8x192xf32>
    %79 = arith.divf %77, %78 : vector<8x192xf32>
    %80 = vector.extract_strided_slice %73 {offsets = [0, 192], sizes = [8, 64], strides = [1, 1]} : vector<8x256xf32> to vector<8x64xf32>
    %81 = math.tanh %80 : vector<8x64xf32>
    %82 = vector.extract_strided_slice %79 {offsets = [0, 64], sizes = [8, 64], strides = [1, 1]} : vector<8x192xf32> to vector<8x64xf32>
    %83 = arith.mulf %82, %57 : vector<8x64xf32>
    %84 = vector.extract_strided_slice %79 {offsets = [0, 0], sizes = [8, 64], strides = [1, 1]} : vector<8x192xf32> to vector<8x64xf32>
    %85 = arith.mulf %84, %81 : vector<8x64xf32>
    %86 = arith.addf %83, %85 : vector<8x64xf32>
    %87 = vector.extract_strided_slice %79 {offsets = [0, 128], sizes = [8, 64], strides = [1, 1]} : vector<8x192xf32> to vector<8x64xf32>
    %88 = math.tanh %86 : vector<8x64xf32>
    %89 = arith.mulf %87, %88 : vector<8x64xf32>
    %90 = arith.index_cast %69 : i32 to index
    %c0_28 = arith.constant 0 : index
    %91 = vector.load %arg12[%90, %c0_28] : memref<64x128xf32, #tpu.memory_space<vmem>>, vector<8x64xf32>
    tpu.vector_store %arg12[%90, %c0_28], %89 {strides = array<i32>} : memref<64x128xf32, #tpu.memory_space<vmem>>, vector<8x64xf32>,
    %c7_i32_29 = arith.constant 7 : i32
    %92 = arith.subi %c7_i32_29, %c2_i32 : i32
    %c8_i32_30 = arith.constant 8 : i32
    %93 = arith.muli %92, %c8_i32_30 : i32
    %94 = tpu.assume_multiple %93, 8 : i32
    %95 = arith.index_cast %94 : i32 to index
    %c64_31 = arith.constant 64 : index
    %96 = vector.load %arg12[%95, %c64_31] : memref<64x128xf32, #tpu.memory_space<vmem>>, vector<8x64xf32>
    tpu.vector_store %arg12[%95, %c64_31], %89 {strides = array<i32>} : memref<64x128xf32, #tpu.memory_space<vmem>>, vector<8x64xf32>,
    %c3_i32 = arith.constant 3 : i32
    %c8_i32_32 = arith.constant 8 : i32
    %97 = arith.muli %c3_i32, %c8_i32_32 : i32
    %98 = tpu.assume_multiple %97, 8 : i32
    %99 = arith.index_cast %98 : i32 to index
    %c0_33 = arith.constant 0 : index
    %100 = vector.load %arg11[%99, %c0_33] : memref<64x256xf32, #tpu.memory_space<vmem>>, vector<8x256xf32>
    %cst_34 = arith.constant dense<0.000000e+00> : vector<8x256xf32>
    %101 = tpu.matmul %89, %8, %cst_34 {dimension_numbers = #tpu.dot_dimension_numbers<[1], [0], [0], [1], [0, 0, 1, 1], [], []>} : vector<8x64xf32>, vector<64x256xf32>, vector<8x256xf32> -> vector<8x256xf32>
    %102 = arith.addf %100, %101 : vector<8x256xf32>
    %103 = vector.extract_strided_slice %102 {offsets = [0, 0], sizes = [8, 192], strides = [1, 1]} : vector<8x256xf32> to vector<8x192xf32>
    %104 = arith.negf %103 : vector<8x192xf32>
    %105 = math.exp %104 : vector<8x192xf32>
    %cst_35 = arith.constant 1.000000e+00 : f32
    %106 = vector.broadcast %cst_35 : f32 to vector<8x192xf32>
    %107 = arith.addf %106, %105 : vector<8x192xf32>
    %108 = arith.divf %106, %107 : vector<8x192xf32>
    %109 = vector.extract_strided_slice %102 {offsets = [0, 192], sizes = [8, 64], strides = [1, 1]} : vector<8x256xf32> to vector<8x64xf32>
    %110 = math.tanh %109 : vector<8x64xf32>
    %111 = vector.extract_strided_slice %108 {offsets = [0, 64], sizes = [8, 64], strides = [1, 1]} : vector<8x192xf32> to vector<8x64xf32>
    %112 = arith.mulf %111, %86 : vector<8x64xf32>
    %113 = vector.extract_strided_slice %108 {offsets = [0, 0], sizes = [8, 64], strides = [1, 1]} : vector<8x192xf32> to vector<8x64xf32>
    %114 = arith.mulf %113, %110 : vector<8x64xf32>
    %115 = arith.addf %112, %114 : vector<8x64xf32>
    %116 = vector.extract_strided_slice %108 {offsets = [0, 128], sizes = [8, 64], strides = [1, 1]} : vector<8x192xf32> to vector<8x64xf32>
    %117 = math.tanh %115 : vector<8x64xf32>
    %118 = arith.mulf %116, %117 : vector<8x64xf32>
    %119 = arith.index_cast %98 : i32 to index
    %c0_36 = arith.constant 0 : index
    %120 = vector.load %arg12[%119, %c0_36] : memref<64x128xf32, #tpu.memory_space<vmem>>, vector<8x64xf32>
    tpu.vector_store %arg12[%119, %c0_36], %118 {strides = array<i32>} : memref<64x128xf32, #tpu.memory_space<vmem>>, vector<8x64xf32>,
    %c7_i32_37 = arith.constant 7 : i32
    %121 = arith.subi %c7_i32_37, %c3_i32 : i32
    %c8_i32_38 = arith.constant 8 : i32
    %122 = arith.muli %121, %c8_i32_38 : i32
    %123 = tpu.assume_multiple %122, 8 : i32
    %124 = arith.index_cast %123 : i32 to index
    %c64_39 = arith.constant 64 : index
    %125 = vector.load %arg12[%124, %c64_39] : memref<64x128xf32, #tpu.memory_space<vmem>>, vector<8x64xf32>
    tpu.vector_store %arg12[%124, %c64_39], %118 {strides = array<i32>} : memref<64x128xf32, #tpu.memory_space<vmem>>, vector<8x64xf32>,
    %c4_i32 = arith.constant 4 : i32
    %c8_i32_40 = arith.constant 8 : i32
    %126 = arith.muli %c4_i32, %c8_i32_40 : i32
    %127 = tpu.assume_multiple %126, 8 : i32
    %128 = arith.index_cast %127 : i32 to index
    %c0_41 = arith.constant 0 : index
    %129 = vector.load %arg11[%128, %c0_41] : memref<64x256xf32, #tpu.memory_space<vmem>>, vector<8x256xf32>
    %cst_42 = arith.constant dense<0.000000e+00> : vector<8x256xf32>
    %130 = tpu.matmul %118, %8, %cst_42 {dimension_numbers = #tpu.dot_dimension_numbers<[1], [0], [0], [1], [0, 0, 1, 1], [], []>} : vector<8x64xf32>, vector<64x256xf32>, vector<8x256xf32> -> vector<8x256xf32>
    %131 = arith.addf %129, %130 : vector<8x256xf32>
    %132 = vector.extract_strided_slice %131 {offsets = [0, 0], sizes = [8, 192], strides = [1, 1]} : vector<8x256xf32> to vector<8x192xf32>
    %133 = arith.negf %132 : vector<8x192xf32>
    %134 = math.exp %133 : vector<8x192xf32>
    %cst_43 = arith.constant 1.000000e+00 : f32
    %135 = vector.broadcast %cst_43 : f32 to vector<8x192xf32>
    %136 = arith.addf %135, %134 : vector<8x192xf32>
    %137 = arith.divf %135, %136 : vector<8x192xf32>
    %138 = vector.extract_strided_slice %131 {offsets = [0, 192], sizes = [8, 64], strides = [1, 1]} : vector<8x256xf32> to vector<8x64xf32>
    %139 = math.tanh %138 : vector<8x64xf32>
    %140 = vector.extract_strided_slice %137 {offsets = [0, 64], sizes = [8, 64], strides = [1, 1]} : vector<8x192xf32> to vector<8x64xf32>
    %141 = arith.mulf %140, %115 : vector<8x64xf32>
    %142 = vector.extract_strided_slice %137 {offsets = [0, 0], sizes = [8, 64], strides = [1, 1]} : vector<8x192xf32> to vector<8x64xf32>
    %143 = arith.mulf %142, %139 : vector<8x64xf32>
    %144 = arith.addf %141, %143 : vector<8x64xf32>
    %145 = vector.extract_strided_slice %137 {offsets = [0, 128], sizes = [8, 64], strides = [1, 1]} : vector<8x192xf32> to vector<8x64xf32>
    %146 = math.tanh %144 : vector<8x64xf32>
    %147 = arith.mulf %145, %146 : vector<8x64xf32>
    %148 = arith.index_cast %127 : i32 to index
    %c0_44 = arith.constant 0 : index
    %149 = vector.load %arg12[%148, %c0_44] : memref<64x128xf32, #tpu.memory_space<vmem>>, vector<8x64xf32>
    tpu.vector_store %arg12[%148, %c0_44], %147 {strides = array<i32>} : memref<64x128xf32, #tpu.memory_space<vmem>>, vector<8x64xf32>,
    %c7_i32_45 = arith.constant 7 : i32
    %150 = arith.subi %c7_i32_45, %c4_i32 : i32
    %c8_i32_46 = arith.constant 8 : i32
    %151 = arith.muli %150, %c8_i32_46 : i32
    %152 = tpu.assume_multiple %151, 8 : i32
    %153 = arith.index_cast %152 : i32 to index
    %c64_47 = arith.constant 64 : index
    %154 = vector.load %arg12[%153, %c64_47] : memref<64x128xf32, #tpu.memory_space<vmem>>, vector<8x64xf32>
    tpu.vector_store %arg12[%153, %c64_47], %147 {strides = array<i32>} : memref<64x128xf32, #tpu.memory_space<vmem>>, vector<8x64xf32>,
    %c5_i32 = arith.constant 5 : i32
    %c8_i32_48 = arith.constant 8 : i32
    %155 = arith.muli %c5_i32, %c8_i32_48 : i32
    %156 = tpu.assume_multiple %155, 8 : i32
    %157 = arith.index_cast %156 : i32 to index
    %c0_49 = arith.constant 0 : index
    %158 = vector.load %arg11[%157, %c0_49] : memref<64x256xf32, #tpu.memory_space<vmem>>, vector<8x256xf32>
    %cst_50 = arith.constant dense<0.000000e+00> : vector<8x256xf32>
    %159 = tpu.matmul %147, %8, %cst_50 {dimension_numbers = #tpu.dot_dimension_numbers<[1], [0], [0], [1], [0, 0, 1, 1], [], []>} : vector<8x64xf32>, vector<64x256xf32>, vector<8x256xf32> -> vector<8x256xf32>
    %160 = arith.addf %158, %159 : vector<8x256xf32>
    %161 = vector.extract_strided_slice %160 {offsets = [0, 0], sizes = [8, 192], strides = [1, 1]} : vector<8x256xf32> to vector<8x192xf32>
    %162 = arith.negf %161 : vector<8x192xf32>
    %163 = math.exp %162 : vector<8x192xf32>
    %cst_51 = arith.constant 1.000000e+00 : f32
    %164 = vector.broadcast %cst_51 : f32 to vector<8x192xf32>
    %165 = arith.addf %164, %163 : vector<8x192xf32>
    %166 = arith.divf %164, %165 : vector<8x192xf32>
    %167 = vector.extract_strided_slice %160 {offsets = [0, 192], sizes = [8, 64], strides = [1, 1]} : vector<8x256xf32> to vector<8x64xf32>
    %168 = math.tanh %167 : vector<8x64xf32>
    %169 = vector.extract_strided_slice %166 {offsets = [0, 64], sizes = [8, 64], strides = [1, 1]} : vector<8x192xf32> to vector<8x64xf32>
    %170 = arith.mulf %169, %144 : vector<8x64xf32>
    %171 = vector.extract_strided_slice %166 {offsets = [0, 0], sizes = [8, 64], strides = [1, 1]} : vector<8x192xf32> to vector<8x64xf32>
    %172 = arith.mulf %171, %168 : vector<8x64xf32>
    %173 = arith.addf %170, %172 : vector<8x64xf32>
    %174 = vector.extract_strided_slice %166 {offsets = [0, 128], sizes = [8, 64], strides = [1, 1]} : vector<8x192xf32> to vector<8x64xf32>
    %175 = math.tanh %173 : vector<8x64xf32>
    %176 = arith.mulf %174, %175 : vector<8x64xf32>
    %177 = arith.index_cast %156 : i32 to index
    %c0_52 = arith.constant 0 : index
    %178 = vector.load %arg12[%177, %c0_52] : memref<64x128xf32, #tpu.memory_space<vmem>>, vector<8x64xf32>
    tpu.vector_store %arg12[%177, %c0_52], %176 {strides = array<i32>} : memref<64x128xf32, #tpu.memory_space<vmem>>, vector<8x64xf32>,
    %c7_i32_53 = arith.constant 7 : i32
    %179 = arith.subi %c7_i32_53, %c5_i32 : i32
    %c8_i32_54 = arith.constant 8 : i32
    %180 = arith.muli %179, %c8_i32_54 : i32
    %181 = tpu.assume_multiple %180, 8 : i32
    %182 = arith.index_cast %181 : i32 to index
    %c64_55 = arith.constant 64 : index
    %183 = vector.load %arg12[%182, %c64_55] : memref<64x128xf32, #tpu.memory_space<vmem>>, vector<8x64xf32>
    tpu.vector_store %arg12[%182, %c64_55], %176 {strides = array<i32>} : memref<64x128xf32, #tpu.memory_space<vmem>>, vector<8x64xf32>,
    %c6_i32 = arith.constant 6 : i32
    %c8_i32_56 = arith.constant 8 : i32
    %184 = arith.muli %c6_i32, %c8_i32_56 : i32
    %185 = tpu.assume_multiple %184, 8 : i32
    %186 = arith.index_cast %185 : i32 to index
    %c0_57 = arith.constant 0 : index
    %187 = vector.load %arg11[%186, %c0_57] : memref<64x256xf32, #tpu.memory_space<vmem>>, vector<8x256xf32>
    %cst_58 = arith.constant dense<0.000000e+00> : vector<8x256xf32>
    %188 = tpu.matmul %176, %8, %cst_58 {dimension_numbers = #tpu.dot_dimension_numbers<[1], [0], [0], [1], [0, 0, 1, 1], [], []>} : vector<8x64xf32>, vector<64x256xf32>, vector<8x256xf32> -> vector<8x256xf32>
    %189 = arith.addf %187, %188 : vector<8x256xf32>
    %190 = vector.extract_strided_slice %189 {offsets = [0, 0], sizes = [8, 192], strides = [1, 1]} : vector<8x256xf32> to vector<8x192xf32>
    %191 = arith.negf %190 : vector<8x192xf32>
    %192 = math.exp %191 : vector<8x192xf32>
    %cst_59 = arith.constant 1.000000e+00 : f32
    %193 = vector.broadcast %cst_59 : f32 to vector<8x192xf32>
    %194 = arith.addf %193, %192 : vector<8x192xf32>
    %195 = arith.divf %193, %194 : vector<8x192xf32>
    %196 = vector.extract_strided_slice %189 {offsets = [0, 192], sizes = [8, 64], strides = [1, 1]} : vector<8x256xf32> to vector<8x64xf32>
    %197 = math.tanh %196 : vector<8x64xf32>
    %198 = vector.extract_strided_slice %195 {offsets = [0, 64], sizes = [8, 64], strides = [1, 1]} : vector<8x192xf32> to vector<8x64xf32>
    %199 = arith.mulf %198, %173 : vector<8x64xf32>
    %200 = vector.extract_strided_slice %195 {offsets = [0, 0], sizes = [8, 64], strides = [1, 1]} : vector<8x192xf32> to vector<8x64xf32>
    %201 = arith.mulf %200, %197 : vector<8x64xf32>
    %202 = arith.addf %199, %201 : vector<8x64xf32>
    %203 = vector.extract_strided_slice %195 {offsets = [0, 128], sizes = [8, 64], strides = [1, 1]} : vector<8x192xf32> to vector<8x64xf32>
    %204 = math.tanh %202 : vector<8x64xf32>
    %205 = arith.mulf %203, %204 : vector<8x64xf32>
    %206 = arith.index_cast %185 : i32 to index
    %c0_60 = arith.constant 0 : index
    %207 = vector.load %arg12[%206, %c0_60] : memref<64x128xf32, #tpu.memory_space<vmem>>, vector<8x64xf32>
    tpu.vector_store %arg12[%206, %c0_60], %205 {strides = array<i32>} : memref<64x128xf32, #tpu.memory_space<vmem>>, vector<8x64xf32>,
    %c7_i32_61 = arith.constant 7 : i32
    %208 = arith.subi %c7_i32_61, %c6_i32 : i32
    %c8_i32_62 = arith.constant 8 : i32
    %209 = arith.muli %208, %c8_i32_62 : i32
    %210 = tpu.assume_multiple %209, 8 : i32
    %211 = arith.index_cast %210 : i32 to index
    %c64_63 = arith.constant 64 : index
    %212 = vector.load %arg12[%211, %c64_63] : memref<64x128xf32, #tpu.memory_space<vmem>>, vector<8x64xf32>
    tpu.vector_store %arg12[%211, %c64_63], %205 {strides = array<i32>} : memref<64x128xf32, #tpu.memory_space<vmem>>, vector<8x64xf32>,
    %c7_i32_64 = arith.constant 7 : i32
    %c8_i32_65 = arith.constant 8 : i32
    %213 = arith.muli %c7_i32_64, %c8_i32_65 : i32
    %214 = tpu.assume_multiple %213, 8 : i32
    %215 = arith.index_cast %214 : i32 to index
    %c0_66 = arith.constant 0 : index
    %216 = vector.load %arg11[%215, %c0_66] : memref<64x256xf32, #tpu.memory_space<vmem>>, vector<8x256xf32>
    %cst_67 = arith.constant dense<0.000000e+00> : vector<8x256xf32>
    %217 = tpu.matmul %205, %8, %cst_67 {dimension_numbers = #tpu.dot_dimension_numbers<[1], [0], [0], [1], [0, 0, 1, 1], [], []>} : vector<8x64xf32>, vector<64x256xf32>, vector<8x256xf32> -> vector<8x256xf32>
    %218 = arith.addf %216, %217 : vector<8x256xf32>
    %219 = vector.extract_strided_slice %218 {offsets = [0, 0], sizes = [8, 192], strides = [1, 1]} : vector<8x256xf32> to vector<8x192xf32>
    %220 = arith.negf %219 : vector<8x192xf32>
    %221 = math.exp %220 : vector<8x192xf32>
    %cst_68 = arith.constant 1.000000e+00 : f32
    %222 = vector.broadcast %cst_68 : f32 to vector<8x192xf32>
    %223 = arith.addf %222, %221 : vector<8x192xf32>
    %224 = arith.divf %222, %223 : vector<8x192xf32>
    %225 = vector.extract_strided_slice %218 {offsets = [0, 192], sizes = [8, 64], strides = [1, 1]} : vector<8x256xf32> to vector<8x64xf32>
    %226 = math.tanh %225 : vector<8x64xf32>
    %227 = vector.extract_strided_slice %224 {offsets = [0, 64], sizes = [8, 64], strides = [1, 1]} : vector<8x192xf32> to vector<8x64xf32>
    %228 = arith.mulf %227, %202 : vector<8x64xf32>
    %229 = vector.extract_strided_slice %224 {offsets = [0, 0], sizes = [8, 64], strides = [1, 1]} : vector<8x192xf32> to vector<8x64xf32>
    %230 = arith.mulf %229, %226 : vector<8x64xf32>
    %231 = arith.addf %228, %230 : vector<8x64xf32>
    %232 = vector.extract_strided_slice %224 {offsets = [0, 128], sizes = [8, 64], strides = [1, 1]} : vector<8x192xf32> to vector<8x64xf32>
    %233 = math.tanh %231 : vector<8x64xf32>
    %234 = arith.mulf %232, %233 : vector<8x64xf32>
    %235 = arith.index_cast %214 : i32 to index
    %c0_69 = arith.constant 0 : index
    %236 = vector.load %arg12[%235, %c0_69] : memref<64x128xf32, #tpu.memory_space<vmem>>, vector<8x64xf32>
    tpu.vector_store %arg12[%235, %c0_69], %234 {strides = array<i32>} : memref<64x128xf32, #tpu.memory_space<vmem>>, vector<8x64xf32>,
    %c7_i32_70 = arith.constant 7 : i32
    %237 = arith.subi %c7_i32_70, %c7_i32_64 : i32
    %c8_i32_71 = arith.constant 8 : i32
    %238 = arith.muli %237, %c8_i32_71 : i32
    %239 = tpu.assume_multiple %238, 8 : i32
    %240 = arith.index_cast %239 : i32 to index
    %c64_72 = arith.constant 64 : index
    %241 = vector.load %arg12[%240, %c64_72] : memref<64x128xf32, #tpu.memory_space<vmem>>, vector<8x64xf32>
    tpu.vector_store %arg12[%240, %c64_72], %234 {strides = array<i32>} : memref<64x128xf32, #tpu.memory_space<vmem>>, vector<8x64xf32>,
    %c8_i32_73 = arith.constant 8 : i32
    %c0_74 = arith.constant 0 : index
    %c0_75 = arith.constant 0 : index
    %242 = vector.load %arg12[%c0_74, %c0_75] : memref<64x128xf32, #tpu.memory_space<vmem>>, vector<64x128xf32>
    %243 = arith.truncf %242 : vector<64x128xf32> to vector<64x128xbf16>
    %c0_76 = arith.constant 0 : index
    %c0_77 = arith.constant 0 : index
    %244 = vector.load %arg5[%c0_76, %c0_77] : memref<128x256xbf16, #tpu.memory_space<vmem>>, vector<128x256xbf16>
    %cst_78 = arith.constant dense<0.000000e+00> : vector<64x256xf32>
    %245 = tpu.matmul %243, %244, %cst_78 {dimension_numbers = #tpu.dot_dimension_numbers<[1], [0], [0], [1], [0, 0, 1, 1], [], []>} : vector<64x128xbf16>, vector<128x256xbf16>, vector<64x256xf32> -> vector<64x256xf32>
    %c0_79 = arith.constant 0 : index
    %c0_80 = arith.constant 0 : index
    %246 = vector.load %arg7[%c0_79, %c0_80] : memref<1x256xf32, #tpu.memory_space<vmem>>, vector<1x256xf32>
    %247 = vector.broadcast %246 : vector<1x256xf32> to vector<64x256xf32>
    %248 = arith.addf %245, %247 : vector<64x256xf32>
    %c0_81 = arith.constant 0 : index
    %c0_82 = arith.constant 0 : index
    %249 = vector.load %arg11[%c0_81, %c0_82] : memref<64x256xf32, #tpu.memory_space<vmem>>, vector<64x256xf32>
    tpu.vector_store %arg11[%c0_81, %c0_82], %248 {strides = array<i32>} : memref<64x256xf32, #tpu.memory_space<vmem>>, vector<64x256xf32>,
    %c0_83 = arith.constant 0 : index
    %c0_84 = arith.constant 0 : index
    %250 = vector.load %arg6[%c0_83, %c0_84] : memref<64x256xf32, #tpu.memory_space<vmem>>, vector<64x256xf32>
    %cst_85 = arith.constant 0.000000e+00 : f32
    %251 = vector.broadcast %cst_85 : f32 to vector<8x64xf32>
    %c0_i32_86 = arith.constant 0 : i32
    %c8_i32_87 = arith.constant 8 : i32
    %252 = arith.muli %c0_i32_86, %c8_i32_87 : i32
    %253 = tpu.assume_multiple %252, 8 : i32
    %254 = arith.index_cast %253 : i32 to index
    %c0_88 = arith.constant 0 : index
    %255 = vector.load %arg11[%254, %c0_88] : memref<64x256xf32, #tpu.memory_space<vmem>>, vector<8x256xf32>
    %cst_89 = arith.constant dense<0.000000e+00> : vector<8x256xf32>
    %256 = tpu.matmul %251, %250, %cst_89 {dimension_numbers = #tpu.dot_dimension_numbers<[1], [0], [0], [1], [0, 0, 1, 1], [], []>} : vector<8x64xf32>, vector<64x256xf32>, vector<8x256xf32> -> vector<8x256xf32>
    %257 = arith.addf %255, %256 : vector<8x256xf32>
    %258 = vector.extract_strided_slice %257 {offsets = [0, 0], sizes = [8, 192], strides = [1, 1]} : vector<8x256xf32> to vector<8x192xf32>
    %259 = arith.negf %258 : vector<8x192xf32>
    %260 = math.exp %259 : vector<8x192xf32>
    %cst_90 = arith.constant 1.000000e+00 : f32
    %261 = vector.broadcast %cst_90 : f32 to vector<8x192xf32>
    %262 = arith.addf %261, %260 : vector<8x192xf32>
    %263 = arith.divf %261, %262 : vector<8x192xf32>
    %264 = vector.extract_strided_slice %257 {offsets = [0, 192], sizes = [8, 64], strides = [1, 1]} : vector<8x256xf32> to vector<8x64xf32>
    %265 = math.tanh %264 : vector<8x64xf32>
    %266 = vector.extract_strided_slice %263 {offsets = [0, 64], sizes = [8, 64], strides = [1, 1]} : vector<8x192xf32> to vector<8x64xf32>
    %267 = arith.mulf %266, %251 : vector<8x64xf32>
    %268 = vector.extract_strided_slice %263 {offsets = [0, 0], sizes = [8, 64], strides = [1, 1]} : vector<8x192xf32> to vector<8x64xf32>
    %269 = arith.mulf %268, %265 : vector<8x64xf32>
    %270 = arith.addf %267, %269 : vector<8x64xf32>
    %271 = vector.extract_strided_slice %263 {offsets = [0, 128], sizes = [8, 64], strides = [1, 1]} : vector<8x192xf32> to vector<8x64xf32>
    %272 = math.tanh %270 : vector<8x64xf32>
    %273 = arith.mulf %271, %272 : vector<8x64xf32>
    %274 = arith.index_cast %253 : i32 to index
    %c0_91 = arith.constant 0 : index
    %275 = vector.load %arg12[%274, %c0_91] : memref<64x128xf32, #tpu.memory_space<vmem>>, vector<8x64xf32>
    tpu.vector_store %arg12[%274, %c0_91], %273 {strides = array<i32>} : memref<64x128xf32, #tpu.memory_space<vmem>>, vector<8x64xf32>,
    %c7_i32_92 = arith.constant 7 : i32
    %276 = arith.subi %c7_i32_92, %c0_i32_86 : i32
    %c8_i32_93 = arith.constant 8 : i32
    %277 = arith.muli %276, %c8_i32_93 : i32
    %278 = tpu.assume_multiple %277, 8 : i32
    %279 = arith.index_cast %278 : i32 to index
    %c64_94 = arith.constant 64 : index
    %280 = vector.load %arg12[%279, %c64_94] : memref<64x128xf32, #tpu.memory_space<vmem>>, vector<8x64xf32>
    tpu.vector_store %arg12[%279, %c64_94], %273 {strides = array<i32>} : memref<64x128xf32, #tpu.memory_space<vmem>>, vector<8x64xf32>,
    %c1_i32_95 = arith.constant 1 : i32
    %c8_i32_96 = arith.constant 8 : i32
    %281 = arith.muli %c1_i32_95, %c8_i32_96 : i32
    %282 = tpu.assume_multiple %281, 8 : i32
    %283 = arith.index_cast %282 : i32 to index
    %c0_97 = arith.constant 0 : index
    %284 = vector.load %arg11[%283, %c0_97] : memref<64x256xf32, #tpu.memory_space<vmem>>, vector<8x256xf32>
    %cst_98 = arith.constant dense<0.000000e+00> : vector<8x256xf32>
    %285 = tpu.matmul %273, %250, %cst_98 {dimension_numbers = #tpu.dot_dimension_numbers<[1], [0], [0], [1], [0, 0, 1, 1], [], []>} : vector<8x64xf32>, vector<64x256xf32>, vector<8x256xf32> -> vector<8x256xf32>
    %286 = arith.addf %284, %285 : vector<8x256xf32>
    %287 = vector.extract_strided_slice %286 {offsets = [0, 0], sizes = [8, 192], strides = [1, 1]} : vector<8x256xf32> to vector<8x192xf32>
    %288 = arith.negf %287 : vector<8x192xf32>
    %289 = math.exp %288 : vector<8x192xf32>
    %cst_99 = arith.constant 1.000000e+00 : f32
    %290 = vector.broadcast %cst_99 : f32 to vector<8x192xf32>
    %291 = arith.addf %290, %289 : vector<8x192xf32>
    %292 = arith.divf %290, %291 : vector<8x192xf32>
    %293 = vector.extract_strided_slice %286 {offsets = [0, 192], sizes = [8, 64], strides = [1, 1]} : vector<8x256xf32> to vector<8x64xf32>
    %294 = math.tanh %293 : vector<8x64xf32>
    %295 = vector.extract_strided_slice %292 {offsets = [0, 64], sizes = [8, 64], strides = [1, 1]} : vector<8x192xf32> to vector<8x64xf32>
    %296 = arith.mulf %295, %270 : vector<8x64xf32>
    %297 = vector.extract_strided_slice %292 {offsets = [0, 0], sizes = [8, 64], strides = [1, 1]} : vector<8x192xf32> to vector<8x64xf32>
    %298 = arith.mulf %297, %294 : vector<8x64xf32>
    %299 = arith.addf %296, %298 : vector<8x64xf32>
    %300 = vector.extract_strided_slice %292 {offsets = [0, 128], sizes = [8, 64], strides = [1, 1]} : vector<8x192xf32> to vector<8x64xf32>
    %301 = math.tanh %299 : vector<8x64xf32>
    %302 = arith.mulf %300, %301 : vector<8x64xf32>
    %303 = arith.index_cast %282 : i32 to index
    %c0_100 = arith.constant 0 : index
    %304 = vector.load %arg12[%303, %c0_100] : memref<64x128xf32, #tpu.memory_space<vmem>>, vector<8x64xf32>
    tpu.vector_store %arg12[%303, %c0_100], %302 {strides = array<i32>} : memref<64x128xf32, #tpu.memory_space<vmem>>, vector<8x64xf32>,
    %c7_i32_101 = arith.constant 7 : i32
    %305 = arith.subi %c7_i32_101, %c1_i32_95 : i32
    %c8_i32_102 = arith.constant 8 : i32
    %306 = arith.muli %305, %c8_i32_102 : i32
    %307 = tpu.assume_multiple %306, 8 : i32
    %308 = arith.index_cast %307 : i32 to index
    %c64_103 = arith.constant 64 : index
    %309 = vector.load %arg12[%308, %c64_103] : memref<64x128xf32, #tpu.memory_space<vmem>>, vector<8x64xf32>
    tpu.vector_store %arg12[%308, %c64_103], %302 {strides = array<i32>} : memref<64x128xf32, #tpu.memory_space<vmem>>, vector<8x64xf32>,
    %c2_i32_104 = arith.constant 2 : i32
    %c8_i32_105 = arith.constant 8 : i32
    %310 = arith.muli %c2_i32_104, %c8_i32_105 : i32
    %311 = tpu.assume_multiple %310, 8 : i32
    %312 = arith.index_cast %311 : i32 to index
    %c0_106 = arith.constant 0 : index
    %313 = vector.load %arg11[%312, %c0_106] : memref<64x256xf32, #tpu.memory_space<vmem>>, vector<8x256xf32>
    %cst_107 = arith.constant dense<0.000000e+00> : vector<8x256xf32>
    %314 = tpu.matmul %302, %250, %cst_107 {dimension_numbers = #tpu.dot_dimension_numbers<[1], [0], [0], [1], [0, 0, 1, 1], [], []>} : vector<8x64xf32>, vector<64x256xf32>, vector<8x256xf32> -> vector<8x256xf32>
    %315 = arith.addf %313, %314 : vector<8x256xf32>
    %316 = vector.extract_strided_slice %315 {offsets = [0, 0], sizes = [8, 192], strides = [1, 1]} : vector<8x256xf32> to vector<8x192xf32>
    %317 = arith.negf %316 : vector<8x192xf32>
    %318 = math.exp %317 : vector<8x192xf32>
    %cst_108 = arith.constant 1.000000e+00 : f32
    %319 = vector.broadcast %cst_108 : f32 to vector<8x192xf32>
    %320 = arith.addf %319, %318 : vector<8x192xf32>
    %321 = arith.divf %319, %320 : vector<8x192xf32>
    %322 = vector.extract_strided_slice %315 {offsets = [0, 192], sizes = [8, 64], strides = [1, 1]} : vector<8x256xf32> to vector<8x64xf32>
    %323 = math.tanh %322 : vector<8x64xf32>
    %324 = vector.extract_strided_slice %321 {offsets = [0, 64], sizes = [8, 64], strides = [1, 1]} : vector<8x192xf32> to vector<8x64xf32>
    %325 = arith.mulf %324, %299 : vector<8x64xf32>
    %326 = vector.extract_strided_slice %321 {offsets = [0, 0], sizes = [8, 64], strides = [1, 1]} : vector<8x192xf32> to vector<8x64xf32>
    %327 = arith.mulf %326, %323 : vector<8x64xf32>
    %328 = arith.addf %325, %327 : vector<8x64xf32>
    %329 = vector.extract_strided_slice %321 {offsets = [0, 128], sizes = [8, 64], strides = [1, 1]} : vector<8x192xf32> to vector<8x64xf32>
    %330 = math.tanh %328 : vector<8x64xf32>
    %331 = arith.mulf %329, %330 : vector<8x64xf32>
    %332 = arith.index_cast %311 : i32 to index
    %c0_109 = arith.constant 0 : index
    %333 = vector.load %arg12[%332, %c0_109] : memref<64x128xf32, #tpu.memory_space<vmem>>, vector<8x64xf32>
    tpu.vector_store %arg12[%332, %c0_109], %331 {strides = array<i32>} : memref<64x128xf32, #tpu.memory_space<vmem>>, vector<8x64xf32>,
    %c7_i32_110 = arith.constant 7 : i32
    %334 = arith.subi %c7_i32_110, %c2_i32_104 : i32
    %c8_i32_111 = arith.constant 8 : i32
    %335 = arith.muli %334, %c8_i32_111 : i32
    %336 = tpu.assume_multiple %335, 8 : i32
    %337 = arith.index_cast %336 : i32 to index
    %c64_112 = arith.constant 64 : index
    %338 = vector.load %arg12[%337, %c64_112] : memref<64x128xf32, #tpu.memory_space<vmem>>, vector<8x64xf32>
    tpu.vector_store %arg12[%337, %c64_112], %331 {strides = array<i32>} : memref<64x128xf32, #tpu.memory_space<vmem>>, vector<8x64xf32>,
    %c3_i32_113 = arith.constant 3 : i32
    %c8_i32_114 = arith.constant 8 : i32
    %339 = arith.muli %c3_i32_113, %c8_i32_114 : i32
    %340 = tpu.assume_multiple %339, 8 : i32
    %341 = arith.index_cast %340 : i32 to index
    %c0_115 = arith.constant 0 : index
    %342 = vector.load %arg11[%341, %c0_115] : memref<64x256xf32, #tpu.memory_space<vmem>>, vector<8x256xf32>
    %cst_116 = arith.constant dense<0.000000e+00> : vector<8x256xf32>
    %343 = tpu.matmul %331, %250, %cst_116 {dimension_numbers = #tpu.dot_dimension_numbers<[1], [0], [0], [1], [0, 0, 1, 1], [], []>} : vector<8x64xf32>, vector<64x256xf32>, vector<8x256xf32> -> vector<8x256xf32>
    %344 = arith.addf %342, %343 : vector<8x256xf32>
    %345 = vector.extract_strided_slice %344 {offsets = [0, 0], sizes = [8, 192], strides = [1, 1]} : vector<8x256xf32> to vector<8x192xf32>
    %346 = arith.negf %345 : vector<8x192xf32>
    %347 = math.exp %346 : vector<8x192xf32>
    %cst_117 = arith.constant 1.000000e+00 : f32
    %348 = vector.broadcast %cst_117 : f32 to vector<8x192xf32>
    %349 = arith.addf %348, %347 : vector<8x192xf32>
    %350 = arith.divf %348, %349 : vector<8x192xf32>
    %351 = vector.extract_strided_slice %344 {offsets = [0, 192], sizes = [8, 64], strides = [1, 1]} : vector<8x256xf32> to vector<8x64xf32>
    %352 = math.tanh %351 : vector<8x64xf32>
    %353 = vector.extract_strided_slice %350 {offsets = [0, 64], sizes = [8, 64], strides = [1, 1]} : vector<8x192xf32> to vector<8x64xf32>
    %354 = arith.mulf %353, %328 : vector<8x64xf32>
    %355 = vector.extract_strided_slice %350 {offsets = [0, 0], sizes = [8, 64], strides = [1, 1]} : vector<8x192xf32> to vector<8x64xf32>
    %356 = arith.mulf %355, %352 : vector<8x64xf32>
    %357 = arith.addf %354, %356 : vector<8x64xf32>
    %358 = vector.extract_strided_slice %350 {offsets = [0, 128], sizes = [8, 64], strides = [1, 1]} : vector<8x192xf32> to vector<8x64xf32>
    %359 = math.tanh %357 : vector<8x64xf32>
    %360 = arith.mulf %358, %359 : vector<8x64xf32>
    %361 = arith.index_cast %340 : i32 to index
    %c0_118 = arith.constant 0 : index
    %362 = vector.load %arg12[%361, %c0_118] : memref<64x128xf32, #tpu.memory_space<vmem>>, vector<8x64xf32>
    tpu.vector_store %arg12[%361, %c0_118], %360 {strides = array<i32>} : memref<64x128xf32, #tpu.memory_space<vmem>>, vector<8x64xf32>,
    %c7_i32_119 = arith.constant 7 : i32
    %363 = arith.subi %c7_i32_119, %c3_i32_113 : i32
    %c8_i32_120 = arith.constant 8 : i32
    %364 = arith.muli %363, %c8_i32_120 : i32
    %365 = tpu.assume_multiple %364, 8 : i32
    %366 = arith.index_cast %365 : i32 to index
    %c64_121 = arith.constant 64 : index
    %367 = vector.load %arg12[%366, %c64_121] : memref<64x128xf32, #tpu.memory_space<vmem>>, vector<8x64xf32>
    tpu.vector_store %arg12[%366, %c64_121], %360 {strides = array<i32>} : memref<64x128xf32, #tpu.memory_space<vmem>>, vector<8x64xf32>,
    %c4_i32_122 = arith.constant 4 : i32
    %c8_i32_123 = arith.constant 8 : i32
    %368 = arith.muli %c4_i32_122, %c8_i32_123 : i32
    %369 = tpu.assume_multiple %368, 8 : i32
    %370 = arith.index_cast %369 : i32 to index
    %c0_124 = arith.constant 0 : index
    %371 = vector.load %arg11[%370, %c0_124] : memref<64x256xf32, #tpu.memory_space<vmem>>, vector<8x256xf32>
    %cst_125 = arith.constant dense<0.000000e+00> : vector<8x256xf32>
    %372 = tpu.matmul %360, %250, %cst_125 {dimension_numbers = #tpu.dot_dimension_numbers<[1], [0], [0], [1], [0, 0, 1, 1], [], []>} : vector<8x64xf32>, vector<64x256xf32>, vector<8x256xf32> -> vector<8x256xf32>
    %373 = arith.addf %371, %372 : vector<8x256xf32>
    %374 = vector.extract_strided_slice %373 {offsets = [0, 0], sizes = [8, 192], strides = [1, 1]} : vector<8x256xf32> to vector<8x192xf32>
    %375 = arith.negf %374 : vector<8x192xf32>
    %376 = math.exp %375 : vector<8x192xf32>
    %cst_126 = arith.constant 1.000000e+00 : f32
    %377 = vector.broadcast %cst_126 : f32 to vector<8x192xf32>
    %378 = arith.addf %377, %376 : vector<8x192xf32>
    %379 = arith.divf %377, %378 : vector<8x192xf32>
    %380 = vector.extract_strided_slice %373 {offsets = [0, 192], sizes = [8, 64], strides = [1, 1]} : vector<8x256xf32> to vector<8x64xf32>
    %381 = math.tanh %380 : vector<8x64xf32>
    %382 = vector.extract_strided_slice %379 {offsets = [0, 64], sizes = [8, 64], strides = [1, 1]} : vector<8x192xf32> to vector<8x64xf32>
    %383 = arith.mulf %382, %357 : vector<8x64xf32>
    %384 = vector.extract_strided_slice %379 {offsets = [0, 0], sizes = [8, 64], strides = [1, 1]} : vector<8x192xf32> to vector<8x64xf32>
    %385 = arith.mulf %384, %381 : vector<8x64xf32>
    %386 = arith.addf %383, %385 : vector<8x64xf32>
    %387 = vector.extract_strided_slice %379 {offsets = [0, 128], sizes = [8, 64], strides = [1, 1]} : vector<8x192xf32> to vector<8x64xf32>
    %388 = math.tanh %386 : vector<8x64xf32>
    %389 = arith.mulf %387, %388 : vector<8x64xf32>
    %390 = arith.index_cast %369 : i32 to index
    %c0_127 = arith.constant 0 : index
    %391 = vector.load %arg12[%390, %c0_127] : memref<64x128xf32, #tpu.memory_space<vmem>>, vector<8x64xf32>
    tpu.vector_store %arg12[%390, %c0_127], %389 {strides = array<i32>} : memref<64x128xf32, #tpu.memory_space<vmem>>, vector<8x64xf32>,
    %c7_i32_128 = arith.constant 7 : i32
    %392 = arith.subi %c7_i32_128, %c4_i32_122 : i32
    %c8_i32_129 = arith.constant 8 : i32
    %393 = arith.muli %392, %c8_i32_129 : i32
    %394 = tpu.assume_multiple %393, 8 : i32
    %395 = arith.index_cast %394 : i32 to index
    %c64_130 = arith.constant 64 : index
    %396 = vector.load %arg12[%395, %c64_130] : memref<64x128xf32, #tpu.memory_space<vmem>>, vector<8x64xf32>
    tpu.vector_store %arg12[%395, %c64_130], %389 {strides = array<i32>} : memref<64x128xf32, #tpu.memory_space<vmem>>, vector<8x64xf32>,
    %c5_i32_131 = arith.constant 5 : i32
    %c8_i32_132 = arith.constant 8 : i32
    %397 = arith.muli %c5_i32_131, %c8_i32_132 : i32
    %398 = tpu.assume_multiple %397, 8 : i32
    %399 = arith.index_cast %398 : i32 to index
    %c0_133 = arith.constant 0 : index
    %400 = vector.load %arg11[%399, %c0_133] : memref<64x256xf32, #tpu.memory_space<vmem>>, vector<8x256xf32>
    %cst_134 = arith.constant dense<0.000000e+00> : vector<8x256xf32>
    %401 = tpu.matmul %389, %250, %cst_134 {dimension_numbers = #tpu.dot_dimension_numbers<[1], [0], [0], [1], [0, 0, 1, 1], [], []>} : vector<8x64xf32>, vector<64x256xf32>, vector<8x256xf32> -> vector<8x256xf32>
    %402 = arith.addf %400, %401 : vector<8x256xf32>
    %403 = vector.extract_strided_slice %402 {offsets = [0, 0], sizes = [8, 192], strides = [1, 1]} : vector<8x256xf32> to vector<8x192xf32>
    %404 = arith.negf %403 : vector<8x192xf32>
    %405 = math.exp %404 : vector<8x192xf32>
    %cst_135 = arith.constant 1.000000e+00 : f32
    %406 = vector.broadcast %cst_135 : f32 to vector<8x192xf32>
    %407 = arith.addf %406, %405 : vector<8x192xf32>
    %408 = arith.divf %406, %407 : vector<8x192xf32>
    %409 = vector.extract_strided_slice %402 {offsets = [0, 192], sizes = [8, 64], strides = [1, 1]} : vector<8x256xf32> to vector<8x64xf32>
    %410 = math.tanh %409 : vector<8x64xf32>
    %411 = vector.extract_strided_slice %408 {offsets = [0, 64], sizes = [8, 64], strides = [1, 1]} : vector<8x192xf32> to vector<8x64xf32>
    %412 = arith.mulf %411, %386 : vector<8x64xf32>
    %413 = vector.extract_strided_slice %408 {offsets = [0, 0], sizes = [8, 64], strides = [1, 1]} : vector<8x192xf32> to vector<8x64xf32>
    %414 = arith.mulf %413, %410 : vector<8x64xf32>
    %415 = arith.addf %412, %414 : vector<8x64xf32>
    %416 = vector.extract_strided_slice %408 {offsets = [0, 128], sizes = [8, 64], strides = [1, 1]} : vector<8x192xf32> to vector<8x64xf32>
    %417 = math.tanh %415 : vector<8x64xf32>
    %418 = arith.mulf %416, %417 : vector<8x64xf32>
    %419 = arith.index_cast %398 : i32 to index
    %c0_136 = arith.constant 0 : index
    %420 = vector.load %arg12[%419, %c0_136] : memref<64x128xf32, #tpu.memory_space<vmem>>, vector<8x64xf32>
    tpu.vector_store %arg12[%419, %c0_136], %418 {strides = array<i32>} : memref<64x128xf32, #tpu.memory_space<vmem>>, vector<8x64xf32>,
    %c7_i32_137 = arith.constant 7 : i32
    %421 = arith.subi %c7_i32_137, %c5_i32_131 : i32
    %c8_i32_138 = arith.constant 8 : i32
    %422 = arith.muli %421, %c8_i32_138 : i32
    %423 = tpu.assume_multiple %422, 8 : i32
    %424 = arith.index_cast %423 : i32 to index
    %c64_139 = arith.constant 64 : index
    %425 = vector.load %arg12[%424, %c64_139] : memref<64x128xf32, #tpu.memory_space<vmem>>, vector<8x64xf32>
    tpu.vector_store %arg12[%424, %c64_139], %418 {strides = array<i32>} : memref<64x128xf32, #tpu.memory_space<vmem>>, vector<8x64xf32>,
    %c6_i32_140 = arith.constant 6 : i32
    %c8_i32_141 = arith.constant 8 : i32
    %426 = arith.muli %c6_i32_140, %c8_i32_141 : i32
    %427 = tpu.assume_multiple %426, 8 : i32
    %428 = arith.index_cast %427 : i32 to index
    %c0_142 = arith.constant 0 : index
    %429 = vector.load %arg11[%428, %c0_142] : memref<64x256xf32, #tpu.memory_space<vmem>>, vector<8x256xf32>
    %cst_143 = arith.constant dense<0.000000e+00> : vector<8x256xf32>
    %430 = tpu.matmul %418, %250, %cst_143 {dimension_numbers = #tpu.dot_dimension_numbers<[1], [0], [0], [1], [0, 0, 1, 1], [], []>} : vector<8x64xf32>, vector<64x256xf32>, vector<8x256xf32> -> vector<8x256xf32>
    %431 = arith.addf %429, %430 : vector<8x256xf32>
    %432 = vector.extract_strided_slice %431 {offsets = [0, 0], sizes = [8, 192], strides = [1, 1]} : vector<8x256xf32> to vector<8x192xf32>
    %433 = arith.negf %432 : vector<8x192xf32>
    %434 = math.exp %433 : vector<8x192xf32>
    %cst_144 = arith.constant 1.000000e+00 : f32
    %435 = vector.broadcast %cst_144 : f32 to vector<8x192xf32>
    %436 = arith.addf %435, %434 : vector<8x192xf32>
    %437 = arith.divf %435, %436 : vector<8x192xf32>
    %438 = vector.extract_strided_slice %431 {offsets = [0, 192], sizes = [8, 64], strides = [1, 1]} : vector<8x256xf32> to vector<8x64xf32>
    %439 = math.tanh %438 : vector<8x64xf32>
    %440 = vector.extract_strided_slice %437 {offsets = [0, 64], sizes = [8, 64], strides = [1, 1]} : vector<8x192xf32> to vector<8x64xf32>
    %441 = arith.mulf %440, %415 : vector<8x64xf32>
    %442 = vector.extract_strided_slice %437 {offsets = [0, 0], sizes = [8, 64], strides = [1, 1]} : vector<8x192xf32> to vector<8x64xf32>
    %443 = arith.mulf %442, %439 : vector<8x64xf32>
    %444 = arith.addf %441, %443 : vector<8x64xf32>
    %445 = vector.extract_strided_slice %437 {offsets = [0, 128], sizes = [8, 64], strides = [1, 1]} : vector<8x192xf32> to vector<8x64xf32>
    %446 = math.tanh %444 : vector<8x64xf32>
    %447 = arith.mulf %445, %446 : vector<8x64xf32>
    %448 = arith.index_cast %427 : i32 to index
    %c0_145 = arith.constant 0 : index
    %449 = vector.load %arg12[%448, %c0_145] : memref<64x128xf32, #tpu.memory_space<vmem>>, vector<8x64xf32>
    tpu.vector_store %arg12[%448, %c0_145], %447 {strides = array<i32>} : memref<64x128xf32, #tpu.memory_space<vmem>>, vector<8x64xf32>,
    %c7_i32_146 = arith.constant 7 : i32
    %450 = arith.subi %c7_i32_146, %c6_i32_140 : i32
    %c8_i32_147 = arith.constant 8 : i32
    %451 = arith.muli %450, %c8_i32_147 : i32
    %452 = tpu.assume_multiple %451, 8 : i32
    %453 = arith.index_cast %452 : i32 to index
    %c64_148 = arith.constant 64 : index
    %454 = vector.load %arg12[%453, %c64_148] : memref<64x128xf32, #tpu.memory_space<vmem>>, vector<8x64xf32>
    tpu.vector_store %arg12[%453, %c64_148], %447 {strides = array<i32>} : memref<64x128xf32, #tpu.memory_space<vmem>>, vector<8x64xf32>,
    %c7_i32_149 = arith.constant 7 : i32
    %c8_i32_150 = arith.constant 8 : i32
    %455 = arith.muli %c7_i32_149, %c8_i32_150 : i32
    %456 = tpu.assume_multiple %455, 8 : i32
    %457 = arith.index_cast %456 : i32 to index
    %c0_151 = arith.constant 0 : index
    %458 = vector.load %arg11[%457, %c0_151] : memref<64x256xf32, #tpu.memory_space<vmem>>, vector<8x256xf32>
    %cst_152 = arith.constant dense<0.000000e+00> : vector<8x256xf32>
    %459 = tpu.matmul %447, %250, %cst_152 {dimension_numbers = #tpu.dot_dimension_numbers<[1], [0], [0], [1], [0, 0, 1, 1], [], []>} : vector<8x64xf32>, vector<64x256xf32>, vector<8x256xf32> -> vector<8x256xf32>
    %460 = arith.addf %458, %459 : vector<8x256xf32>
    %461 = vector.extract_strided_slice %460 {offsets = [0, 0], sizes = [8, 192], strides = [1, 1]} : vector<8x256xf32> to vector<8x192xf32>
    %462 = arith.negf %461 : vector<8x192xf32>
    %463 = math.exp %462 : vector<8x192xf32>
    %cst_153 = arith.constant 1.000000e+00 : f32
    %464 = vector.broadcast %cst_153 : f32 to vector<8x192xf32>
    %465 = arith.addf %464, %463 : vector<8x192xf32>
    %466 = arith.divf %464, %465 : vector<8x192xf32>
    %467 = vector.extract_strided_slice %460 {offsets = [0, 192], sizes = [8, 64], strides = [1, 1]} : vector<8x256xf32> to vector<8x64xf32>
    %468 = math.tanh %467 : vector<8x64xf32>
    %469 = vector.extract_strided_slice %466 {offsets = [0, 64], sizes = [8, 64], strides = [1, 1]} : vector<8x192xf32> to vector<8x64xf32>
    %470 = arith.mulf %469, %444 : vector<8x64xf32>
    %471 = vector.extract_strided_slice %466 {offsets = [0, 0], sizes = [8, 64], strides = [1, 1]} : vector<8x192xf32> to vector<8x64xf32>
    %472 = arith.mulf %471, %468 : vector<8x64xf32>
    %473 = arith.addf %470, %472 : vector<8x64xf32>
    %474 = vector.extract_strided_slice %466 {offsets = [0, 128], sizes = [8, 64], strides = [1, 1]} : vector<8x192xf32> to vector<8x64xf32>
    %475 = math.tanh %473 : vector<8x64xf32>
    %476 = arith.mulf %474, %475 : vector<8x64xf32>
    %477 = arith.index_cast %456 : i32 to index
    %c0_154 = arith.constant 0 : index
    %478 = vector.load %arg12[%477, %c0_154] : memref<64x128xf32, #tpu.memory_space<vmem>>, vector<8x64xf32>
    tpu.vector_store %arg12[%477, %c0_154], %476 {strides = array<i32>} : memref<64x128xf32, #tpu.memory_space<vmem>>, vector<8x64xf32>,
    %c7_i32_155 = arith.constant 7 : i32
    %479 = arith.subi %c7_i32_155, %c7_i32_149 : i32
    %c8_i32_156 = arith.constant 8 : i32
    %480 = arith.muli %479, %c8_i32_156 : i32
    %481 = tpu.assume_multiple %480, 8 : i32
    %482 = arith.index_cast %481 : i32 to index
    %c64_157 = arith.constant 64 : index
    %483 = vector.load %arg12[%482, %c64_157] : memref<64x128xf32, #tpu.memory_space<vmem>>, vector<8x64xf32>
    tpu.vector_store %arg12[%482, %c64_157], %476 {strides = array<i32>} : memref<64x128xf32, #tpu.memory_space<vmem>>, vector<8x64xf32>,
    %c8_i32_158 = arith.constant 8 : i32
    %c56 = arith.constant 56 : index
    %c0_159 = arith.constant 0 : index
    %484 = vector.load %arg12[%c56, %c0_159] : memref<64x128xf32, #tpu.memory_space<vmem>>, vector<8x128xf32>
    %cst_160 = arith.constant 0.000000e+00 : f32
    %485 = vector.broadcast %cst_160 : f32 to vector<8x128xf32>
    %486 = arith.maximumf %484, %485 : vector<8x128xf32>
    %c0_161 = arith.constant 0 : index
    %c0_162 = arith.constant 0 : index
    %487 = vector.load %arg8[%c0_161, %c0_162] : memref<128x4xf32, #tpu.memory_space<vmem>>, vector<128x4xf32>
    %cst_163 = arith.constant dense<0.000000e+00> : vector<8x4xf32>
    %488 = tpu.matmul %486, %487, %cst_163 {dimension_numbers = #tpu.dot_dimension_numbers<[1], [0], [0], [1], [0, 0, 1, 1], [], []>} : vector<8x128xf32>, vector<128x4xf32>, vector<8x4xf32> -> vector<8x4xf32>
    %c0_164 = arith.constant 0 : index
    %c0_165 = arith.constant 0 : index
    %489 = vector.load %arg9[%c0_164, %c0_165] : memref<1x4xf32, #tpu.memory_space<vmem>>, vector<1x4xf32>
    %490 = vector.broadcast %489 : vector<1x4xf32> to vector<8x4xf32>
    %491 = arith.addf %488, %490 : vector<8x4xf32>
    %492 = vector.extract_strided_slice %491 {offsets = [0, 0], sizes = [2, 4], strides = [1, 1]} : vector<8x4xf32> to vector<2x4xf32>
    %c0_166 = arith.constant 0 : index
    %c0_167 = arith.constant 0 : index
    %c0_168 = arith.constant 0 : index
    %493 = vector.load %arg10[%c0_166, %c0_167, %c0_168] : memref<1x2x4xf32, #tpu.memory_space<vmem>>, vector<1x2x4xf32>
    %494 = vector.shape_cast %493 : vector<1x2x4xf32> to vector<2x4xf32>
    %495 = vector.shape_cast %492 : vector<2x4xf32> to vector<1x2x4xf32>
    tpu.vector_store %arg10[%c0_166, %c0_167, %c0_168], %495 {strides = array<i32>} : memref<1x2x4xf32, #tpu.memory_space<vmem>>, vector<1x2x4xf32>,
    return
  }
  func.func @transform_0(%arg0: i32) -> (i32, i32, i32) {
    %c0_i32 = arith.constant 0 : i32
    %c0_i32_0 = arith.constant 0 : i32
    %c0_i32_1 = arith.constant 0 : i32
    return %arg0, %c0_i32, %c0_i32_0 : i32, i32, i32
  }
  func.func @transform_1(%arg0: i32) -> (i32, i32) {
    %c0_i32 = arith.constant 0 : i32
    %c0_i32_0 = arith.constant 0 : i32
    %c0_i32_1 = arith.constant 0 : i32
    return %c0_i32, %c0_i32_0 : i32, i32
  }
  func.func @transform_2(%arg0: i32) -> (i32, i32) {
    %c0_i32 = arith.constant 0 : i32
    %c0_i32_0 = arith.constant 0 : i32
    %c0_i32_1 = arith.constant 0 : i32
    return %c0_i32, %c0_i32_0 : i32, i32
  }
  func.func @transform_3(%arg0: i32) -> (i32, i32) {
    %c0_i32 = arith.constant 0 : i32
    %c0_i32_0 = arith.constant 0 : i32
    %c0_i32_1 = arith.constant 0 : i32
    return %c0_i32, %c0_i32_0 : i32, i32
  }
  func.func @transform_4(%arg0: i32) -> (i32, i32) {
    %c0_i32 = arith.constant 0 : i32
    %c0_i32_0 = arith.constant 0 : i32
    %c0_i32_1 = arith.constant 0 : i32
    return %c0_i32, %c0_i32_0 : i32, i32
  }
  func.func @transform_5(%arg0: i32) -> (i32, i32) {
    %c0_i32 = arith.constant 0 : i32
    %c0_i32_0 = arith.constant 0 : i32
    %c0_i32_1 = arith.constant 0 : i32
    return %c0_i32, %c0_i32_0 : i32, i32
  }
  func.func @transform_6(%arg0: i32) -> (i32, i32) {
    %c0_i32 = arith.constant 0 : i32
    %c0_i32_0 = arith.constant 0 : i32
    %c0_i32_1 = arith.constant 0 : i32
    return %c0_i32, %c0_i32_0 : i32, i32
  }
  func.func @transform_7(%arg0: i32) -> (i32, i32) {
    %c0_i32 = arith.constant 0 : i32
    %c0_i32_0 = arith.constant 0 : i32
    %c0_i32_1 = arith.constant 0 : i32
    return %c0_i32, %c0_i32_0 : i32, i32
  }
  func.func @transform_8(%arg0: i32) -> (i32, i32) {
    %c0_i32 = arith.constant 0 : i32
    %c0_i32_0 = arith.constant 0 : i32
    %c0_i32_1 = arith.constant 0 : i32
    return %c0_i32, %c0_i32_0 : i32, i32
  }
  func.func @transform_9(%arg0: i32) -> (i32, i32, i32) {
    %c0_i32 = arith.constant 0 : i32
    %c0_i32_0 = arith.constant 0 : i32
    %c0_i32_1 = arith.constant 0 : i32
    return %arg0, %c0_i32, %c0_i32_0 : i32, i32, i32
  }
}

</mosaic_0001>

<bundles_post_ra>
// kernel: lstm_anomaly_detector_forward.1
= control target key start
LH: loop header
LB: loop body
LE: loop exit
PB: predicated region body
PF: predicated region fallthrough
CT: control target
= control target key end

     0   :  { %14 = vsyncpa [#allocation5], 0  ;;  %s3756_s0 = inlined_call_operand.vmem [shape: bf16[1,64,32], index: 0, kind: input, shape index: {}]   ;;  %s3757_s1 = inlined_call_operand.hbm [shape: bf16[32,256], index: 1, kind: input, shape index: {}]   ;;  %s3758_s2 = inlined_call_operand.vmem [shape: f32[64,256], index: 2, kind: input, shape index: {}]   ;;  %s3759_s3 = inlined_call_operand.hbm [shape: f32[1,256], index: 3, kind: input, shape index: {}]   ;;  %s3760_s4 = inlined_call_operand.vmem [shape: bf16[128,256], index: 4, kind: input, shape index: {}]   ;;  %s3761_s5 = inlined_call_operand.hbm [shape: f32[64,256], index: 5, kind: input, shape index: {}]   ;;  %s3762_s6 = inlined_call_operand.hbm [shape: f32[1,256], index: 6, kind: input, shape index: {}]   ;;  %s3763_s7 = inlined_call_operand.vmem [shape: f32[128,4], index: 7, kind: input, shape index: {}]   ;;  %s3764_s8 = inlined_call_operand.vmem [shape: f32[1,4], index: 8, kind: input, shape index: {}]   ;;  %s3765_s9 = inlined_call_operand.hbm [shape: f32[1,2,4], index: 9, kind: output, shape index: {}]  }
   0x1   :  { %15 = vsyncpa [#allocation8], 0 }
   0x2   :  { %16 = vsyncpa [#allocation11], 0  ;;  %s40_s11 = sshll.u32 %s3759_s3, 4  ;;  %s41_s11 = int_to_ptr.hbm [resolvable:$true] %s40_s11 }
   0x3   :  { %17 = vsyncpa [#allocation6], 0  ;;  %s2808_s12 = smov [#allocation7]   ;;  %s24_s16 = sshll.u32 %s3757_s1, 4  ;;  %s25_s16 = int_to_ptr.hbm [resolvable:$true] %s24_s16 }
   0x4   :  { %s42_s13 = sshll.u32 %s2808_s12, 4  ;;  %s2809_s17 = smov [#allocation4]   ;;  %s43_s13 = int_to_ptr.vmem [resolvable:$true] %s42_s13 }
   0x5   :  { %45 = dma.hbm_to_vmem [thread:$0]  %s41_s11, 32, %s43_s13, [#allocation8]  }
   0x6   :  { %s26_s18 = sshll.u32 %s2809_s17, 4  ;;  %s2810_s19 = smov 128   ;;  %s27_s18 = int_to_ptr.vmem [resolvable:$true] %s26_s18 }
   0x7   :  { %s2811_s20 = smov 8   ;;  %s52_s3 = sshll.u32 %s3761_s5, 4  ;;  %s53_s3 = int_to_ptr.hbm [resolvable:$true] %s52_s3 }
   0x8   :  { %32 = dma.hbm_to_vmem [thread:$0]  %s25_s16, 512, %s27_s18, [#allocation5], %s2810_s19, %s2810_s19, %s2811_s20  }
   0x9   :  { %s2812_s23 = smov [#allocation9]   ;;  %s66_s1 = sshll.u32 %s3762_s6, 4  ;;  %s67_s1 = int_to_ptr.hbm [resolvable:$true] %s66_s1 }
   0xa   :  { %s54_s24 = sshll.u32 %s2812_s23, 4  ;;  %s2813_s27 = smov 256   ;;  %s55_s24 = int_to_ptr.vmem [resolvable:$true] %s54_s24 }
   0xb   :  { %s2814_s28 = smov 16   ;;  %s2815_s29 = smov [#allocation10]  }
   0xc   :  { %60 = dma.hbm_to_vmem [thread:$0]  %s53_s3, 2048, %s55_s24, [#allocation8], %s2813_s27, %s2813_s27, %s2814_s28  }
   0xd   :  { %s68_s30 = sshll.u32 %s2815_s29, 4  ;;  %s69_s30 = int_to_ptr.vmem [resolvable:$true] %s68_s30 }
   0xe   :  { %71 = dma.hbm_to_vmem [thread:$0]  %s67_s1, 32, %s69_s30, [#allocation11]  }
   0xf   :  { %2800 = dma.done.wait [#allocation5], 512  }
  0x10   :  { %2801 = vsyncadd [#allocation5], 4294966784 }
  0x11   :  { %2802 = dma.done.wait [#allocation8], 2080  }
  0x12   :  { %2803 = vsyncadd [#allocation8], 4294965216 }
  0x13   :  { %2804 = dma.done.wait [#allocation11], 32  }
  0x14   :  { %2805 = vsyncadd [#allocation11], 4294967264  ;;  %v2884_v0 = vld [vmem:[%s3758_s2 + $0x70] sm:$0xff]  ;;  %v2889_v1 = vld [vmem:[%s3758_s2 + $0x60] sm:$0xff]  ;;  %vm151_vm0 = vcmask 261120   ;;  %v2816_v22 = vmov 0.0  }
  0x15   :  { %271 = vmatpush.msra.mxu3 %v2884_v0  ;;  %384 = vmatpush.msra.mxu2 %v2884_v0  ;;  %v2896_v2 = vld [vmem:[%s3758_s2 + $0x50] sm:$0xff]  ;;  %v2459_v4 = vld [vmem:[#allocation4 + $0x14] sm:$0xf0]  ;;  %v2306_v6 = vld [vmem:[#allocation4] sm:$0xf]  ;;  %vm259_vm9 = vcmask 523264  }
  0x16   :  { %v2314_v3 = vld [vmem:[#allocation4 + $0x10] sm:$0xf]  ;;  %v2903_v7 = vld [vmem:[%s3758_s2 + $0x40] sm:$0xff]  ;;  %v2457_v8 = vld [vmem:[#allocation4 + $0x4] sm:$0xf0]  ;;  %s2269_s17 = sshll.u32 %s3765_s9, 4  ;;  %s2270_s17 = int_to_ptr.hbm [resolvable:$true] %s2269_s17 }
  0x17   :  { %272 = vmatpush.msra.mxu3 %v2889_v1  ;;  %v2315_v5 = vor.u32 %v2459_v4, %v2314_v3  ;;  %385 = vmatpush.msra.mxu2 %v2889_v1  ;;  %v2307_v9 = vor.u32 %v2457_v8, %v2306_v6  ;;  %v2458_v10 = vld [vmem:[#allocation4 + $0x14] sm:$0xf]  ;;  %v2316_v11 = vld [vmem:[#allocation4 + $0x18] sm:$0xf0]  ;;  %v2456_v14 = vld [vmem:[#allocation4 + $0x4] sm:$0xf] }
  0x18   :  { %v2909_v12 = vld [vmem:[%s3758_s2 + $0x30] sm:$0xff]  ;;  %v2319_v13 = vor.u32 %v2458_v10, %v2316_v11  ;;  %v2308_v15 = vld [vmem:[#allocation4 + $0x8] sm:$0xf0]  ;;  %v2916_v16 = vld [vmem:[%s3758_s2 + $0x20] sm:$0xff] }
  0x19   :  { %273 = vmatpush.msra.mxu3 %v2896_v2  ;;  %170 = vmatpush.bf16.msra.mxu0 %v2315_v5  ;;  %v2452_v17 = vld [vmem:[%s3756_s0] sm:$0xff]  ;;  %v2311_v18 = vor.u32 %v2456_v14, %v2308_v15  ;;  %v2926_v19 = vld [vmem:[%s3758_s2 + $0x10] sm:$0xff]  ;;  %v2941_v21 = vld [vmem:[%s3758_s2 + $0x78] sm:$0xff] }
  0x1a   :  { %386 = vmatpush.msra.mxu2 %v2896_v2  ;;  %199 = vmatpush.bf16.msra.mxu1 %v2319_v13  ;;  %v2934_v20 = vld [vmem:[%s3758_s2] sm:$0xff]  ;;  %v2952_v23 = vld [vmem:[%s3758_s2 + $0x68] sm:$0xff]  ;;  %v2960_v24 = vld [vmem:[%s3758_s2 + $0x58] sm:$0xff] }
  0x1b   :  { %274 = vmatpush.msra.mxu3 %v2903_v7  ;;  %v2969_v25 = vld [vmem:[%s3758_s2 + $0x48] sm:$0xff]  ;;  %v2978_v26 = vld [vmem:[%s3758_s2 + $0x38] sm:$0xff]  ;;  %v105_v30 = vld [vmem:[#allocation7] sm:$0x3] }
  0x1c   :  { %387 = vmatpush.msra.mxu2 %v2903_v7  ;;  %v2987_v27 = vld [vmem:[%s3758_s2 + $0x28] sm:$0xff]  ;;  %v2996_v28 = vld [vmem:[%s3758_s2 + $0x18] sm:$0xff]  ;;  %v3048_v32 = vperm.slane %v105_v30, 1  ;;  %v3052_v38 = vperm.slane %v105_v30, 0 }
  0x1d   :  { %275 = vmatpush.msra.mxu3 %v2909_v12  ;;  %171 = vmatpush.bf16.msra.mxu0 %v2307_v9  ;;  %v3005_v29 = vld [vmem:[%s3758_s2 + $0x8] sm:$0xff]  ;;  %s2817_s2 = smov 64  }
  0x1e   :  { %388 = vmatpush.msra.mxu2 %v2909_v12  ;;  %200 = vmatpush.bf16.msra.mxu1 %v2311_v18 }
  0x1f   :  { %276 = vmatpush.msra.mxu3 %v2916_v16 }
  0x20   :  { %2320 = vmatmul.msk.bf16.vlgmr.msra.gmra.mxu0 %vm151_vm0, %v2452_v17  ;;  %389 = vmatpush.msra.mxu2 %v2916_v16 }
  0x21   :  { %723 = vmatpush.msrb.mxu0 %v2884_v0  ;;  %277 = vmatpush.msra.mxu3 %v2926_v19 }
  0x22   :  { %743 = vmatpush.msrb.mxu1 %v2941_v21  ;;  %390 = vmatpush.msra.mxu2 %v2926_v19 }
  0x23   :  { %724 = vmatpush.msrb.mxu0 %v2889_v1  ;;  %278 = vmatpush.msra.mxu3 %v2934_v20 }
  0x24   :  { %2324 = vmatmul.msk.bf16.vlgmr.msra.gmra.mxu1 %vm151_vm0, %v2452_v17  ;;  %279 = vmatmul.f32.vlgmr.msra.gmra.mxu3 %v2816_v22 }
  0x25   :  { %291 = vmatpush.msrb.mxu3 %v2941_v21  ;;  %744 = vmatpush.msrb.mxu1 %v2952_v23 }
  0x26   :  { %391 = vmatpush.msra.mxu2 %v2934_v20  ;;  %725 = vmatpush.msrb.mxu0 %v2896_v2 }
  0x27   :  { %292 = vmatpush.msrb.mxu3 %v2952_v23  ;;  %745 = vmatpush.msrb.mxu1 %v2960_v24 }
  0x28   :  { %497 = vmatpush.msrb.mxu2 %v2884_v0  ;;  %726 = vmatpush.msrb.mxu0 %v2903_v7 }
  0x29   :  { %293 = vmatpush.msrb.mxu3 %v2960_v24  ;;  %746 = vmatpush.msrb.mxu1 %v2969_v25 }
  0x2a   :  { %498 = vmatpush.msrb.mxu2 %v2889_v1  ;;  %727 = vmatpush.msrb.mxu0 %v2909_v12 }
  0x2b   :  { %294 = vmatpush.msrb.mxu3 %v2969_v25  ;;  %747 = vmatpush.msrb.mxu1 %v2978_v26 }
  0x2c   :  { %499 = vmatpush.msrb.mxu2 %v2896_v2  ;;  %728 = vmatpush.msrb.mxu0 %v2916_v16 }
  0x2d   :  { %295 = vmatpush.msrb.mxu3 %v2978_v26  ;;  %748 = vmatpush.msrb.mxu1 %v2987_v27 }
  0x2e   :  { %500 = vmatpush.msrb.mxu2 %v2903_v7  ;;  %729 = vmatpush.msrb.mxu0 %v2926_v19 }
  0x2f   :  { %296 = vmatpush.msrb.mxu3 %v2987_v27  ;;  %749 = vmatpush.msrb.mxu1 %v2996_v28 }
  0x30   :  { %501 = vmatpush.msrb.mxu2 %v2909_v12  ;;  %730 = vmatpush.msrb.mxu0 %v2934_v20 }
  0x31   :  { %297 = vmatpush.msrb.mxu3 %v2996_v28  ;;  %750 = vmatpush.msrb.mxu1 %v3005_v29 }
  0x32   :  { %502 = vmatpush.msrb.mxu2 %v2916_v16  ;;  %945 = vmatpush.msra.mxu0 %v2884_v0 }
  0x33   :  { %298 = vmatpush.msrb.mxu3 %v3005_v29  ;;  %965 = vmatpush.msra.mxu1 %v2941_v21 }
  0x34   :  { %503 = vmatpush.msrb.mxu2 %v2926_v19  ;;  %299 = vmatmul.f32.vlgmr.msrb.gmra.mxu3 %v2816_v22 }
  0x35   :  { %404 = vmatpush.msra.mxu3 %v2941_v21  ;;  %946 = vmatpush.msra.mxu0 %v2889_v1 }
  0x36   :  { %504 = vmatpush.msrb.mxu2 %v2934_v20  ;;  %966 = vmatpush.msra.mxu1 %v2952_v23 }
  0x37   :  { %405 = vmatpush.msra.mxu3 %v2952_v23  ;;  %947 = vmatpush.msra.mxu0 %v2896_v2 }
  0x38   :  { %967 = vmatpush.msra.mxu1 %v2960_v24 }
  0x39   :  { %406 = vmatpush.msra.mxu3 %v2960_v24  ;;  %948 = vmatpush.msra.mxu0 %v2903_v7 }
  0x3a   :  { %968 = vmatpush.msra.mxu1 %v2969_v25 }
  0x3b   :  { %407 = vmatpush.msra.mxu3 %v2969_v25  ;;  %949 = vmatpush.msra.mxu0 %v2909_v12 }
  0x3c   :  { %969 = vmatpush.msra.mxu1 %v2978_v26 }
  0x3d   :  { %408 = vmatpush.msra.mxu3 %v2978_v26  ;;  %950 = vmatpush.msra.mxu0 %v2916_v16 }
  0x3e   :  { %970 = vmatpush.msra.mxu1 %v2987_v27 }
  0x3f   :  { %409 = vmatpush.msra.mxu3 %v2987_v27  ;;  %951 = vmatpush.msra.mxu0 %v2926_v19 }
  0x40   :  { %971 = vmatpush.msra.mxu1 %v2996_v28 }
  0x41   :  { %410 = vmatpush.msra.mxu3 %v2996_v28  ;;  %952 = vmatpush.msra.mxu0 %v2934_v20 }
  0x42   :  { %972 = vmatpush.msra.mxu1 %v3005_v29 }
  0x43   :  { %411 = vmatpush.msra.mxu3 %v3005_v29 }
  0x45   :  { %517 = vmatpush.msrb.mxu3 %v2941_v21 }
  0x47   :  { %518 = vmatpush.msrb.mxu3 %v2952_v23 }
  0x49   :  { %519 = vmatpush.msrb.mxu3 %v2960_v24 }
  0x4b   :  { %520 = vmatpush.msrb.mxu3 %v2969_v25 }
  0x4d   :  { %521 = vmatpush.msrb.mxu3 %v2978_v26 }
  0x4f   :  { %522 = vmatpush.msrb.mxu3 %v2987_v27 }
  0x51   :  { %523 = vmatpush.msrb.mxu3 %v2996_v28 }
  0x53   :  { %524 = vmatpush.msrb.mxu3 %v3005_v29 }
  0x9d   :  { %v173_v39 = vpop.f32.mrf.mxu0 }
  0x9e   :  { %v174_v40 = vadd.f32 %v173_v39, %v3052_v38 }
  0xa1   :  { %v202_v33 = vpop.f32.mrf.mxu1 }
  0xa2   :  { %v203_v34 = vadd.f32 %v202_v33, %v3048_v32 }
  0xa7   :  { %v280_v31 = vpop.f32.mrf.mxu3 }
  0xa8   :  { %v303_v41 = vadd.f32 %v280_v31, %v174_v40 }
  0xa9   :  { %v204_v18 = vpop.f32.mrf.mxu1 }
  0xaa   :  { %v2328_v42 = vmul.f32 -1.442695, %v303_v41  ;;  %v205_v30 = vadd.f32 %v204_v18, %v3048_v32 }
  0xb7   :  { %v300_v35 = vpop.f32.mrf.mxu3 }
  0xb8   :  { %v304_v36 = vadd.f32 %v300_v35, %v203_v34  ;;  %v175_v35 = vpop.f32.mrf.mxu0 }
  0xba   :  { %2488 = vtanh.f32 %v304_v36  ;;  %v2329_v61 = vmul.f32 -1.442695, %v304_v36 }
  0xbb   :  { %2490 = vpow2.f32 %v2328_v42 }
  0xc0   :  { %v2489_v37 = vpop.eup %2488 }
  0xc1   :  { %346 = vrot.lane.b32.xlu0 %v2489_v37, %s2817_s2  ;;  %v2491_v43 = vpop.eup %2490  ;;  %v176_v37 = vadd.f32 %v175_v35, %v3052_v38 }
  0xc2   :  { %v311_v44 = vadd.f32 1.0, %v2491_v43 }
  0xc4   :  { %2492 = vrcp.f32 %v311_v44  ;;  %vm318_vm1 = vweird.f32 %v311_v44  ;;  %v324_v50 = vand.u32 2147483648, %v311_v44  ;;  %v322_v51 = vand.u32 2147483647, %v311_v44 }
  0xc6   :  { %v325_v53 = vor.u32 1.1754944e-38, %v324_v50  ;;  %vm323_vm4 = vcmp.eq.f32.partialorder %v322_v51, 8.507059e+37 }
  0xca   :  { %v2493_v45 = vpop.eup %2492 }
  0xcb   :  { %v314_v46 = vmul.f32 %v2493_v45, %v311_v44  ;;  %vm319_vm2 = vweird.f32 %v2493_v45 }
  0xcc   :  { %vm320_vm3 = vmor %vm318_vm1, %vm319_vm2 }
  0xcd   :  { %v315_v47 = vsub.f32 1.0, %v314_v46 }
  0xcf   :  { %v316_v48 = vmul.f32 %v2493_v45, %v315_v47 }
  0xd1   :  { %v317_v49 = vadd.f32 %v2493_v45, %v316_v48 }
  0xd3   :  { %v321_v52 = vsel %vm320_vm3, %v2493_v45, %v317_v49 }
  0xd4   :  { %v326_v55 = vsel %vm323_vm4, %v325_v53, %v321_v52 }
  0xd5   :  { %v344_v57 = vmul.f32 0.0, %v326_v55 }
 0x133   :  { %v347_v54 = vpop.permute.xlu0 %346 }
 0x134   :  { %v349_v56 = vmul.f32 %v347_v54, %v326_v55  ;;  %v2453_v55 = vld [vmem:[%s3756_s0 + $0x8] sm:$0xff] }
 0x135   :  { %2325 = vmatmul.msk.bf16.gmra.mxu1 %vm151_vm0, %v2453_v55  ;;  %2321 = vmatmul.msk.bf16.gmra.mxu0 %vm151_vm0, %v2453_v55 }
 0x136   :  { %351 = vrot.lane.b32.xlu0 %v349_v56, %s2817_s2 }
 0x1a8   :  { %v352_v58 = vpop.permute.xlu0 %351 }
 0x1a9   :  { %v3056_v59 = vadd.f32 %v352_v58, %v344_v57 }
 0x1ab   :  { %2494 = vtanh.f32 %v3056_v59 }
 0x1ac   :  { %2496 = vpow2.f32 %v2329_v61 }
 0x1b1   :  { %v2495_v60 = vpop.eup %2494 }
 0x1b2   :  { %357 = vrot.lane.b32.xlu1 %v2495_v60, %s2817_s2  ;;  %v2497_v62 = vpop.eup %2496  ;;  %v207_v18 = vpop.f32.mrf.mxu1 }
 0x1b3   :  { %v312_v63 = vadd.f32 1.0, %v2497_v62  ;;  %v178_v35 = vpop.f32.mrf.mxu0 }
 0x1b5   :  { %2498 = vrcp.f32 %v312_v63  ;;  %v339_v9 = vand.u32 2147483648, %v312_v63  ;;  %vm333_vm6 = vweird.f32 %v312_v63  ;;  %v337_v10 = vand.u32 2147483647, %v312_v63 }
 0x1b7   :  { %v340_v13 = vor.u32 1.1754944e-38, %v339_v9  ;;  %vm338_vm8 = vcmp.eq.f32.partialorder %v337_v10, 8.507059e+37 }
 0x1bb   :  { %v2499_v3 = vpop.eup %2498 }
 0x1bc   :  { %v329_v4 = vmul.f32 %v2499_v3, %v312_v63  ;;  %vm334_vm5 = vweird.f32 %v2499_v3 }
 0x1bd   :  { %vm335_vm7 = vmor %vm333_vm6, %vm334_vm5 }
 0x1be   :  { %v330_v5 = vsub.f32 1.0, %v329_v4 }
 0x1c0   :  { %v331_v6 = vmul.f32 %v2499_v3, %v330_v5 }
 0x1c2   :  { %v332_v8 = vadd.f32 %v2499_v3, %v331_v6 }
 0x1c4   :  { %v336_v11 = vsel %vm335_vm7, %v2499_v3, %v332_v8 }
 0x1c5   :  { %v341_v14 = vsel %vm338_vm8, %v340_v13, %v336_v11 }
 0x224   :  { %v358_v15 = vpop.permute.xlu1 %357 }
 0x225   :  { %v3060_v17 = vmul.f32 %v358_v15, %v341_v14 }
 0x227   :  { %2330 = vmatmul.msk.f32.vlgmr.msra.gmra.mxu2 %vm259_vm9, %v3060_v17  ;;  %361 = vst.msk [vmem:[#allocation3] sm:$0xff] %vm259_vm9, %v3060_v17  ;;  %2331 = vmatmul.msk.f32.vlgmr.msra.gmra.mxu3 %vm259_vm9, %v3060_v17 }
 0x228   :  { %610 = vmatpush.msra.mxu2 %v2884_v0  ;;  %630 = vmatpush.msra.mxu3 %v2941_v21 }
 0x22a   :  { %611 = vmatpush.msra.mxu2 %v2889_v1  ;;  %631 = vmatpush.msra.mxu3 %v2952_v23 }
 0x22c   :  { %612 = vmatpush.msra.mxu2 %v2896_v2  ;;  %632 = vmatpush.msra.mxu3 %v2960_v24 }
 0x22e   :  { %613 = vmatpush.msra.mxu2 %v2903_v7  ;;  %633 = vmatpush.msra.mxu3 %v2969_v25 }
 0x230   :  { %614 = vmatpush.msra.mxu2 %v2909_v12  ;;  %634 = vmatpush.msra.mxu3 %v2978_v26 }
 0x232   :  { %615 = vmatpush.msra.mxu2 %v2916_v16  ;;  %635 = vmatpush.msra.mxu3 %v2987_v27 }
 0x234   :  { %616 = vmatpush.msra.mxu2 %v2926_v19  ;;  %636 = vmatpush.msra.mxu3 %v2996_v28 }
 0x236   :  { %617 = vmatpush.msra.mxu2 %v2934_v20  ;;  %637 = vmatpush.msra.mxu3 %v3005_v29 }
 0x2aa   :  { %v413_v31 = vpop.f32.mrf.mxu3  ;;  %v393_v36 = vpop.f32.mrf.mxu2 }
 0x2ab   :  { %v417_v33 = vadd.f32 %v413_v31, %v205_v30  ;;  %v416_v39 = vadd.f32 %v393_v36, %v176_v37  ;;  %v208_v30 = vadd.f32 %v207_v18, %v3048_v32  ;;  %v179_v36 = vadd.f32 %v178_v35, %v3052_v38 }
 0x2ad   :  { %2500 = vtanh.f32 %v417_v33  ;;  %v2332_v40 = vmul.f32 -1.442695, %v416_v39  ;;  %v2333_v61 = vmul.f32 -1.442695, %v417_v33 }
 0x2af   :  { %2502 = vpow2.f32 %v2332_v40 }
 0x2b3   :  { %v2501_v34 = vpop.eup %2500 }
 0x2b4   :  { %459 = vrot.lane.b32.xlu1 %v2501_v34, %s2817_s2 }
 0x2b5   :  { %v2503_v41 = vpop.eup %2502 }
 0x2b6   :  { %v424_v42 = vadd.f32 1.0, %v2503_v41 }
 0x2b8   :  { %2504 = vrcp.f32 %v424_v42  ;;  %v437_v48 = vand.u32 2147483648, %v424_v42  ;;  %vm431_vm11 = vweird.f32 %v424_v42  ;;  %v435_v49 = vand.u32 2147483647, %v424_v42 }
 0x2ba   :  { %v438_v51 = vor.u32 1.1754944e-38, %v437_v48  ;;  %vm436_vm13 = vcmp.eq.f32.partialorder %v435_v49, 8.507059e+37 }
 0x2be   :  { %v2505_v43 = vpop.eup %2504 }
 0x2bf   :  { %v427_v44 = vmul.f32 %v2505_v43, %v424_v42  ;;  %vm432_vm10 = vweird.f32 %v2505_v43 }
 0x2c0   :  { %vm433_vm12 = vmor %vm431_vm11, %vm432_vm10 }
 0x2c1   :  { %v428_v45 = vsub.f32 1.0, %v427_v44 }
 0x2c3   :  { %v429_v46 = vmul.f32 %v2505_v43, %v428_v45 }
 0x2c5   :  { %v430_v47 = vadd.f32 %v2505_v43, %v429_v46 }
 0x2c7   :  { %v434_v50 = vsel %vm433_vm12, %v2505_v43, %v430_v47 }
 0x2c8   :  { %v439_v53 = vsel %vm436_vm13, %v438_v51, %v434_v50 }
 0x2c9   :  { %v457_v56 = vmul.f32 %v439_v53, %v3056_v59 }
 0x326   :  { %v460_v52 = vpop.permute.xlu1 %459 }
 0x327   :  { %v462_v54 = vmul.f32 %v460_v52, %v439_v53 }
 0x329   :  { %464 = vrot.lane.b32.xlu2 %v462_v54, %s2817_s2 }
 0x383   :  { %v465_v57 = vpop.permute.xlu2 %464 }
 0x384   :  { %v3094_v58 = vadd.f32 %v465_v57, %v457_v56 }
 0x386   :  { %2506 = vtanh.f32 %v3094_v58 }
 0x387   :  { %2508 = vpow2.f32 %v2333_v61 }
 0x38c   :  { %v2507_v60 = vpop.eup %2506 }
 0x38d   :  { %470 = vrot.lane.b32.xlu2 %v2507_v60, %s2817_s2  ;;  %v2509_v62 = vpop.eup %2508 }
 0x38e   :  { %v425_v63 = vadd.f32 1.0, %v2509_v62 }
 0x390   :  { %2510 = vrcp.f32 %v425_v63  ;;  %v452_v59 = vand.u32 2147483648, %v425_v63  ;;  %vm446_vm15 = vweird.f32 %v425_v63  ;;  %v450_v9 = vand.u32 2147483647, %v425_v63 }
 0x392   :  { %v453_v11 = vor.u32 1.1754944e-38, %v452_v59  ;;  %vm451_vm2 = vcmp.eq.f32.partialorder %v450_v9, 8.507059e+37 }
 0x396   :  { %v2511_v3 = vpop.eup %2510 }
 0x397   :  { %v442_v4 = vmul.f32 %v2511_v3, %v425_v63  ;;  %vm447_vm14 = vweird.f32 %v2511_v3 }
 0x398   :  { %vm448_vm1 = vmor %vm446_vm15, %vm447_vm14 }
 0x399   :  { %v443_v5 = vsub.f32 1.0, %v442_v4 }
 0x39b   :  { %v444_v6 = vmul.f32 %v2511_v3, %v443_v5 }
 0x39d   :  { %v445_v8 = vadd.f32 %v2511_v3, %v444_v6 }
 0x39f   :  { %v449_v10 = vsel %vm448_vm1, %v2511_v3, %v445_v8 }
 0x3a0   :  { %v454_v13 = vsel %vm451_vm2, %v453_v11, %v449_v10 }
 0x3e7   :  { %v471_v14 = vpop.permute.xlu2 %470 }
 0x3e8   :  { %v3098_v15 = vmul.f32 %v471_v14, %v454_v13 }
 0x3ea   :  { %475 = vst.msk [vmem:[#allocation3 + $0x8] sm:$0xff] %vm259_vm9, %v3098_v15  ;;  %2334 = vmatmul.msk.f32.vlgmr.msrb.gmra.mxu2 %vm259_vm9, %v3098_v15  ;;  %2335 = vmatmul.msk.f32.vlgmr.msrb.gmra.mxu3 %vm259_vm9, %v3098_v15 }
 0x3eb   :  { %834 = vmatpush.msrb.mxu2 %v2884_v0  ;;  %854 = vmatpush.msrb.mxu3 %v2941_v21 }
 0x3ed   :  { %835 = vmatpush.msrb.mxu2 %v2889_v1  ;;  %855 = vmatpush.msrb.mxu3 %v2952_v23 }
 0x3ef   :  { %836 = vmatpush.msrb.mxu2 %v2896_v2  ;;  %856 = vmatpush.msrb.mxu3 %v2960_v24 }
 0x3f1   :  { %837 = vmatpush.msrb.mxu2 %v2903_v7  ;;  %857 = vmatpush.msrb.mxu3 %v2969_v25 }
 0x3f3   :  { %838 = vmatpush.msrb.mxu2 %v2909_v12  ;;  %858 = vmatpush.msrb.mxu3 %v2978_v26 }
 0x3f5   :  { %839 = vmatpush.msrb.mxu2 %v2916_v16  ;;  %859 = vmatpush.msrb.mxu3 %v2987_v27 }
 0x3f7   :  { %840 = vmatpush.msrb.mxu2 %v2926_v19  ;;  %860 = vmatpush.msrb.mxu3 %v2996_v28 }
 0x3f9   :  { %841 = vmatpush.msrb.mxu2 %v2934_v20  ;;  %861 = vmatpush.msrb.mxu3 %v3005_v29 }
 0x46d   :  { %v526_v31 = vpop.f32.mrf.mxu3  ;;  %v506_v37 = vpop.f32.mrf.mxu2 }
 0x46e   :  { %v530_v33 = vadd.f32 %v526_v31, %v208_v30  ;;  %v529_v39 = vadd.f32 %v506_v37, %v179_v36 }
 0x470   :  { %2512 = vtanh.f32 %v530_v33  ;;  %v2336_v40 = vmul.f32 -1.442695, %v529_v39  ;;  %v2337_v61 = vmul.f32 -1.442695, %v530_v33  ;;  %v2454_v39 = vld [vmem:[%s3756_s0 + $0x10] sm:$0xff] }
 0x471   :  { %2326 = vmatmul.msk.bf16.gmra.mxu1 %vm151_vm0, %v2454_v39  ;;  %2322 = vmatmul.msk.bf16.gmra.mxu0 %vm151_vm0, %v2454_v39 }
 0x472   :  { %2514 = vpow2.f32 %v2336_v40  ;;  %v2455_v40 = vld [vmem:[%s3756_s0 + $0x18] sm:$0xff] }
 0x476   :  { %v2513_v34 = vpop.eup %2512 }
 0x477   :  { %572 = vrot.lane.b32.xlu0 %v2513_v34, %s2817_s2 }
 0x478   :  { %v2515_v41 = vpop.eup %2514 }
 0x479   :  { %v537_v42 = vadd.f32 1.0, %v2515_v41 }
 0x47b   :  { %2516 = vrcp.f32 %v537_v42  ;;  %v550_v48 = vand.u32 2147483648, %v537_v42  ;;  %vm544_vm4 = vweird.f32 %v537_v42  ;;  %v548_v49 = vand.u32 2147483647, %v537_v42 }
 0x47d   :  { %v551_v51 = vor.u32 1.1754944e-38, %v550_v48  ;;  %vm549_vm6 = vcmp.eq.f32.partialorder %v548_v49, 8.507059e+37 }
 0x481   :  { %v2517_v43 = vpop.eup %2516  ;;  %2327 = vmatmul.msk.bf16.gmra.mxu1 %vm151_vm0, %v2455_v40  ;;  %2323 = vmatmul.msk.bf16.gmra.mxu0 %vm151_vm0, %v2455_v40 }
 0x482   :  { %v540_v44 = vmul.f32 %v2517_v43, %v537_v42  ;;  %vm545_vm3 = vweird.f32 %v2517_v43 }
 0x483   :  { %vm546_vm5 = vmor %vm544_vm4, %vm545_vm3 }
 0x484   :  { %v541_v45 = vsub.f32 1.0, %v540_v44 }
 0x486   :  { %v542_v46 = vmul.f32 %v2517_v43, %v541_v45 }
 0x488   :  { %v543_v47 = vadd.f32 %v2517_v43, %v542_v46 }
 0x48a   :  { %v547_v50 = vsel %vm546_vm5, %v2517_v43, %v543_v47 }
 0x48b   :  { %v552_v53 = vsel %vm549_vm6, %v551_v51, %v547_v50 }
 0x48c   :  { %v570_v55 = vmul.f32 %v552_v53, %v3094_v58 }
 0x4e9   :  { %v573_v52 = vpop.permute.xlu0 %572 }
 0x4ea   :  { %v575_v54 = vmul.f32 %v573_v52, %v552_v53 }
 0x4ec   :  { %577 = vrot.lane.b32.xlu1 %v575_v54, %s2817_s2 }
 0x55e   :  { %v578_v56 = vpop.permute.xlu1 %577 }
 0x55f   :  { %v3127_v57 = vadd.f32 %v578_v56, %v570_v55 }
 0x561   :  { %2518 = vtanh.f32 %v3127_v57 }
 0x562   :  { %2520 = vpow2.f32 %v2337_v61 }
 0x567   :  { %v2519_v60 = vpop.eup %2518 }
 0x568   :  { %583 = vrot.lane.b32.xlu2 %v2519_v60, %s2817_s2  ;;  %v2521_v62 = vpop.eup %2520 }
 0x569   :  { %v538_v63 = vadd.f32 1.0, %v2521_v62 }
 0x56b   :  { %2522 = vrcp.f32 %v538_v63  ;;  %v565_v58 = vand.u32 2147483648, %v538_v63  ;;  %vm559_vm8 = vweird.f32 %v538_v63  ;;  %v563_v59 = vand.u32 2147483647, %v538_v63 }
 0x56d   :  { %v566_v10 = vor.u32 1.1754944e-38, %v565_v58  ;;  %vm564_vm11 = vcmp.eq.f32.partialorder %v563_v59, 8.507059e+37 }
 0x571   :  { %v2523_v3 = vpop.eup %2522 }
 0x572   :  { %v555_v4 = vmul.f32 %v2523_v3, %v538_v63  ;;  %vm560_vm7 = vweird.f32 %v2523_v3 }
 0x573   :  { %vm561_vm10 = vmor %vm559_vm8, %vm560_vm7 }
 0x574   :  { %v556_v5 = vsub.f32 1.0, %v555_v4 }
 0x576   :  { %v557_v6 = vmul.f32 %v2523_v3, %v556_v5 }
 0x578   :  { %v558_v8 = vadd.f32 %v2523_v3, %v557_v6 }
 0x57a   :  { %v562_v9 = vsel %vm561_vm10, %v2523_v3, %v558_v8 }
 0x57b   :  { %v567_v11 = vsel %vm564_vm11, %v566_v10, %v562_v9 }
 0x5c2   :  { %v584_v13 = vpop.permute.xlu2 %583 }
 0x5c3   :  { %v3131_v14 = vmul.f32 %v584_v13, %v567_v11 }
 0x5c5   :  { %588 = vst.msk [vmem:[#allocation3 + $0x10] sm:$0xff] %vm259_vm9, %v3131_v14  ;;  %2338 = vmatmul.msk.f32.vlgmr.msra.gmra.mxu2 %vm259_vm9, %v3131_v14  ;;  %2339 = vmatmul.msk.f32.vlgmr.msra.gmra.mxu3 %vm259_vm9, %v3131_v14 }
 0x5c6   :  { %1056 = vmatpush.msra.mxu2 %v2884_v0  ;;  %1076 = vmatpush.msra.mxu3 %v2941_v21  ;;  %v209_v0 = vpop.f32.mrf.mxu1 }
 0x5c8   :  { %1057 = vmatpush.msra.mxu2 %v2889_v1  ;;  %1077 = vmatpush.msra.mxu3 %v2952_v23  ;;  %v210_v1 = vadd.f32 %v209_v0, %v3048_v32 }
 0x5ca   :  { %1058 = vmatpush.msra.mxu2 %v2896_v2  ;;  %1078 = vmatpush.msra.mxu3 %v2960_v24 }
 0x5cc   :  { %1059 = vmatpush.msra.mxu2 %v2903_v7  ;;  %1079 = vmatpush.msra.mxu3 %v2969_v25 }
 0x5ce   :  { %1060 = vmatpush.msra.mxu2 %v2909_v12  ;;  %1080 = vmatpush.msra.mxu3 %v2978_v26  ;;  %v212_v62 = vpop.f32.mrf.mxu1 }
 0x5cf   :  { %v213_v5 = vadd.f32 %v212_v62, %v3048_v32 }
 0x5d0   :  { %1061 = vmatpush.msra.mxu2 %v2916_v16  ;;  %1081 = vmatpush.msra.mxu3 %v2987_v27  ;;  %v180_v16 = vpop.f32.mrf.mxu0 }
 0x5d1   :  { %v181_v23 = vadd.f32 %v180_v16, %v3052_v38 }
 0x5d2   :  { %1062 = vmatpush.msra.mxu2 %v2926_v19  ;;  %1082 = vmatpush.msra.mxu3 %v2996_v28 }
 0x5d4   :  { %1063 = vmatpush.msra.mxu2 %v2934_v20  ;;  %1083 = vmatpush.msra.mxu3 %v3005_v29 }
 0x5d6   :  { %v3182_v63 = vpop.f32.mrf.mxu1 }
 0x5d8   :  { %v183_v59 = vpop.f32.mrf.mxu0 }
 0x5d9   :  { %v184_v13 = vadd.f32 %v183_v59, %v3052_v38 }
 0x5de   :  { %v3184_v3 = vpop.f32.mrf.mxu1 }
 0x5e0   :  { %v3190_v9 = vpop.f32.mrf.mxu0 }
 0x5e6   :  { %v3186_v4 = vpop.f32.mrf.mxu1 }
 0x5e8   :  { %v3192_v10 = vpop.f32.mrf.mxu0 }
 0x5f0   :  { %v3194_v11 = vpop.f32.mrf.mxu0 }
 0x648   :  { %v639_v2 = vpop.f32.mrf.mxu3  ;;  %v619_v21 = vpop.f32.mrf.mxu2 }
 0x649   :  { %v643_v7 = vadd.f32 %v639_v2, %v210_v1  ;;  %v642_v19 = vadd.f32 %v619_v21, %v181_v23 }
 0x64b   :  { %2524 = vtanh.f32 %v643_v7  ;;  %v2340_v24 = vmul.f32 -1.442695, %v642_v19  ;;  %v2341_v45 = vmul.f32 -1.442695, %v643_v7 }
 0x64d   :  { %2526 = vpow2.f32 %v2340_v24 }
 0x651   :  { %v2525_v12 = vpop.eup %2524 }
 0x652   :  { %685 = vrot.lane.b32.xlu0 %v2525_v12, %s2817_s2 }
 0x653   :  { %v2527_v25 = vpop.eup %2526 }
 0x654   :  { %v650_v20 = vadd.f32 1.0, %v2527_v25 }
 0x656   :  { %2528 = vrcp.f32 %v650_v20  ;;  %v663_v30 = vand.u32 2147483648, %v650_v20  ;;  %vm657_vm13 = vweird.f32 %v650_v20  ;;  %v661_v31 = vand.u32 2147483647, %v650_v20 }
 0x658   :  { %v664_v34 = vor.u32 1.1754944e-38, %v663_v30  ;;  %vm662_vm15 = vcmp.eq.f32.partialorder %v661_v31, 8.507059e+37 }
 0x65c   :  { %v2529_v26 = vpop.eup %2528 }
 0x65d   :  { %v653_v27 = vmul.f32 %v2529_v26, %v650_v20  ;;  %vm658_vm12 = vweird.f32 %v2529_v26 }
 0x65e   :  { %vm659_vm14 = vmor %vm657_vm13, %vm658_vm12 }
 0x65f   :  { %v654_v28 = vsub.f32 1.0, %v653_v27 }
 0x661   :  { %v655_v29 = vmul.f32 %v2529_v26, %v654_v28 }
 0x663   :  { %v656_v18 = vadd.f32 %v2529_v26, %v655_v29 }
 0x665   :  { %v660_v33 = vsel %vm659_vm14, %v2529_v26, %v656_v18 }
 0x666   :  { %v665_v36 = vsel %vm662_vm15, %v664_v34, %v660_v33 }
 0x667   :  { %v683_v41 = vmul.f32 %v665_v36, %v3127_v57 }
 0x6c4   :  { %v686_v35 = vpop.permute.xlu0 %685 }
 0x6c5   :  { %v688_v37 = vmul.f32 %v686_v35, %v665_v36 }
 0x6c7   :  { %690 = vrot.lane.b32.xlu1 %v688_v37, %s2817_s2 }
 0x739   :  { %v691_v42 = vpop.permute.xlu1 %690 }
 0x73a   :  { %v3170_v43 = vadd.f32 %v691_v42, %v683_v41 }
 0x73c   :  { %2530 = vtanh.f32 %v3170_v43 }
 0x73d   :  { %2532 = vpow2.f32 %v2341_v45 }
 0x742   :  { %v2531_v44 = vpop.eup %2530 }
 0x743   :  { %696 = vrot.lane.b32.xlu2 %v2531_v44, %s2817_s2  ;;  %v2533_v46 = vpop.eup %2532 }
 0x744   :  { %v651_v47 = vadd.f32 1.0, %v2533_v46 }
 0x746   :  { %2534 = vrcp.f32 %v651_v47  ;;  %v678_v53 = vand.u32 2147483648, %v651_v47  ;;  %vm672_vm1 = vweird.f32 %v651_v47  ;;  %v676_v54 = vand.u32 2147483647, %v651_v47 }
 0x748   :  { %v679_v56 = vor.u32 1.1754944e-38, %v678_v53  ;;  %vm677_vm3 = vcmp.eq.f32.partialorder %v676_v54, 8.507059e+37 }
 0x74c   :  { %v2535_v48 = vpop.eup %2534 }
 0x74d   :  { %v668_v49 = vmul.f32 %v2535_v48, %v651_v47  ;;  %vm673_vm0 = vweird.f32 %v2535_v48 }
 0x74e   :  { %vm674_vm2 = vmor %vm672_vm1, %vm673_vm0 }
 0x74f   :  { %v669_v50 = vsub.f32 1.0, %v668_v49 }
 0x751   :  { %v670_v51 = vmul.f32 %v2535_v48, %v669_v50 }
 0x753   :  { %v671_v52 = vadd.f32 %v2535_v48, %v670_v51  ;;  %v215_v51 = vadd.f32 %v3182_v63, %v3048_v32 }
 0x755   :  { %v675_v55 = vsel %vm674_vm2, %v2535_v48, %v671_v52 }
 0x756   :  { %v680_v57 = vsel %vm677_vm3, %v679_v56, %v675_v55  ;;  %v186_v56 = vadd.f32 %v3190_v9, %v3052_v38 }
 0x79d   :  { %v697_v60 = vpop.permute.xlu2 %696 }
 0x79e   :  { %v3174_v61 = vmul.f32 %v697_v60, %v680_v57 }
 0x7a0   :  { %701 = vst.msk [vmem:[#allocation3 + $0x18] sm:$0xff] %vm259_vm9, %v3174_v61  ;;  %2342 = vmatmul.msk.f32.vlgmr.msrb.gmra.mxu0 %vm259_vm9, %v3174_v61  ;;  %2343 = vmatmul.msk.f32.vlgmr.msrb.gmra.mxu1 %vm259_vm9, %v3174_v61 }
 0x81d   :  { %v752_v6 = vpop.f32.mrf.mxu1  ;;  %v732_v0 = vpop.f32.mrf.mxu0 }
 0x81e   :  { %v756_v8 = vadd.f32 %v752_v6, %v213_v5  ;;  %v755_v1 = vadd.f32 %v732_v0, %v184_v13 }
 0x820   :  { %2536 = vtanh.f32 %v756_v8  ;;  %v2344_v2 = vmul.f32 -1.442695, %v755_v1  ;;  %v2345_v35 = vmul.f32 -1.442695, %v756_v8 }
 0x822   :  { %2538 = vpow2.f32 %v2344_v2 }
 0x826   :  { %v2537_v58 = vpop.eup %2536 }
 0x827   :  { %798 = vrot.lane.b32.xlu0 %v2537_v58, %s2817_s2 }
 0x828   :  { %v2539_v7 = vpop.eup %2538 }
 0x829   :  { %v763_v12 = vadd.f32 1.0, %v2539_v7 }
 0x82b   :  { %2540 = vrcp.f32 %v763_v12  ;;  %v776_v25 = vand.u32 2147483648, %v763_v12  ;;  %vm770_vm5 = vweird.f32 %v763_v12  ;;  %v774_v20 = vand.u32 2147483647, %v763_v12 }
 0x82d   :  { %v777_v27 = vor.u32 1.1754944e-38, %v776_v25  ;;  %vm775_vm7 = vcmp.eq.f32.partialorder %v774_v20, 8.507059e+37 }
 0x831   :  { %v2541_v16 = vpop.eup %2540 }
 0x832   :  { %v766_v21 = vmul.f32 %v2541_v16, %v763_v12  ;;  %vm771_vm4 = vweird.f32 %v2541_v16 }
 0x833   :  { %vm772_vm6 = vmor %vm770_vm5, %vm771_vm4 }
 0x834   :  { %v767_v23 = vsub.f32 1.0, %v766_v21 }
 0x836   :  { %v768_v19 = vmul.f32 %v2541_v16, %v767_v23 }
 0x838   :  { %v769_v24 = vadd.f32 %v2541_v16, %v768_v19 }
 0x83a   :  { %v773_v26 = vsel %vm772_vm6, %v2541_v16, %v769_v24 }
 0x83b   :  { %v778_v29 = vsel %vm775_vm7, %v777_v27, %v773_v26 }
 0x83c   :  { %v796_v30 = vmul.f32 %v778_v29, %v3170_v43 }
 0x899   :  { %v799_v28 = vpop.permute.xlu0 %798 }
 0x89a   :  { %v801_v18 = vmul.f32 %v799_v28, %v778_v29 }
 0x89c   :  { %803 = vrot.lane.b32.xlu1 %v801_v18, %s2817_s2 }
 0x90e   :  { %v804_v31 = vpop.permute.xlu1 %803 }
 0x90f   :  { %v806_v33 = vadd.f32 %v804_v31, %v796_v30 }
 0x911   :  { %2542 = vtanh.f32 %v806_v33 }
 0x912   :  { %2544 = vpow2.f32 %v2345_v35 }
 0x917   :  { %v2543_v34 = vpop.eup %2542 }
 0x918   :  { %809 = vrot.lane.b32.xlu2 %v2543_v34, %s2817_s2  ;;  %v2545_v36 = vpop.eup %2544 }
 0x919   :  { %v764_v37 = vadd.f32 1.0, %v2545_v36 }
 0x91b   :  { %2546 = vrcp.f32 %v764_v37  ;;  %v791_v45 = vand.u32 2147483648, %v764_v37  ;;  %vm785_vm10 = vweird.f32 %v764_v37  ;;  %v789_v43 = vand.u32 2147483647, %v764_v37 }
 0x91d   :  { %v792_v47 = vor.u32 1.1754944e-38, %v791_v45  ;;  %vm790_vm12 = vcmp.eq.f32.partialorder %v789_v43, 8.507059e+37  ;;  %v189_v45 = vadd.f32 %v3192_v10, %v3052_v38 }
 0x921   :  { %v2547_v39 = vpop.eup %2546 }
 0x922   :  { %v781_v40 = vmul.f32 %v2547_v39, %v764_v37  ;;  %vm786_vm8 = vweird.f32 %v2547_v39 }
 0x923   :  { %vm787_vm11 = vmor %vm785_vm10, %vm786_vm8 }
 0x924   :  { %v782_v41 = vsub.f32 1.0, %v781_v40 }
 0x926   :  { %v783_v42 = vmul.f32 %v2547_v39, %v782_v41 }
 0x928   :  { %v784_v44 = vadd.f32 %v2547_v39, %v783_v42 }
 0x92a   :  { %v788_v46 = vsel %vm787_vm11, %v2547_v39, %v784_v44  ;;  %v218_v39 = vadd.f32 %v3184_v3, %v3048_v32 }
 0x92b   :  { %v793_v48 = vsel %vm790_vm12, %v792_v47, %v788_v46 }
 0x972   :  { %v810_v49 = vpop.permute.xlu2 %809 }
 0x973   :  { %v3200_v50 = vmul.f32 %v810_v49, %v793_v48 }
 0x975   :  { %2346 = vmatmul.msk.f32.vlgmr.msrb.gmra.mxu2 %vm259_vm9, %v3200_v50  ;;  %2347 = vmatmul.msk.f32.vlgmr.msrb.gmra.mxu3 %vm259_vm9, %v3200_v50 }
 0x9f8   :  { %v863_v52 = vpop.f32.mrf.mxu3  ;;  %v843_v55 = vpop.f32.mrf.mxu2 }
 0x9f9   :  { %v867_v53 = vadd.f32 %v863_v52, %v215_v51  ;;  %v866_v57 = vadd.f32 %v843_v55, %v186_v56 }
 0x9fb   :  { %2548 = vtanh.f32 %v867_v53  ;;  %v2348_v60 = vmul.f32 -1.442695, %v866_v57  ;;  %v2349_v24 = vmul.f32 -1.442695, %v867_v53 }
 0x9fd   :  { %2550 = vpow2.f32 %v2348_v60 }
 0xa01   :  { %v2549_v54 = vpop.eup %2548 }
 0xa02   :  { %909 = vrot.lane.b32.xlu0 %v2549_v54, %s2817_s2 }
 0xa03   :  { %v2551_v62 = vpop.eup %2550 }
 0xa04   :  { %v874_v5 = vadd.f32 1.0, %v2551_v62 }
 0xa06   :  { %2552 = vrcp.f32 %v874_v5  ;;  %v887_v13 = vand.u32 2147483648, %v874_v5  ;;  %vm881_vm14 = vweird.f32 %v874_v5  ;;  %v885_v0 = vand.u32 2147483647, %v874_v5 }
 0xa08   :  { %v888_v2 = vor.u32 1.1754944e-38, %v887_v13  ;;  %vm886_vm0 = vcmp.eq.f32.partialorder %v885_v0, 8.507059e+37 }
 0xa0c   :  { %v2553_v6 = vpop.eup %2552 }
 0xa0d   :  { %v877_v8 = vmul.f32 %v2553_v6, %v874_v5  ;;  %vm882_vm13 = vweird.f32 %v2553_v6 }
 0xa0e   :  { %vm883_vm15 = vmor %vm881_vm14, %vm882_vm13 }
 0xa0f   :  { %v878_v58 = vsub.f32 1.0, %v877_v8 }
 0xa11   :  { %v879_v63 = vmul.f32 %v2553_v6, %v878_v58 }
 0xa13   :  { %v880_v59 = vadd.f32 %v2553_v6, %v879_v63 }
 0xa15   :  { %v884_v1 = vsel %vm883_vm15, %v2553_v6, %v880_v59 }
 0xa16   :  { %v889_v7 = vsel %vm886_vm0, %v888_v2, %v884_v1 }
 0xa17   :  { %v907_v16 = vmul.f32 %v889_v7, %v806_v33 }
 0xa74   :  { %v910_v9 = vpop.permute.xlu0 %909 }
 0xa75   :  { %v912_v12 = vmul.f32 %v910_v9, %v889_v7 }
 0xa77   :  { %914 = vrot.lane.b32.xlu1 %v912_v12, %s2817_s2 }
 0xae9   :  { %v915_v21 = vpop.permute.xlu1 %914 }
 0xaea   :  { %v917_v23 = vadd.f32 %v915_v21, %v907_v16 }
 0xaec   :  { %2554 = vtanh.f32 %v917_v23 }
 0xaed   :  { %2556 = vpow2.f32 %v2349_v24 }
 0xaf2   :  { %v2555_v19 = vpop.eup %2554 }
 0xaf3   :  { %920 = vrot.lane.b32.xlu2 %v2555_v19, %s2817_s2  ;;  %v2557_v25 = vpop.eup %2556 }
 0xaf4   :  { %v875_v20 = vadd.f32 1.0, %v2557_v25 }
 0xaf6   :  { %2558 = vrcp.f32 %v875_v20  ;;  %v902_v30 = vand.u32 2147483648, %v875_v20  ;;  %vm896_vm2 = vweird.f32 %v875_v20  ;;  %v900_v31 = vand.u32 2147483647, %v875_v20 }
 0xaf8   :  { %v903_v34 = vor.u32 1.1754944e-38, %v902_v30  ;;  %vm901_vm4 = vcmp.eq.f32.partialorder %v900_v31, 8.507059e+37 }
 0xafc   :  { %v2559_v26 = vpop.eup %2558 }
 0xafd   :  { %v892_v27 = vmul.f32 %v2559_v26, %v875_v20  ;;  %vm897_vm1 = vweird.f32 %v2559_v26  ;;  %v220_v20 = vadd.f32 %v3186_v4, %v3048_v32 }
 0xafe   :  { %vm898_vm3 = vmor %vm896_vm2, %vm897_vm1  ;;  %vm367_vm2 = vcmask 1048064  }
 0xaff   :  { %v893_v28 = vsub.f32 1.0, %v892_v27 }
 0xb01   :  { %v894_v29 = vmul.f32 %v2559_v26, %v893_v28 }
 0xb03   :  { %v895_v18 = vadd.f32 %v2559_v26, %v894_v29 }
 0xb05   :  { %v899_v33 = vsel %vm898_vm3, %v2559_v26, %v895_v18  ;;  %v191_v18 = vadd.f32 %v3194_v11, %v3052_v38 }
 0xb06   :  { %v904_v35 = vsel %vm901_vm4, %v903_v34, %v899_v33 }
 0xb4d   :  { %v921_v36 = vpop.permute.xlu2 %920 }
 0xb4e   :  { %v3213_v37 = vmul.f32 %v921_v36, %v904_v35 }
 0xb50   :  { %2350 = vmatmul.msk.f32.vlgmr.msra.gmra.mxu0 %vm259_vm9, %v3213_v37  ;;  %2351 = vmatmul.msk.f32.vlgmr.msra.gmra.mxu1 %vm259_vm9, %v3213_v37 }
 0xbcd   :  { %v974_v40 = vpop.f32.mrf.mxu1  ;;  %v954_v44 = vpop.f32.mrf.mxu0 }
 0xbce   :  { %v978_v41 = vadd.f32 %v974_v40, %v218_v39  ;;  %v977_v43 = vadd.f32 %v954_v44, %v189_v45 }
 0xbd0   :  { %2560 = vtanh.f32 %v978_v41  ;;  %v2352_v46 = vmul.f32 -1.442695, %v977_v43  ;;  %v2353_v63 = vmul.f32 -1.442695, %v978_v41 }
 0xbd2   :  { %2562 = vpow2.f32 %v2352_v46 }
 0xbd6   :  { %v2561_v42 = vpop.eup %2560 }
 0xbd7   :  { %1020 = vrot.lane.b32.xlu0 %v2561_v42, %s2817_s2 }
 0xbd8   :  { %v2563_v47 = vpop.eup %2562 }
 0xbd9   :  { %v985_v48 = vadd.f32 1.0, %v2563_v47 }
 0xbdb   :  { %2564 = vrcp.f32 %v985_v48  ;;  %v998_v54 = vand.u32 2147483648, %v985_v48  ;;  %vm992_vm6 = vweird.f32 %v985_v48  ;;  %v996_v55 = vand.u32 2147483647, %v985_v48 }
 0xbdd   :  { %v999_v57 = vor.u32 1.1754944e-38, %v998_v54  ;;  %vm997_vm8 = vcmp.eq.f32.partialorder %v996_v55, 8.507059e+37  ;;  %v2475_v54 = vld [vmem:[%s3760_s4 + $0x74] sm:$0xf0]  ;;  %v2474_v55 = vld [vmem:[%s3760_s4 + $0x74] sm:$0xf] }
 0xbe1   :  { %v2565_v49 = vpop.eup %2564 }
 0xbe2   :  { %v988_v51 = vmul.f32 %v2565_v49, %v985_v48  ;;  %vm993_vm5 = vweird.f32 %v2565_v49 }
 0xbe3   :  { %vm994_vm7 = vmor %vm992_vm6, %vm993_vm5 }
 0xbe4   :  { %v989_v52 = vsub.f32 1.0, %v988_v51 }
 0xbe6   :  { %v990_v3 = vmul.f32 %v2565_v49, %v989_v52 }
 0xbe8   :  { %v991_v53 = vadd.f32 %v2565_v49, %v990_v3 }
 0xbea   :  { %v995_v56 = vsel %vm994_vm7, %v2565_v49, %v991_v53  ;;  %v2416_v53 = vld [vmem:[%s3760_s4 + $0x70] sm:$0xf] }
 0xbeb   :  { %v1000_v60 = vsel %vm997_vm8, %v999_v57, %v995_v56  ;;  %v2417_v56 = vor.u32 %v2475_v54, %v2416_v53  ;;  %v2418_v57 = vld [vmem:[%s3760_s4 + $0x78] sm:$0xf0] }
 0xbec   :  { %v1018_v5 = vmul.f32 %v1000_v60, %v917_v23 }
 0xbed   :  { %1266 = vmatpush.bf16.msrb.mxu0 %v2417_v56  ;;  %v3355_v56 = vld [vmem:[#allocation9 + $0x20] sm:$0xff] }
 0xc49   :  { %v1021_v10 = vpop.permute.xlu0 %1020 }
 0xc4a   :  { %v1023_v62 = vmul.f32 %v1021_v10, %v1000_v60  ;;  %v2408_v10 = vld [vmem:[%s3760_s4 + $0x60] sm:$0xf]  ;;  %v2473_v60 = vld [vmem:[%s3760_s4 + $0x64] sm:$0xf0] }
 0xc4c   :  { %1025 = vrot.lane.b32.xlu1 %v1023_v62, %s2817_s2  ;;  %v2421_v62 = vor.u32 %v2474_v55, %v2418_v57  ;;  %v3357_v57 = vld [vmem:[#allocation9 + $0x28] sm:$0xff] }
 0xc4e   :  { %1295 = vmatpush.bf16.msrb.mxu1 %v2421_v62  ;;  %v2370_v62 = vld [vmem:[%s3760_s4 + $0x18] sm:$0xf0] }
 0xcbe   :  { %v1026_v6 = vpop.permute.xlu1 %1025 }
 0xcbf   :  { %v1028_v8 = vadd.f32 %v1026_v6, %v1018_v5  ;;  %v2472_v5 = vld [vmem:[%s3760_s4 + $0x64] sm:$0xf]  ;;  %v2410_v6 = vld [vmem:[%s3760_s4 + $0x68] sm:$0xf0] }
 0xcc1   :  { %2566 = vtanh.f32 %v1028_v8 }
 0xcc2   :  { %2568 = vpow2.f32 %v2353_v63  ;;  %v2400_v63 = vld [vmem:[%s3760_s4 + $0x50] sm:$0xf] }
 0xcc7   :  { %v2567_v58 = vpop.eup %2566 }
 0xcc8   :  { %1031 = vrot.lane.b32.xlu2 %v2567_v58, %s2817_s2  ;;  %v2569_v59 = vpop.eup %2568  ;;  %v2413_v58 = vor.u32 %v2472_v5, %v2410_v6 }
 0xcc9   :  { %v986_v13 = vadd.f32 1.0, %v2569_v59  ;;  %v2471_v59 = vld [vmem:[%s3760_s4 + $0x54] sm:$0xf0] }
 0xcca   :  { %1296 = vmatpush.bf16.msrb.mxu1 %v2413_v58  ;;  %v3375_v58 = vld [vmem:[#allocation9 + $0x18] sm:$0xff] }
 0xccb   :  { %2570 = vrcp.f32 %v986_v13  ;;  %v1013_v12 = vand.u32 2147483648, %v986_v13  ;;  %vm1007_vm11 = vweird.f32 %v986_v13  ;;  %v1011_v16 = vand.u32 2147483647, %v986_v13 }
 0xccd   :  { %v1014_v23 = vor.u32 1.1754944e-38, %v1013_v12  ;;  %vm1012_vm13 = vcmp.eq.f32.partialorder %v1011_v16, 8.507059e+37  ;;  %v2401_v16 = vor.u32 %v2471_v59, %v2400_v63  ;;  %v3377_v63 = vld [vmem:[#allocation9] sm:$0xff]  ;;  %v3381_v59 = vld [vmem:[#allocation9 + $0x8] sm:$0xff] }
 0xcd1   :  { %v2571_v0 = vpop.eup %2570 }
 0xcd2   :  { %v1003_v1 = vmul.f32 %v2571_v0, %v986_v13  ;;  %vm1008_vm10 = vweird.f32 %v2571_v0  ;;  %v2470_v13 = vld [vmem:[%s3760_s4 + $0x54] sm:$0xf] }
 0xcd3   :  { %vm1009_vm12 = vmor %vm1007_vm11, %vm1008_vm10 }
 0xcd4   :  { %v1004_v2 = vsub.f32 1.0, %v1003_v1  ;;  %v3281_v1 = vld [vmem:[#allocation9 + $0x70] sm:$0xff] }
 0xcd5   :  { %1366 = vmatpush.msrb.mxu2 %v3281_v1 }
 0xcd6   :  { %v1005_v9 = vmul.f32 %v2571_v0, %v1004_v2  ;;  %v3283_v2 = vld [vmem:[#allocation9 + $0x78] sm:$0xff] }
 0xcd7   :  { %1386 = vmatpush.msrb.mxu3 %v3283_v2 }
 0xcd8   :  { %v1006_v7 = vadd.f32 %v2571_v0, %v1005_v9  ;;  %v3287_v9 = vld [vmem:[#allocation9 + $0x60] sm:$0xff] }
 0xcd9   :  { %1367 = vmatpush.msrb.mxu2 %v3287_v9 }
 0xcda   :  { %v1010_v21 = vsel %vm1009_vm12, %v2571_v0, %v1006_v7  ;;  %v2402_v0 = vld [vmem:[%s3760_s4 + $0x58] sm:$0xf0]  ;;  %v3289_v7 = vld [vmem:[#allocation9 + $0x68] sm:$0xff] }
 0xcdb   :  { %v1015_v19 = vsel %vm1012_vm13, %v1014_v23, %v1010_v21  ;;  %v2392_v21 = vld [vmem:[%s3760_s4 + $0x40] sm:$0xf]  ;;  %v2405_v23 = vor.u32 %v2470_v13, %v2402_v0  ;;  %1387 = vmatpush.msrb.mxu3 %v3289_v7  ;;  %v2461_v0 = vld [vmem:[%s3760_s4 + $0x4] sm:$0xf0] }
 0xcdc   :  { %v2360_v13 = vld [vmem:[%s3760_s4] sm:$0xf] }
 0xcdd   :  { %1297 = vmatpush.bf16.msrb.mxu1 %v2405_v23 }
 0xd22   :  { %v1032_v24 = vpop.permute.xlu2 %1031 }
 0xd23   :  { %v3226_v25 = vmul.f32 %v1032_v24, %v1015_v19  ;;  %v2469_v19 = vld [vmem:[%s3760_s4 + $0x44] sm:$0xf0]  ;;  %v3298_v24 = vld [vmem:[#allocation9 + $0x50] sm:$0xff] }
 0xd24   :  { %1368 = vmatpush.msrb.mxu2 %v3298_v24 }
 0xd25   :  { %2354 = vmatmul.msk.f32.vlgmr.msra.gmra.mxu2 %vm259_vm9, %v3226_v25  ;;  %2355 = vmatmul.msk.f32.vlgmr.msra.gmra.mxu3 %vm259_vm9, %v3226_v25 }
 0xda8   :  { %v1085_v26 = vpop.f32.mrf.mxu3  ;;  %v1065_v29 = vpop.f32.mrf.mxu2 }
 0xda9   :  { %v1089_v27 = vadd.f32 %v1085_v26, %v220_v20  ;;  %v1088_v30 = vadd.f32 %v1065_v29, %v191_v18  ;;  %v3300_v20 = vld [vmem:[#allocation9 + $0x58] sm:$0xff]  ;;  %v2468_v26 = vld [vmem:[%s3760_s4 + $0x44] sm:$0xf]  ;;  %v3313_v18 = vld [vmem:[#allocation9 + $0x48] sm:$0xff] }
 0xdaa   :  { %1388 = vmatpush.msrb.mxu3 %v3300_v20 }
 0xdab   :  { %2572 = vtanh.f32 %v1089_v27  ;;  %v2356_v31 = vmul.f32 -1.442695, %v1088_v30  ;;  %v2357_v51 = vmul.f32 -1.442695, %v1089_v27  ;;  %v2394_v27 = vld [vmem:[%s3760_s4 + $0x48] sm:$0xf0]  ;;  %v2393_v30 = vor.u32 %v2469_v19, %v2392_v21 }
 0xdac   :  { %1389 = vmatpush.msrb.mxu3 %v3313_v18  ;;  %v2362_v21 = vld [vmem:[%s3760_s4 + $0x8] sm:$0xf0] }
 0xdad   :  { %2574 = vpow2.f32 %v2356_v31  ;;  %v3316_v31 = vld [vmem:[#allocation9 + $0x30] sm:$0xff] }
 0xdb1   :  { %v2573_v28 = vpop.eup %2572 }
 0xdb2   :  { %1131 = vrot.lane.b32.xlu0 %v2573_v28, %s2817_s2  ;;  %v3309_v28 = vld [vmem:[#allocation9 + $0x40] sm:$0xff] }
 0xdb3   :  { %v2575_v33 = vpop.eup %2574  ;;  %1369 = vmatpush.msrb.mxu2 %v3309_v28 }
 0xdb4   :  { %v1096_v34 = vadd.f32 1.0, %v2575_v33  ;;  %v2397_v33 = vor.u32 %v2468_v26, %v2394_v27 }
 0xdb5   :  { %1370 = vmatpush.msrb.mxu2 %v3316_v31 }
 0xdb6   :  { %2576 = vrcp.f32 %v1096_v34  ;;  %v1109_v40 = vand.u32 2147483648, %v1096_v34  ;;  %vm1103_vm15 = vweird.f32 %v1096_v34  ;;  %v1107_v41 = vand.u32 2147483647, %v1096_v34  ;;  %1298 = vmatpush.bf16.msrb.mxu1 %v2397_v33 }
 0xdb7   :  { %1371 = vmatpush.msrb.mxu2 %v3355_v56 }
 0xdb8   :  { %v1110_v44 = vor.u32 1.1754944e-38, %v1109_v40  ;;  %vm1108_vm1 = vcmp.eq.f32.partialorder %v1107_v41, 8.507059e+37 }
 0xdba   :  { %1037 = vrot.lane.b32.xlu0 %v3226_v25, %s2817_s2 }
 0xdbc   :  { %v2577_v32 = vpop.eup %2576 }
 0xdbd   :  { %v1099_v4 = vmul.f32 %v2577_v32, %v1096_v34  ;;  %vm1104_vm14 = vweird.f32 %v2577_v32  ;;  %v2384_v34 = vld [vmem:[%s3760_s4 + $0x30] sm:$0xf] }
 0xdbe   :  { %vm1105_vm0 = vmor %vm1103_vm15, %vm1104_vm14 }
 0xdbf   :  { %v1100_v35 = vsub.f32 1.0, %v1099_v4  ;;  %v3325_v4 = vld [vmem:[#allocation9 + $0x38] sm:$0xff] }
 0xdc0   :  { %1390 = vmatpush.msrb.mxu3 %v3325_v4 }
 0xdc1   :  { %v1101_v36 = vmul.f32 %v2577_v32, %v1100_v35  ;;  %v2466_v35 = vld [vmem:[%s3760_s4 + $0x34] sm:$0xf] }
 0xdc2   :  { %1391 = vmatpush.msrb.mxu3 %v3357_v57 }
 0xdc3   :  { %v1102_v39 = vadd.f32 %v2577_v32, %v1101_v36  ;;  %v2386_v36 = vld [vmem:[%s3760_s4 + $0x38] sm:$0xf0] }
 0xdc4   :  { %v2389_v41 = vor.u32 %v2466_v35, %v2386_v36  ;;  %1392 = vmatpush.msrb.mxu3 %v3375_v58 }
 0xdc5   :  { %v1106_v42 = vsel %vm1105_vm0, %v2577_v32, %v1102_v39  ;;  %v2467_v32 = vld [vmem:[%s3760_s4 + $0x34] sm:$0xf0] }
 0xdc6   :  { %v1111_v11 = vsel %vm1108_vm1, %v1110_v44, %v1106_v42  ;;  %v2385_v40 = vor.u32 %v2467_v32, %v2384_v34  ;;  %v2376_v42 = vld [vmem:[%s3760_s4 + $0x20] sm:$0xf]  ;;  %v2465_v44 = vld [vmem:[%s3760_s4 + $0x24] sm:$0xf0]  ;;  %1299 = vmatpush.bf16.msrb.mxu1 %v2389_v41  ;;  %1393 = vmatpush.msrb.mxu3 %v3381_v59 }
 0xdc7   :  { %v1129_v46 = vmul.f32 %v1111_v11, %v1028_v8  ;;  %v2409_v8 = vor.u32 %v2473_v60, %v2408_v10  ;;  %v2463_v10 = vld [vmem:[%s3760_s4 + $0x14] sm:$0xf0]  ;;  %v2462_v60 = vld [vmem:[%s3760_s4 + $0x14] sm:$0xf]  ;;  %1394 = vmatmul.f32.vlgmr.msrb.gmra.mxu3 %v2816_v22 }
 0xdc8   :  { %v2373_v6 = vor.u32 %v2462_v60, %v2370_v62  ;;  %1494 = vmatpush.msra.mxu3 %v3283_v2 }
 0xdc9   :  { %1267 = vmatpush.bf16.msrb.mxu0 %v2409_v8  ;;  %v3373_v8 = vld [vmem:[#allocation9 + $0x10] sm:$0xff] }
 0xdca   :  { %1372 = vmatpush.msrb.mxu2 %v3373_v8  ;;  %1495 = vmatpush.msra.mxu3 %v3289_v7 }
 0xdcc   :  { %1373 = vmatpush.msrb.mxu2 %v3377_v63  ;;  %1496 = vmatpush.msra.mxu3 %v3300_v20 }
 0xdcd   :  { %1268 = vmatpush.bf16.msrb.mxu0 %v2401_v16  ;;  %v2460_v16 = vld [vmem:[%s3760_s4 + $0x4] sm:$0xf]  ;;  %1374 = vmatmul.f32.vlgmr.msrb.gmra.mxu2 %v2816_v22 }
 0xdce   :  { %v2365_v23 = vor.u32 %v2460_v16, %v2362_v21  ;;  %1474 = vmatpush.msra.mxu2 %v3281_v1  ;;  %1497 = vmatpush.msra.mxu3 %v3313_v18 }
 0xdd0   :  { %1475 = vmatpush.msra.mxu2 %v3287_v9  ;;  %1498 = vmatpush.msra.mxu3 %v3325_v4 }
 0xdd1   :  { %1269 = vmatpush.bf16.msrb.mxu0 %v2393_v30 }
 0xdd2   :  { %1476 = vmatpush.msra.mxu2 %v3298_v24  ;;  %1499 = vmatpush.msra.mxu3 %v3357_v57 }
 0xdd4   :  { %1477 = vmatpush.msra.mxu2 %v3309_v28  ;;  %1500 = vmatpush.msra.mxu3 %v3375_v58 }
 0xdd5   :  { %1270 = vmatpush.bf16.msrb.mxu0 %v2385_v40 }
 0xdd6   :  { %1478 = vmatpush.msra.mxu2 %v3316_v31  ;;  %1501 = vmatpush.msra.mxu3 %v3381_v59 }
 0xdd8   :  { %1479 = vmatpush.msra.mxu2 %v3355_v56  ;;  %1602 = vmatpush.msrb.mxu3 %v3283_v2 }
 0xdda   :  { %1480 = vmatpush.msra.mxu2 %v3373_v8  ;;  %1603 = vmatpush.msrb.mxu3 %v3289_v7 }
 0xddc   :  { %1481 = vmatpush.msra.mxu2 %v3377_v63  ;;  %1604 = vmatpush.msrb.mxu3 %v3300_v20 }
 0xdde   :  { %1582 = vmatpush.msrb.mxu2 %v3281_v1  ;;  %1605 = vmatpush.msrb.mxu3 %v3313_v18 }
 0xde0   :  { %1583 = vmatpush.msrb.mxu2 %v3287_v9  ;;  %1606 = vmatpush.msrb.mxu3 %v3325_v4 }
 0xde2   :  { %1584 = vmatpush.msrb.mxu2 %v3298_v24  ;;  %1607 = vmatpush.msrb.mxu3 %v3357_v57 }
 0xde4   :  { %1585 = vmatpush.msrb.mxu2 %v3309_v28  ;;  %1608 = vmatpush.msrb.mxu3 %v3375_v58 }
 0xde6   :  { %1586 = vmatpush.msrb.mxu2 %v3316_v31  ;;  %1609 = vmatpush.msrb.mxu3 %v3381_v59 }
 0xde8   :  { %1587 = vmatpush.msrb.mxu2 %v3355_v56 }
 0xdea   :  { %1588 = vmatpush.msrb.mxu2 %v3373_v8 }
 0xdec   :  { %1589 = vmatpush.msrb.mxu2 %v3377_v63 }
 0xe24   :  { %v1132_v38 = vpop.permute.xlu0 %1131 }
 0xe25   :  { %v1134_v45 = vmul.f32 %v1132_v38, %v1111_v11  ;;  %v2464_v38 = vld [vmem:[%s3760_s4 + $0x24] sm:$0xf]  ;;  %v2378_v11 = vld [vmem:[%s3760_s4 + $0x28] sm:$0xf0] }
 0xe27   :  { %1136 = vrot.lane.b32.xlu1 %v1134_v45, %s2817_s2 }
 0xe2c   :  { %v1038_v43 = vpop.permute.xlu0 %1037 }
 0xe2d   :  { %1040 = vst.msk [vmem:[#allocation3 + $0x8] sm:$0xff] %vm367_vm2, %v1038_v43  ;;  %v2377_v43 = vor.u32 %v2465_v44, %v2376_v42 }
 0xe2f   :  { %1271 = vmatpush.bf16.msrb.mxu0 %v2377_v43 }
 0xe34   :  { %v1153_v26 = vld [vmem:[#allocation3 + $0x8] sm:$0xff] }
 0xe4a   :  { %v1395_v34 = vpop.f32.mrf.mxu3 }
 0xe50   :  { %v1375_v42 = vpop.f32.mrf.mxu2 }
 0xe99   :  { %v1137_v47 = vpop.permute.xlu1 %1136 }
 0xe9a   :  { %v1139_v48 = vadd.f32 %v1137_v47, %v1129_v46  ;;  %v2381_v46 = vor.u32 %v2464_v38, %v2378_v11 }
 0xe9c   :  { %2578 = vtanh.f32 %v1139_v48  ;;  %1300 = vmatpush.bf16.msrb.mxu1 %v2381_v46 }
 0xe9d   :  { %2580 = vpow2.f32 %v2357_v51 }
 0xea0   :  { %1301 = vmatpush.bf16.msrb.mxu1 %v2373_v6 }
 0xea2   :  { %v2579_v49 = vpop.eup %2578 }
 0xea3   :  { %1142 = vrot.lane.b32.xlu2 %v2579_v49, %s2817_s2  ;;  %v2581_v52 = vpop.eup %2580 }
 0xea4   :  { %v3242_v3 = vadd.f32 1.0, %v2581_v52  ;;  %1302 = vmatpush.bf16.msrb.mxu1 %v2365_v23 }
 0xea6   :  { %2582 = vrcp.f32 %v3242_v3  ;;  %v1124_v48 = vand.u32 2147483648, %v3242_v3  ;;  %vm1118_vm4 = vweird.f32 %v3242_v3  ;;  %v1122_v49 = vand.u32 2147483647, %v3242_v3 }
 0xea8   :  { %v1125_v52 = vor.u32 1.1754944e-38, %v1124_v48  ;;  %vm1123_vm6 = vcmp.eq.f32.partialorder %v1122_v49, 8.507059e+37  ;;  %1926 = vmatpush.msra.mxu1 %v3283_v2 }
 0xeaa   :  { %1927 = vmatpush.msra.mxu1 %v3289_v7 }
 0xeac   :  { %v2583_v12 = vpop.eup %2582  ;;  %1928 = vmatpush.msra.mxu1 %v3300_v20 }
 0xead   :  { %v1114_v29 = vmul.f32 %v2583_v12, %v3242_v3  ;;  %vm1119_vm3 = vweird.f32 %v2583_v12  ;;  %v2368_v3 = vld [vmem:[%s3760_s4 + $0x10] sm:$0xf] }
 0xeae   :  { %vm1120_vm5 = vmor %vm1118_vm4, %vm1119_vm3  ;;  %v2369_v5 = vor.u32 %v2463_v10, %v2368_v3  ;;  %1929 = vmatpush.msra.mxu1 %v3313_v18 }
 0xeaf   :  { %v1115_v39 = vsub.f32 1.0, %v1114_v29  ;;  %v1180_v29 = vld [vmem:[#allocation10] sm:$0x3] }
 0xeb0   :  { %1272 = vmatpush.bf16.msrb.mxu0 %v2369_v5  ;;  %1930 = vmatpush.msra.mxu1 %v3325_v4  ;;  %v3464_v30 = vperm.slane %v1180_v29, 1 }
 0xeb1   :  { %v1116_v45 = vmul.f32 %v2583_v12, %v1115_v39  ;;  %v3468_v39 = vperm.slane %v1180_v29, 0 }
 0xeb2   :  { %1931 = vmatpush.msra.mxu1 %v3357_v57 }
 0xeb3   :  { %v1117_v47 = vadd.f32 %v2583_v12, %v1116_v45 }
 0xeb4   :  { %1932 = vmatpush.msra.mxu1 %v3375_v58 }
 0xeb5   :  { %v1121_v51 = vsel %vm1120_vm5, %v2583_v12, %v1117_v47  ;;  %v2361_v12 = vor.u32 %v2461_v0, %v2360_v13 }
 0xeb6   :  { %v1126_v53 = vsel %vm1123_vm6, %v1125_v52, %v1121_v51  ;;  %1933 = vmatpush.msra.mxu1 %v3381_v59 }
 0xeb7   :  { %1273 = vmatpush.bf16.msrb.mxu0 %v2361_v12 }
 0xebb   :  { %1906 = vmatpush.msra.mxu0 %v3281_v1 }
 0xebd   :  { %1907 = vmatpush.msra.mxu0 %v3287_v9 }
 0xebf   :  { %1908 = vmatpush.msra.mxu0 %v3298_v24 }
 0xec1   :  { %1909 = vmatpush.msra.mxu0 %v3309_v28 }
 0xec3   :  { %1910 = vmatpush.msra.mxu0 %v3316_v31 }
 0xec5   :  { %1911 = vmatpush.msra.mxu0 %v3355_v56 }
 0xec7   :  { %1912 = vmatpush.msra.mxu0 %v3373_v8 }
 0xec9   :  { %1913 = vmatpush.msra.mxu0 %v3377_v63 }
 0xefd   :  { %v1143_v54 = vpop.permute.xlu2 %1142 }
 0xefe   :  { %v3351_v55 = vmul.f32 %v1143_v54, %v1126_v53 }
 0xf00   :  { %1148 = vrot.lane.b32.xlu1 %v3351_v55, %s2817_s2 }
 0xf72   :  { %v1149_v22 = vpop.permute.xlu1 %1148 }
 0xf73   :  { %1151 = vst.msk [vmem:[#allocation3] sm:$0xff] %vm367_vm2, %v1149_v22 }
 0xf7a   :  { %v1152_v19 = vld [vmem:[#allocation3] sm:$0xff] }
 0xf7b   :  { %v1160_v27 = vpack.c.bf16 %v1153_v26, %v1152_v19 }
 0xf7d   :  { %1274 = vmatmul.bf16.vlgmr.msrb.gmra.mxu0 %v1160_v27  ;;  %1303 = vmatmul.bf16.vlgmr.msrb.gmra.mxu1 %v1160_v27 }
 0xf7e   :  { %2122 = vmatpush.msrb.mxu0 %v3281_v1  ;;  %2142 = vmatpush.msrb.mxu1 %v3283_v2 }
 0xf80   :  { %2123 = vmatpush.msrb.mxu0 %v3287_v9  ;;  %2143 = vmatpush.msrb.mxu1 %v3289_v7 }
 0xf82   :  { %2124 = vmatpush.msrb.mxu0 %v3298_v24  ;;  %2144 = vmatpush.msrb.mxu1 %v3300_v20 }
 0xf84   :  { %2125 = vmatpush.msrb.mxu0 %v3309_v28  ;;  %2145 = vmatpush.msrb.mxu1 %v3313_v18 }
 0xf86   :  { %2126 = vmatpush.msrb.mxu0 %v3316_v31  ;;  %2146 = vmatpush.msrb.mxu1 %v3325_v4 }
 0xf88   :  { %2127 = vmatpush.msrb.mxu0 %v3355_v56  ;;  %2147 = vmatpush.msrb.mxu1 %v3357_v57 }
 0xf8a   :  { %2128 = vmatpush.msrb.mxu0 %v3373_v8  ;;  %2148 = vmatpush.msrb.mxu1 %v3375_v58 }
 0xf8c   :  { %2129 = vmatpush.msrb.mxu0 %v3377_v63  ;;  %2149 = vmatpush.msrb.mxu1 %v3381_v59 }
 0xffa   :  { %v1304_v33 = vpop.f32.mrf.mxu1  ;;  %v1275_v40 = vpop.f32.mrf.mxu0 }
 0xffb   :  { %v1305_v32 = vadd.f32 %v1304_v33, %v3464_v30  ;;  %v1276_v41 = vadd.f32 %v1275_v40, %v3468_v39 }
 0xffd   :  { %v1399_v35 = vadd.f32 %v1395_v34, %v1305_v32  ;;  %v1398_v44 = vadd.f32 %v1375_v42, %v1276_v41 }
 0xfff   :  { %2584 = vtanh.f32 %v1399_v35  ;;  %v2422_v38 = vmul.f32 -1.442695, %v1398_v44  ;;  %v2423_v0 = vmul.f32 -1.442695, %v1399_v35 }
0x1001   :  { %2586 = vpow2.f32 %v2422_v38 }
0x1002   :  { %v1306_v41 = vpop.f32.mrf.mxu1 }
0x1003   :  { %v1307_v42 = vadd.f32 %v1306_v41, %v3464_v30 }
0x1005   :  { %v2585_v36 = vpop.eup %2584 }
0x1006   :  { %1441 = vrot.lane.b32.xlu2 %v2585_v36, %s2817_s2 }
0x1007   :  { %v2587_v11 = vpop.eup %2586 }
0x1008   :  { %v1406_v45 = vadd.f32 1.0, %v2587_v11 }
0x100a   :  { %2588 = vrcp.f32 %v1406_v45  ;;  %v1419_v51 = vand.u32 2147483648, %v1406_v45  ;;  %vm1413_vm8 = vweird.f32 %v1406_v45  ;;  %v1417_v52 = vand.u32 2147483647, %v1406_v45 }
0x100c   :  { %v1420_v54 = vor.u32 1.1754944e-38, %v1419_v51  ;;  %vm1418_vm11 = vcmp.eq.f32.partialorder %v1417_v52, 8.507059e+37 }
0x1010   :  { %v2589_v43 = vpop.eup %2588 }
0x1011   :  { %v1409_v46 = vmul.f32 %v2589_v43, %v1406_v45  ;;  %vm1414_vm7 = vweird.f32 %v2589_v43  ;;  %v1277_v45 = vpop.f32.mrf.mxu0 }
0x1012   :  { %vm1415_vm10 = vmor %vm1413_vm8, %vm1414_vm7 }
0x1013   :  { %v1410_v47 = vsub.f32 1.0, %v1409_v46  ;;  %v1278_v46 = vadd.f32 %v1277_v45, %v3468_v39 }
0x1015   :  { %v1411_v48 = vmul.f32 %v2589_v43, %v1410_v47 }
0x1017   :  { %v1412_v49 = vadd.f32 %v2589_v43, %v1411_v48 }
0x1019   :  { %v1416_v53 = vsel %vm1415_vm10, %v2589_v43, %v1412_v49 }
0x101a   :  { %v1421_v10 = vsel %vm1418_vm11, %v1420_v54, %v1416_v53 }
0x101b   :  { %v1439_v62 = vmul.f32 0.0, %v1421_v10 }
0x1060   :  { %v1442_v3 = vpop.permute.xlu2 %1441 }
0x1061   :  { %v1444_v60 = vmul.f32 %v1442_v3, %v1421_v10 }
0x1063   :  { %1446 = vrot.lane.b32.xlu0 %v1444_v60, %s2817_s2 }
0x10d5   :  { %v1447_v5 = vpop.permute.xlu0 %1446 }
0x10d6   :  { %v3472_v6 = vadd.f32 %v1447_v5, %v1439_v62 }
0x10d8   :  { %2590 = vtanh.f32 %v3472_v6 }
0x10d9   :  { %2592 = vpow2.f32 %v2423_v0 }
0x10de   :  { %v2591_v13 = vpop.eup %2590 }
0x10df   :  { %1452 = vrot.lane.b32.xlu1 %v2591_v13, %s2817_s2  ;;  %v2593_v12 = vpop.eup %2592 }
0x10e0   :  { %v1407_v16 = vadd.f32 1.0, %v2593_v12 }
0x10e2   :  { %2594 = vrcp.f32 %v1407_v16  ;;  %v1434_v27 = vand.u32 2147483648, %v1407_v16  ;;  %vm1428_vm13 = vweird.f32 %v1407_v16  ;;  %v1432_v29 = vand.u32 2147483647, %v1407_v16 }
0x10e4   :  { %v1435_v34 = vor.u32 1.1754944e-38, %v1434_v27  ;;  %vm1433_vm15 = vcmp.eq.f32.partialorder %v1432_v29, 8.507059e+37 }
0x10e7   :  { %815 = vrot.lane.b32.xlu1 %v3200_v50, %s2817_s2 }
0x10e8   :  { %v2595_v21 = vpop.eup %2594 }
0x10e9   :  { %v1424_v23 = vmul.f32 %v2595_v21, %v1407_v16  ;;  %vm1429_vm12 = vweird.f32 %v2595_v21 }
0x10ea   :  { %vm1430_vm14 = vmor %vm1428_vm13, %vm1429_vm12 }
0x10eb   :  { %v1425_v22 = vsub.f32 1.0, %v1424_v23 }
0x10ed   :  { %v1426_v19 = vmul.f32 %v2595_v21, %v1425_v22 }
0x10ef   :  { %v1427_v26 = vadd.f32 %v2595_v21, %v1426_v19 }
0x10f1   :  { %v1431_v33 = vsel %vm1430_vm14, %v2595_v21, %v1427_v26 }
0x10f2   :  { %v1436_v32 = vsel %vm1433_vm15, %v1435_v34, %v1431_v33 }
0x1151   :  { %v1453_v36 = vpop.permute.xlu1 %1452 }
0x1152   :  { %v3478_v35 = vmul.f32 %v1453_v36, %v1436_v32 }
0x1154   :  { %1456 = vst.msk [vmem:[#allocation3] sm:$0xff] %vm259_vm9, %v3478_v35  ;;  %2424 = vmatmul.msk.f32.vlgmr.msra.gmra.mxu2 %vm259_vm9, %v3478_v35  ;;  %2425 = vmatmul.msk.f32.vlgmr.msra.gmra.mxu3 %vm259_vm9, %v3478_v35 }
0x1155   :  { %1690 = vmatpush.msra.mxu2 %v3281_v1  ;;  %1710 = vmatpush.msra.mxu3 %v3283_v2 }
0x1157   :  { %1691 = vmatpush.msra.mxu2 %v3287_v9  ;;  %1711 = vmatpush.msra.mxu3 %v3289_v7 }
0x1159   :  { %v816_v40 = vpop.permute.xlu1 %815  ;;  %1692 = vmatpush.msra.mxu2 %v3298_v24  ;;  %1712 = vmatpush.msra.mxu3 %v3300_v20 }
0x115a   :  { %818 = vst.msk [vmem:[#allocation3 + $0x18] sm:$0xff] %vm367_vm2, %v816_v40 }
0x115b   :  { %1693 = vmatpush.msra.mxu2 %v3309_v28  ;;  %1713 = vmatpush.msra.mxu3 %v3313_v18 }
0x115d   :  { %1694 = vmatpush.msra.mxu2 %v3316_v31  ;;  %1714 = vmatpush.msra.mxu3 %v3325_v4 }
0x115f   :  { %1695 = vmatpush.msra.mxu2 %v3355_v56  ;;  %1715 = vmatpush.msra.mxu3 %v3357_v57 }
0x1161   :  { %1696 = vmatpush.msra.mxu2 %v3373_v8  ;;  %1716 = vmatpush.msra.mxu3 %v3375_v58  ;;  %v1155_v22 = vld [vmem:[#allocation3 + $0x18] sm:$0xff] }
0x1163   :  { %1697 = vmatpush.msra.mxu2 %v3377_v63  ;;  %1717 = vmatpush.msra.mxu3 %v3381_v59 }
0x11d7   :  { %v1503_v44 = vpop.f32.mrf.mxu3  ;;  %v1483_v43 = vpop.f32.mrf.mxu2 }
0x11d8   :  { %v1507_v38 = vadd.f32 %v1503_v44, %v1307_v42  ;;  %v1506_v47 = vadd.f32 %v1483_v43, %v1278_v46 }
0x11da   :  { %2596 = vtanh.f32 %v1507_v38  ;;  %v2426_v48 = vmul.f32 -1.442695, %v1506_v47  ;;  %v2427_v34 = vmul.f32 -1.442695, %v1507_v38 }
0x11dc   :  { %2598 = vpow2.f32 %v2426_v48 }
0x11e0   :  { %v2597_v11 = vpop.eup %2596 }
0x11e1   :  { %1549 = vrot.lane.b32.xlu2 %v2597_v11, %s2817_s2 }
0x11e2   :  { %v2599_v49 = vpop.eup %2598 }
0x11e3   :  { %v1514_v51 = vadd.f32 1.0, %v2599_v49 }
0x11e5   :  { %2600 = vrcp.f32 %v1514_v51  ;;  %v1527_v60 = vand.u32 2147483648, %v1514_v51  ;;  %vm1521_vm1 = vweird.f32 %v1514_v51  ;;  %v1525_v62 = vand.u32 2147483647, %v1514_v51 }
0x11e7   :  { %v1528_v13 = vor.u32 1.1754944e-38, %v1527_v60  ;;  %vm1526_vm4 = vcmp.eq.f32.partialorder %v1525_v62, 8.507059e+37 }
0x11e9   :  { %926 = vrot.lane.b32.xlu2 %v3213_v37, %s2817_s2 }
0x11eb   :  { %v2601_v52 = vpop.eup %2600 }
0x11ec   :  { %v1517_v53 = vmul.f32 %v2601_v52, %v1514_v51  ;;  %vm1522_vm0 = vweird.f32 %v2601_v52 }
0x11ed   :  { %vm1523_vm3 = vmor %vm1521_vm1, %vm1522_vm0 }
0x11ee   :  { %v1518_v54 = vsub.f32 1.0, %v1517_v53 }
0x11f0   :  { %v1519_v3 = vmul.f32 %v2601_v52, %v1518_v54 }
0x11f2   :  { %v1520_v10 = vadd.f32 %v2601_v52, %v1519_v3 }
0x11f4   :  { %v1524_v5 = vsel %vm1523_vm3, %v2601_v52, %v1520_v10 }
0x11f5   :  { %v1529_v12 = vsel %vm1526_vm4, %v1528_v13, %v1524_v5 }
0x11f6   :  { %v1547_v26 = vmul.f32 %v1529_v12, %v3472_v6 }
0x123b   :  { %v1550_v0 = vpop.permute.xlu2 %1549 }
0x123c   :  { %v1552_v16 = vmul.f32 %v1550_v0, %v1529_v12 }
0x123e   :  { %1554 = vrot.lane.b32.xlu0 %v1552_v16, %s2817_s2 }
0x1243   :  { %v927_v21 = vpop.permute.xlu2 %926 }
0x1244   :  { %929 = vst.msk [vmem:[#allocation3 + $0x10] sm:$0xff] %vm367_vm2, %v927_v21 }
0x124b   :  { %v1154_v23 = vld [vmem:[#allocation3 + $0x10] sm:$0xff] }
0x124c   :  { %v1161_v19 = vpack.c.bf16 %v1155_v22, %v1154_v23 }
0x124e   :  { %1279 = vmatmul.bf16.gmra.mxu0 %v1161_v19  ;;  %1308 = vmatmul.bf16.gmra.mxu1 %v1161_v19 }
0x12b0   :  { %v1555_v27 = vpop.permute.xlu0 %1554 }
0x12b1   :  { %v3511_v29 = vadd.f32 %v1555_v27, %v1547_v26 }
0x12b3   :  { %2602 = vtanh.f32 %v3511_v29 }
0x12b4   :  { %2604 = vpow2.f32 %v2427_v34 }
0x12b9   :  { %v2603_v33 = vpop.eup %2602 }
0x12ba   :  { %1560 = vrot.lane.b32.xlu0 %v2603_v33, %s2817_s2  ;;  %v2605_v32 = vpop.eup %2604 }
0x12bb   :  { %v1515_v36 = vadd.f32 1.0, %v2605_v32 }
0x12bd   :  { %2606 = vrcp.f32 %v1515_v36  ;;  %v1542_v6 = vand.u32 2147483648, %v1515_v36  ;;  %vm1536_vm6 = vweird.f32 %v1515_v36  ;;  %v1540_v45 = vand.u32 2147483647, %v1515_v36 }
0x12bf   :  { %v1543_v46 = vor.u32 1.1754944e-38, %v1542_v6  ;;  %vm1541_vm8 = vcmp.eq.f32.partialorder %v1540_v45, 8.507059e+37 }
0x12c3   :  { %v2607_v40 = vpop.eup %2606 }
0x12c4   :  { %v1532_v41 = vmul.f32 %v2607_v40, %v1515_v36  ;;  %vm1537_vm5 = vweird.f32 %v2607_v40 }
0x12c5   :  { %vm1538_vm7 = vmor %vm1536_vm6, %vm1537_vm5 }
0x12c6   :  { %v1533_v42 = vsub.f32 1.0, %v1532_v41 }
0x12c8   :  { %v1534_v44 = vmul.f32 %v2607_v40, %v1533_v42 }
0x12ca   :  { %v1535_v11 = vadd.f32 %v2607_v40, %v1534_v44 }
0x12cb   :  { %v1309_v49 = vpop.f32.mrf.mxu1  ;;  %v1280_v3 = vpop.f32.mrf.mxu0 }
0x12cc   :  { %v1539_v43 = vsel %vm1538_vm7, %v2607_v40, %v1535_v11  ;;  %v1310_v51 = vadd.f32 %v1309_v49, %v3464_v30  ;;  %v1281_v60 = vadd.f32 %v1280_v3, %v3468_v39 }
0x12cd   :  { %v1544_v47 = vsel %vm1541_vm8, %v1543_v46, %v1539_v43 }
0x132c   :  { %v1561_v48 = vpop.permute.xlu0 %1560 }
0x132d   :  { %v3515_v38 = vmul.f32 %v1561_v48, %v1544_v47 }
0x132f   :  { %1564 = vst.msk [vmem:[#allocation3 + $0x8] sm:$0xff] %vm259_vm9, %v3515_v38  ;;  %2428 = vmatmul.msk.f32.vlgmr.msrb.gmra.mxu2 %vm259_vm9, %v3515_v38  ;;  %2429 = vmatmul.msk.f32.vlgmr.msrb.gmra.mxu3 %vm259_vm9, %v3515_v38 }
0x1330   :  { %1798 = vmatpush.msrb.mxu2 %v3281_v1  ;;  %1818 = vmatpush.msrb.mxu3 %v3283_v2 }
0x1332   :  { %1799 = vmatpush.msrb.mxu2 %v3287_v9  ;;  %1819 = vmatpush.msrb.mxu3 %v3289_v7 }
0x1334   :  { %1800 = vmatpush.msrb.mxu2 %v3298_v24  ;;  %1820 = vmatpush.msrb.mxu3 %v3300_v20 }
0x1336   :  { %1801 = vmatpush.msrb.mxu2 %v3309_v28  ;;  %1821 = vmatpush.msrb.mxu3 %v3313_v18 }
0x1338   :  { %1802 = vmatpush.msrb.mxu2 %v3316_v31  ;;  %1822 = vmatpush.msrb.mxu3 %v3325_v4 }
0x133a   :  { %1803 = vmatpush.msrb.mxu2 %v3355_v56  ;;  %1823 = vmatpush.msrb.mxu3 %v3357_v57 }
0x133c   :  { %1804 = vmatpush.msrb.mxu2 %v3373_v8  ;;  %1824 = vmatpush.msrb.mxu3 %v3375_v58 }
0x133e   :  { %1805 = vmatpush.msrb.mxu2 %v3377_v63  ;;  %1825 = vmatpush.msrb.mxu3 %v3381_v59 }
0x13b2   :  { %v1611_v52 = vpop.f32.mrf.mxu3  ;;  %v1591_v10 = vpop.f32.mrf.mxu2 }
0x13b3   :  { %v1615_v53 = vadd.f32 %v1611_v52, %v1310_v51  ;;  %v1614_v62 = vadd.f32 %v1591_v10, %v1281_v60 }
0x13b5   :  { %2608 = vtanh.f32 %v1615_v53  ;;  %v2430_v5 = vmul.f32 -1.442695, %v1614_v62  ;;  %v2431_v11 = vmul.f32 -1.442695, %v1615_v53 }
0x13b7   :  { %2610 = vpow2.f32 %v2430_v5 }
0x13bb   :  { %v2609_v54 = vpop.eup %2608 }
0x13bc   :  { %1657 = vrot.lane.b32.xlu1 %v2609_v54, %s2817_s2 }
0x13bd   :  { %v2611_v13 = vpop.eup %2610 }
0x13be   :  { %v1622_v0 = vadd.f32 1.0, %v2611_v13 }
0x13c0   :  { %2612 = vrcp.f32 %v1622_v0  ;;  %v1635_v19 = vand.u32 2147483648, %v1622_v0  ;;  %vm1629_vm11 = vweird.f32 %v1622_v0  ;;  %v1633_v26 = vand.u32 2147483647, %v1622_v0 }
0x13c2   :  { %v1636_v33 = vor.u32 1.1754944e-38, %v1635_v19  ;;  %vm1634_vm13 = vcmp.eq.f32.partialorder %v1633_v26, 8.507059e+37 }
0x13c6   :  { %v2613_v12 = vpop.eup %2612 }
0x13c7   :  { %v1625_v16 = vmul.f32 %v2613_v12, %v1622_v0  ;;  %vm1630_vm10 = vweird.f32 %v2613_v12 }
0x13c8   :  { %vm1631_vm12 = vmor %vm1629_vm11, %vm1630_vm10 }
0x13c9   :  { %v1626_v21 = vsub.f32 1.0, %v1625_v16 }
0x13cb   :  { %v1627_v23 = vmul.f32 %v2613_v12, %v1626_v21 }
0x13cd   :  { %v1628_v22 = vadd.f32 %v2613_v12, %v1627_v23 }
0x13cf   :  { %v1632_v27 = vsel %vm1631_vm12, %v2613_v12, %v1628_v22 }
0x13d0   :  { %v1637_v32 = vsel %vm1634_vm13, %v1636_v33, %v1632_v27 }
0x13d1   :  { %v1655_v40 = vmul.f32 %v1637_v32, %v3511_v29 }
0x142e   :  { %v1658_v34 = vpop.permute.xlu1 %1657 }
0x142f   :  { %v1660_v36 = vmul.f32 %v1658_v34, %v1637_v32 }
0x1431   :  { %1662 = vrot.lane.b32.xlu2 %v1660_v36, %s2817_s2 }
0x148b   :  { %v1663_v41 = vpop.permute.xlu2 %1662 }
0x148c   :  { %v3544_v42 = vadd.f32 %v1663_v41, %v1655_v40 }
0x148e   :  { %2614 = vtanh.f32 %v3544_v42 }
0x148f   :  { %2616 = vpow2.f32 %v2431_v11 }
0x1494   :  { %v2615_v44 = vpop.eup %2614 }
0x1495   :  { %1668 = vrot.lane.b32.xlu0 %v2615_v44, %s2817_s2  ;;  %v2617_v6 = vpop.eup %2616 }
0x1496   :  { %v1623_v45 = vadd.f32 1.0, %v2617_v6 }
0x1498   :  { %2618 = vrcp.f32 %v1623_v45  ;;  %v1650_v49 = vand.u32 2147483648, %v1623_v45  ;;  %vm1644_vm15 = vweird.f32 %v1623_v45  ;;  %v1648_v51 = vand.u32 2147483647, %v1623_v45 }
0x149a   :  { %v1651_v54 = vor.u32 1.1754944e-38, %v1650_v49  ;;  %vm1649_vm1 = vcmp.eq.f32.partialorder %v1648_v51, 8.507059e+37 }
0x149d   :  { %590 = vrot.lane.b32.xlu0 %v3131_v14, %s2817_s2 }
0x149e   :  { %v2619_v43 = vpop.eup %2618 }
0x149f   :  { %v1640_v46 = vmul.f32 %v2619_v43, %v1623_v45  ;;  %vm1645_vm14 = vweird.f32 %v2619_v43 }
0x14a0   :  { %vm1646_vm0 = vmor %vm1644_vm15, %vm1645_vm14 }
0x14a1   :  { %v1641_v47 = vsub.f32 1.0, %v1640_v46 }
0x14a3   :  { %v1642_v29 = vmul.f32 %v2619_v43, %v1641_v47 }
0x14a5   :  { %v1643_v48 = vadd.f32 %v2619_v43, %v1642_v29 }
0x14a7   :  { %v1647_v52 = vsel %vm1646_vm0, %v2619_v43, %v1643_v48 }
0x14a8   :  { %v1652_v3 = vsel %vm1649_vm1, %v1651_v54, %v1647_v52 }
0x1507   :  { %v1669_v14 = vpop.permute.xlu0 %1668 }
0x1508   :  { %v3550_v53 = vmul.f32 %v1669_v14, %v1652_v3 }
0x150a   :  { %1672 = vst.msk [vmem:[#allocation3 + $0x10] sm:$0xff] %vm259_vm9, %v3550_v53  ;;  %2432 = vmatmul.msk.f32.vlgmr.msra.gmra.mxu2 %vm259_vm9, %v3550_v53  ;;  %2433 = vmatmul.msk.f32.vlgmr.msra.gmra.mxu3 %vm259_vm9, %v3550_v53 }
0x150b   :  { %2014 = vmatpush.msra.mxu2 %v3281_v1  ;;  %2034 = vmatpush.msra.mxu3 %v3283_v2 }
0x150d   :  { %2015 = vmatpush.msra.mxu2 %v3287_v9  ;;  %2035 = vmatpush.msra.mxu3 %v3289_v7 }
0x150f   :  { %v591_v10 = vpop.permute.xlu0 %590  ;;  %2016 = vmatpush.msra.mxu2 %v3298_v24  ;;  %2036 = vmatpush.msra.mxu3 %v3300_v20  ;;  %v1282_v24 = vpop.f32.mrf.mxu0 }
0x1510   :  { %594 = vst.msk [vmem:[#allocation3 + $0x28] sm:$0xff] %vm367_vm2, %v591_v10 }
0x1511   :  { %924 = vst.msk [vmem:[#allocation3 + $0x28] sm:$0xff] %vm259_vm9, %v3213_v37  ;;  %2017 = vmatpush.msra.mxu2 %v3309_v28  ;;  %2037 = vmatpush.msra.mxu3 %v3313_v18  ;;  %v1311_v37 = vpop.f32.mrf.mxu1  ;;  %v1283_v28 = vadd.f32 %v1282_v24, %v3468_v39 }
0x1512   :  { %v1312_v1 = vadd.f32 %v1311_v37, %v3464_v30 }
0x1513   :  { %2018 = vmatpush.msra.mxu2 %v3316_v31  ;;  %2038 = vmatpush.msra.mxu3 %v3325_v4 }
0x1515   :  { %2019 = vmatpush.msra.mxu2 %v3355_v56  ;;  %2039 = vmatpush.msra.mxu3 %v3357_v57 }
0x1517   :  { %2020 = vmatpush.msra.mxu2 %v3373_v8  ;;  %2040 = vmatpush.msra.mxu3 %v3375_v58 }
0x1518   :  { %v1157_v23 = vld [vmem:[#allocation3 + $0x28] sm:$0xff] }
0x1519   :  { %2021 = vmatpush.msra.mxu2 %v3377_v63  ;;  %2041 = vmatpush.msra.mxu3 %v3381_v59 }
0x158d   :  { %v1719_v2 = vpop.f32.mrf.mxu3  ;;  %v1699_v20 = vpop.f32.mrf.mxu2 }
0x158e   :  { %v1723_v9 = vadd.f32 %v1719_v2, %v1312_v1  ;;  %v1722_v18 = vadd.f32 %v1699_v20, %v1283_v28 }
0x1590   :  { %2620 = vtanh.f32 %v1723_v9  ;;  %v2434_v31 = vmul.f32 -1.442695, %v1722_v18  ;;  %v2435_v34 = vmul.f32 -1.442695, %v1723_v9 }
0x1592   :  { %2622 = vpow2.f32 %v2434_v31 }
0x1596   :  { %v2621_v7 = vpop.eup %2620 }
0x1597   :  { %1765 = vrot.lane.b32.xlu1 %v2621_v7, %s2817_s2 }
0x1598   :  { %v2623_v4 = vpop.eup %2622 }
0x1599   :  { %v1730_v56 = vadd.f32 1.0, %v2623_v4 }
0x159b   :  { %2624 = vrcp.f32 %v1730_v56  ;;  %v1743_v60 = vand.u32 2147483648, %v1730_v56  ;;  %vm1737_vm4 = vweird.f32 %v1730_v56  ;;  %v1741_v62 = vand.u32 2147483647, %v1730_v56 }
0x159d   :  { %v1744_v5 = vor.u32 1.1754944e-38, %v1743_v60  ;;  %vm1742_vm6 = vcmp.eq.f32.partialorder %v1741_v62, 8.507059e+37 }
0x159f   :  { %703 = vrot.lane.b32.xlu1 %v3174_v61, %s2817_s2 }
0x15a1   :  { %v2625_v57 = vpop.eup %2624 }
0x15a2   :  { %v1733_v8 = vmul.f32 %v2625_v57, %v1730_v56  ;;  %vm1738_vm3 = vweird.f32 %v2625_v57 }
0x15a3   :  { %vm1739_vm5 = vmor %vm1737_vm4, %vm1738_vm3 }
0x15a4   :  { %v1734_v58 = vsub.f32 1.0, %v1733_v8 }
0x15a6   :  { %v1735_v63 = vmul.f32 %v2625_v57, %v1734_v58 }
0x15a8   :  { %v1736_v59 = vadd.f32 %v2625_v57, %v1735_v63 }
0x15aa   :  { %v1740_v61 = vsel %vm1739_vm5, %v2625_v57, %v1736_v59 }
0x15ab   :  { %v1745_v0 = vsel %vm1742_vm6, %v1744_v5, %v1740_v61 }
0x15ac   :  { %v1763_v19 = vmul.f32 %v1745_v0, %v3544_v42 }
0x1609   :  { %v1766_v13 = vpop.permute.xlu1 %1765 }
0x160a   :  { %v1768_v12 = vmul.f32 %v1766_v13, %v1745_v0 }
0x160c   :  { %1770 = vrot.lane.b32.xlu2 %v1768_v12, %s2817_s2 }
0x1611   :  { %v704_v16 = vpop.permute.xlu1 %703 }
0x1612   :  { %707 = vst.msk [vmem:[#allocation3 + $0x20] sm:$0xff] %vm367_vm2, %v704_v16 }
0x1613   :  { %813 = vst.msk [vmem:[#allocation3 + $0x20] sm:$0xff] %vm259_vm9, %v3200_v50 }
0x161a   :  { %v1156_v21 = vld [vmem:[#allocation3 + $0x20] sm:$0xff] }
0x161b   :  { %v1162_v22 = vpack.c.bf16 %v1157_v23, %v1156_v21 }
0x161d   :  { %1284 = vmatmul.bf16.gmra.mxu0 %v1162_v22  ;;  %1313 = vmatmul.bf16.gmra.mxu1 %v1162_v22 }
0x1666   :  { %v1771_v26 = vpop.permute.xlu2 %1770 }
0x1667   :  { %v3587_v27 = vadd.f32 %v1771_v26, %v1763_v19 }
0x1669   :  { %2626 = vtanh.f32 %v3587_v27 }
0x166a   :  { %2628 = vpow2.f32 %v2435_v34 }
0x166f   :  { %v2627_v33 = vpop.eup %2626 }
0x1670   :  { %1776 = vrot.lane.b32.xlu2 %v2627_v33, %s2817_s2  ;;  %v2629_v50 = vpop.eup %2628 }
0x1671   :  { %v1731_v32 = vadd.f32 1.0, %v2629_v50 }
0x1673   :  { %2630 = vrcp.f32 %v1731_v32  ;;  %v1758_v11 = vand.u32 2147483648, %v1731_v32  ;;  %vm1752_vm8 = vweird.f32 %v1731_v32  ;;  %v1756_v6 = vand.u32 2147483647, %v1731_v32 }
0x1675   :  { %v1759_v43 = vor.u32 1.1754944e-38, %v1758_v11  ;;  %vm1757_vm11 = vcmp.eq.f32.partialorder %v1756_v6, 8.507059e+37 }
0x1678   :  { %363 = vrot.lane.b32.xlu2 %v3060_v17, %s2817_s2 }
0x1679   :  { %v2631_v36 = vpop.eup %2630 }
0x167a   :  { %v1748_v40 = vmul.f32 %v2631_v36, %v1731_v32  ;;  %vm1753_vm7 = vweird.f32 %v2631_v36 }
0x167b   :  { %vm1754_vm10 = vmor %vm1752_vm8, %vm1753_vm7 }
0x167c   :  { %v1749_v41 = vsub.f32 1.0, %v1748_v40 }
0x167e   :  { %v1750_v42 = vmul.f32 %v2631_v36, %v1749_v41 }
0x1680   :  { %v1751_v44 = vadd.f32 %v2631_v36, %v1750_v42 }
0x1682   :  { %v1755_v45 = vsel %vm1754_vm10, %v2631_v36, %v1751_v44 }
0x1683   :  { %v1760_v46 = vsel %vm1757_vm11, %v1759_v43, %v1755_v45 }
0x169a   :  { %v1314_v48 = vpop.f32.mrf.mxu1  ;;  %v1285_v3 = vpop.f32.mrf.mxu0 }
0x169b   :  { %v1315_v49 = vadd.f32 %v1314_v48, %v3464_v30  ;;  %v1286_v10 = vadd.f32 %v1285_v3, %v3468_v39 }
0x16a2   :  { %v1316_v40 = vpop.f32.mrf.mxu1  ;;  %v1287_v43 = vpop.f32.mrf.mxu0 }
0x16a3   :  { %v1317_v44 = vadd.f32 %v1316_v40, %v3464_v30  ;;  %v1288_v48 = vadd.f32 %v1287_v43, %v3468_v39 }
0x16ca   :  { %v1777_v17 = vpop.permute.xlu2 %1776 }
0x16cb   :  { %v3593_v47 = vmul.f32 %v1777_v17, %v1760_v46 }
0x16cd   :  { %1780 = vst.msk [vmem:[#allocation3 + $0x18] sm:$0xff] %vm259_vm9, %v3593_v47  ;;  %2436 = vmatmul.msk.f32.vlgmr.msrb.gmra.mxu2 %vm259_vm9, %v3593_v47  ;;  %2437 = vmatmul.msk.f32.vlgmr.msrb.gmra.mxu3 %vm259_vm9, %v3593_v47 }
0x16d2   :  { %v364_v29 = vpop.permute.xlu2 %363 }
0x16d3   :  { %368 = vst.msk [vmem:[#allocation3 + $0x38] sm:$0xff] %vm367_vm2, %v364_v29 }
0x16d4   :  { %1146 = vst.msk [vmem:[#allocation3 + $0x38] sm:$0xff] %vm259_vm9, %v3351_v55 }
0x16db   :  { %v1159_v59 = vld [vmem:[#allocation3 + $0x38] sm:$0xff] }
0x1750   :  { %v1827_v51 = vpop.f32.mrf.mxu3  ;;  %v1807_v14 = vpop.f32.mrf.mxu2 }
0x1751   :  { %v1831_v52 = vadd.f32 %v1827_v51, %v1315_v49  ;;  %v1830_v37 = vadd.f32 %v1807_v14, %v1286_v10 }
0x1753   :  { %2632 = vtanh.f32 %v1831_v52  ;;  %v2438_v1 = vmul.f32 -1.442695, %v1830_v37  ;;  %v2439_v0 = vmul.f32 -1.442695, %v1831_v52 }
0x1755   :  { %2634 = vpow2.f32 %v2438_v1 }
0x1759   :  { %v2633_v54 = vpop.eup %2632 }
0x175a   :  { %1873 = vrot.lane.b32.xlu0 %v2633_v54, %s2817_s2 }
0x175b   :  { %v2635_v55 = vpop.eup %2634 }
0x175c   :  { %v1838_v2 = vadd.f32 1.0, %v2635_v55 }
0x175e   :  { %2636 = vrcp.f32 %v1838_v2  ;;  %v1851_v18 = vand.u32 2147483648, %v1838_v2  ;;  %vm1845_vm13 = vweird.f32 %v1838_v2  ;;  %v1849_v31 = vand.u32 2147483647, %v1838_v2 }
0x1760   :  { %v1852_v4 = vor.u32 1.1754944e-38, %v1851_v18  ;;  %vm1850_vm15 = vcmp.eq.f32.partialorder %v1849_v31, 8.507059e+37 }
0x1762   :  { %477 = vrot.lane.b32.xlu0 %v3098_v15, %s2817_s2 }
0x1764   :  { %v2637_v9 = vpop.eup %2636 }
0x1765   :  { %v1841_v7 = vmul.f32 %v2637_v9, %v1838_v2  ;;  %vm1846_vm12 = vweird.f32 %v2637_v9 }
0x1766   :  { %vm1847_vm14 = vmor %vm1845_vm13, %vm1846_vm12 }
0x1767   :  { %v1842_v24 = vsub.f32 1.0, %v1841_v7 }
0x1769   :  { %v1843_v20 = vmul.f32 %v2637_v9, %v1842_v24 }
0x176b   :  { %v1844_v28 = vadd.f32 %v2637_v9, %v1843_v20 }
0x176d   :  { %v1848_v15 = vsel %vm1847_vm14, %v2637_v9, %v1844_v28 }
0x176e   :  { %v1853_v57 = vsel %vm1850_vm15, %v1852_v4, %v1848_v15 }
0x176f   :  { %v1871_v62 = vmul.f32 %v1853_v57, %v3587_v27 }
0x17cc   :  { %v1874_v56 = vpop.permute.xlu0 %1873 }
0x17cd   :  { %v1876_v8 = vmul.f32 %v1874_v56, %v1853_v57 }
0x17cf   :  { %1878 = vrot.lane.b32.xlu1 %v1876_v8, %s2817_s2 }
0x17d4   :  { %v478_v58 = vpop.permute.xlu0 %477 }
0x17d5   :  { %481 = vst.msk [vmem:[#allocation3 + $0x30] sm:$0xff] %vm367_vm2, %v478_v58 }
0x17d6   :  { %1035 = vst.msk [vmem:[#allocation3 + $0x30] sm:$0xff] %vm259_vm9, %v3226_v25 }
0x17dd   :  { %v1158_v63 = vld [vmem:[#allocation3 + $0x30] sm:$0xff] }
0x17de   :  { %v1163_v60 = vpack.c.bf16 %v1159_v59, %v1158_v63 }
0x17e0   :  { %1289 = vmatmul.bf16.gmra.mxu0 %v1163_v60  ;;  %1318 = vmatmul.bf16.gmra.mxu1 %v1163_v60 }
0x1841   :  { %v1879_v61 = vpop.permute.xlu1 %1878 }
0x1842   :  { %v3614_v5 = vadd.f32 %v1879_v61, %v1871_v62 }
0x1844   :  { %2638 = vtanh.f32 %v3614_v5 }
0x1845   :  { %2640 = vpow2.f32 %v2439_v0 }
0x184a   :  { %v2639_v13 = vpop.eup %2638 }
0x184b   :  { %1884 = vrot.lane.b32.xlu1 %v2639_v13, %s2817_s2  ;;  %v2641_v12 = vpop.eup %2640 }
0x184c   :  { %v1839_v16 = vadd.f32 1.0, %v2641_v12 }
0x184e   :  { %2642 = vrcp.f32 %v1839_v16  ;;  %v1866_v26 = vand.u32 2147483648, %v1839_v16  ;;  %vm1860_vm1 = vweird.f32 %v1839_v16  ;;  %v1864_v27 = vand.u32 2147483647, %v1839_v16 }
0x1850   :  { %v1867_v34 = vor.u32 1.1754944e-38, %v1866_v26  ;;  %vm1865_vm4 = vcmp.eq.f32.partialorder %v1864_v27, 8.507059e+37 }
0x1854   :  { %v2643_v25 = vpop.eup %2642 }
0x1855   :  { %v1856_v21 = vmul.f32 %v2643_v25, %v1839_v16  ;;  %vm1861_vm0 = vweird.f32 %v2643_v25 }
0x1856   :  { %vm1862_vm3 = vmor %vm1860_vm1, %vm1861_vm0 }
0x1857   :  { %v1857_v23 = vsub.f32 1.0, %v1856_v21 }
0x1859   :  { %v1858_v22 = vmul.f32 %v2643_v25, %v1857_v23 }
0x185b   :  { %v1859_v19 = vadd.f32 %v2643_v25, %v1858_v22 }
0x185d   :  { %v1863_v33 = vsel %vm1862_vm3, %v2643_v25, %v1859_v19  ;;  %v3624_v41 = vpop.f32.mrf.mxu1  ;;  %v3630_v46 = vpop.f32.mrf.mxu0 }
0x185e   :  { %v1868_v50 = vsel %vm1865_vm4, %v1867_v34, %v1863_v33  ;;  %v1320_v21 = vadd.f32 %v3624_v41, %v3464_v30  ;;  %v1291_v27 = vadd.f32 %v3630_v46, %v3468_v39 }
0x1865   :  { %v3626_v42 = vpop.f32.mrf.mxu1  ;;  %v3632_v17 = vpop.f32.mrf.mxu0 }
0x18bd   :  { %v1885_v32 = vpop.permute.xlu1 %1884 }
0x18be   :  { %v3618_v36 = vmul.f32 %v1885_v32, %v1868_v50 }
0x18c0   :  { %2440 = vmatmul.msk.f32.vlgmr.msra.gmra.mxu0 %vm259_vm9, %v3618_v36  ;;  %2441 = vmatmul.msk.f32.vlgmr.msra.gmra.mxu1 %vm259_vm9, %v3618_v36 }
0x193d   :  { %v1935_v11 = vpop.f32.mrf.mxu1  ;;  %v1915_v29 = vpop.f32.mrf.mxu0 }
0x193e   :  { %v1939_v6 = vadd.f32 %v1935_v11, %v1317_v44  ;;  %v1938_v49 = vadd.f32 %v1915_v29, %v1288_v48 }
0x1940   :  { %2644 = vtanh.f32 %v1939_v6  ;;  %v2442_v51 = vmul.f32 -1.442695, %v1938_v49  ;;  %v2443_v56 = vmul.f32 -1.442695, %v1939_v6 }
0x1942   :  { %2646 = vpow2.f32 %v2442_v51 }
0x1946   :  { %v2645_v45 = vpop.eup %2644 }
0x1947   :  { %1981 = vrot.lane.b32.xlu2 %v2645_v45, %s2817_s2 }
0x1948   :  { %v2647_v52 = vpop.eup %2646 }
0x1949   :  { %v1946_v54 = vadd.f32 1.0, %v2647_v52 }
0x194b   :  { %2648 = vrcp.f32 %v1946_v54  ;;  %v1959_v55 = vand.u32 2147483648, %v1946_v54  ;;  %vm1953_vm6 = vweird.f32 %v1946_v54  ;;  %v1957_v2 = vand.u32 2147483647, %v1946_v54 }
0x194d   :  { %v1960_v7 = vor.u32 1.1754944e-38, %v1959_v55  ;;  %vm1958_vm8 = vcmp.eq.f32.partialorder %v1957_v2, 8.507059e+37 }
0x1951   :  { %v2649_v3 = vpop.eup %2648 }
0x1952   :  { %v1949_v14 = vmul.f32 %v2649_v3, %v1946_v54  ;;  %vm1954_vm5 = vweird.f32 %v2649_v3 }
0x1953   :  { %vm1955_vm7 = vmor %vm1953_vm6, %vm1954_vm5 }
0x1954   :  { %v1950_v10 = vsub.f32 1.0, %v1949_v14 }
0x1956   :  { %v1951_v37 = vmul.f32 %v2649_v3, %v1950_v10 }
0x1958   :  { %v1952_v1 = vadd.f32 %v2649_v3, %v1951_v37 }
0x195a   :  { %v1956_v9 = vsel %vm1955_vm7, %v2649_v3, %v1952_v1 }
0x195b   :  { %v1961_v20 = vsel %vm1958_vm8, %v1960_v7, %v1956_v9 }
0x195c   :  { %v1979_v18 = vmul.f32 %v1961_v20, %v3614_v5 }
0x19a1   :  { %v1982_v24 = vpop.permute.xlu2 %1981 }
0x19a2   :  { %v1984_v28 = vmul.f32 %v1982_v24, %v1961_v20 }
0x19a4   :  { %1986 = vrot.lane.b32.xlu0 %v1984_v28, %s2817_s2 }
0x1a16   :  { %v1987_v31 = vpop.permute.xlu0 %1986 }
0x1a17   :  { %v1989_v15 = vadd.f32 %v1987_v31, %v1979_v18 }
0x1a19   :  { %2650 = vtanh.f32 %v1989_v15 }
0x1a1a   :  { %2652 = vpow2.f32 %v2443_v56 }
0x1a1f   :  { %v2651_v4 = vpop.eup %2650 }
0x1a20   :  { %1992 = vrot.lane.b32.xlu1 %v2651_v4, %s2817_s2  ;;  %v2653_v57 = vpop.eup %2652 }
0x1a21   :  { %v1947_v8 = vadd.f32 1.0, %v2653_v57  ;;  %v1322_v57 = vadd.f32 %v3626_v42, %v3464_v30  ;;  %v1293_v30 = vadd.f32 %v3632_v17, %v3468_v39 }
0x1a23   :  { %2654 = vrcp.f32 %v1947_v8  ;;  %v1974_v61 = vand.u32 2147483648, %v1947_v8  ;;  %vm1968_vm11 = vweird.f32 %v1947_v8  ;;  %v1972_v5 = vand.u32 2147483647, %v1947_v8 }
0x1a25   :  { %v1975_v0 = vor.u32 1.1754944e-38, %v1974_v61  ;;  %vm1973_vm13 = vcmp.eq.f32.partialorder %v1972_v5, 8.507059e+37 }
0x1a29   :  { %v2655_v58 = vpop.eup %2654 }
0x1a2a   :  { %v1964_v63 = vmul.f32 %v2655_v58, %v1947_v8  ;;  %vm1969_vm10 = vweird.f32 %v2655_v58 }
0x1a2b   :  { %vm1970_vm12 = vmor %vm1968_vm11, %vm1969_vm10 }
0x1a2c   :  { %v1965_v59 = vsub.f32 1.0, %v1964_v63 }
0x1a2e   :  { %v1966_v60 = vmul.f32 %v2655_v58, %v1965_v59 }
0x1a30   :  { %v1967_v62 = vadd.f32 %v2655_v58, %v1966_v60 }
0x1a32   :  { %v1971_v13 = vsel %vm1970_vm12, %v2655_v58, %v1967_v62 }
0x1a33   :  { %v1976_v12 = vsel %vm1973_vm13, %v1975_v0, %v1971_v13 }
0x1a92   :  { %v1993_v16 = vpop.permute.xlu1 %1992 }
0x1a93   :  { %v3638_v25 = vmul.f32 %v1993_v16, %v1976_v12 }
0x1a95   :  { %2444 = vmatmul.msk.f32.vlgmr.msra.gmra.mxu2 %vm259_vm9, %v3638_v25  ;;  %2445 = vmatmul.msk.f32.vlgmr.msra.gmra.mxu3 %vm259_vm9, %v3638_v25 }
0x1b18   :  { %v2043_v23 = vpop.f32.mrf.mxu3  ;;  %v2023_v26 = vpop.f32.mrf.mxu2 }
0x1b19   :  { %v2047_v22 = vadd.f32 %v2043_v23, %v1320_v21  ;;  %v2046_v33 = vadd.f32 %v2023_v26, %v1291_v27 }
0x1b1b   :  { %2656 = vtanh.f32 %v2047_v22  ;;  %v2446_v34 = vmul.f32 -1.442695, %v2046_v33  ;;  %v2447_v10 = vmul.f32 -1.442695, %v2047_v22  ;;  %v2235_v33 = vld [vmem:[%s3763_s7 + $0x78] sm:$0xff] }
0x1b1c   :  { %2240 = vmatpush.msrb.mxu2 %v2235_v33 }
0x1b1d   :  { %2658 = vpow2.f32 %v2446_v34  ;;  %v2233_v34 = vld [vmem:[%s3763_s7 + $0x68] sm:$0xff] }
0x1b21   :  { %v2657_v19 = vpop.eup %2656 }
0x1b22   :  { %2089 = vrot.lane.b32.xlu2 %v2657_v19, %s2817_s2 }
0x1b23   :  { %v2659_v50 = vpop.eup %2658 }
0x1b24   :  { %v2054_v32 = vadd.f32 1.0, %v2659_v50 }
0x1b26   :  { %2660 = vrcp.f32 %v2054_v32  ;;  %v2067_v45 = vand.u32 2147483648, %v2054_v32  ;;  %vm2061_vm15 = vweird.f32 %v2054_v32  ;;  %v2065_v43 = vand.u32 2147483647, %v2054_v32 }
0x1b28   :  { %v2068_v48 = vor.u32 1.1754944e-38, %v2067_v45  ;;  %vm2066_vm1 = vcmp.eq.f32.partialorder %v2065_v43, 8.507059e+37  ;;  %v2227_v43 = vld [vmem:[%s3763_s7 + $0x38] sm:$0xff] }
0x1b2c   :  { %v2661_v40 = vpop.eup %2660 }
0x1b2d   :  { %v2057_v44 = vmul.f32 %v2661_v40, %v2054_v32  ;;  %vm2062_vm14 = vweird.f32 %v2661_v40 }
0x1b2e   :  { %vm2063_vm0 = vmor %vm2061_vm15, %vm2062_vm14 }
0x1b2f   :  { %v2058_v11 = vsub.f32 1.0, %v2057_v44 }
0x1b31   :  { %v2059_v41 = vmul.f32 %v2661_v40, %v2058_v11  ;;  %v2230_v11 = vld [vmem:[%s3763_s7 + $0x50] sm:$0xff] }
0x1b33   :  { %v2060_v6 = vadd.f32 %v2661_v40, %v2059_v41  ;;  %v2229_v41 = vld [vmem:[%s3763_s7 + $0x48] sm:$0xff] }
0x1b35   :  { %v2064_v29 = vsel %vm2063_vm0, %v2661_v40, %v2060_v6  ;;  %v2231_v40 = vld [vmem:[%s3763_s7 + $0x58] sm:$0xff]  ;;  %v2228_v6 = vld [vmem:[%s3763_s7 + $0x40] sm:$0xff] }
0x1b36   :  { %v2069_v49 = vsel %vm2066_vm1, %v2068_v48, %v2064_v29  ;;  %v2226_v48 = vld [vmem:[%s3763_s7 + $0x30] sm:$0xff] }
0x1b37   :  { %v2087_v52 = vmul.f32 %v2069_v49, %v1989_v15 }
0x1b7c   :  { %v2090_v46 = vpop.permute.xlu2 %2089 }
0x1b7d   :  { %v2092_v51 = vmul.f32 %v2090_v46, %v2069_v49 }
0x1b7f   :  { %2094 = vrot.lane.b32.xlu0 %v2092_v51, %s2817_s2 }
0x1bf1   :  { %v2095_v54 = vpop.permute.xlu0 %2094 }
0x1bf2   :  { %v3650_v3 = vadd.f32 %v2095_v54, %v2087_v52  ;;  %v2225_v54 = vld [vmem:[%s3763_s7 + $0x28] sm:$0xff] }
0x1bf4   :  { %2662 = vtanh.f32 %v3650_v3 }
0x1bf5   :  { %2664 = vpow2.f32 %v2447_v10 }
0x1bfa   :  { %v2663_v14 = vpop.eup %2662 }
0x1bfb   :  { %2100 = vrot.lane.b32.xlu1 %v2663_v14, %s2817_s2  ;;  %v2665_v37 = vpop.eup %2664  ;;  %v2222_v14 = vld [vmem:[%s3763_s7 + $0x10] sm:$0xff] }
0x1bfc   :  { %v2055_v1 = vadd.f32 1.0, %v2665_v37  ;;  %v2221_v37 = vld [vmem:[%s3763_s7 + $0x8] sm:$0xff] }
0x1bfe   :  { %2666 = vrcp.f32 %v2055_v1  ;;  %v2082_v20 = vand.u32 2147483648, %v2055_v1  ;;  %vm2076_vm4 = vweird.f32 %v2055_v1  ;;  %v2080_v28 = vand.u32 2147483647, %v2055_v1 }
0x1c00   :  { %v2083_v31 = vor.u32 1.1754944e-38, %v2082_v20  ;;  %vm2081_vm6 = vcmp.eq.f32.partialorder %v2080_v28, 8.507059e+37 }
0x1c04   :  { %v2667_v55 = vpop.eup %2666 }
0x1c05   :  { %v2072_v2 = vmul.f32 %v2667_v55, %v2055_v1  ;;  %vm2077_vm3 = vweird.f32 %v2667_v55  ;;  %v2220_v1 = vld [vmem:[%s3763_s7] sm:$0xff] }
0x1c06   :  { %vm2078_vm5 = vmor %vm2076_vm4, %vm2077_vm3 }
0x1c07   :  { %v2073_v9 = vsub.f32 1.0, %v2072_v2 }
0x1c09   :  { %v2074_v7 = vmul.f32 %v2667_v55, %v2073_v9 }
0x1c0b   :  { %v2075_v24 = vadd.f32 %v2667_v55, %v2074_v7 }
0x1c0d   :  { %v2079_v18 = vsel %vm2078_vm5, %v2667_v55, %v2075_v24 }
0x1c0e   :  { %v2084_v15 = vsel %vm2081_vm6, %v2083_v31, %v2079_v18 }
0x1c6d   :  { %v2101_v4 = vpop.permute.xlu1 %2100 }
0x1c6e   :  { %v3654_v56 = vmul.f32 %v2101_v4, %v2084_v15 }
0x1c70   :  { %2448 = vmatmul.msk.f32.vlgmr.msrb.gmra.mxu0 %vm259_vm9, %v3654_v56  ;;  %2449 = vmatmul.msk.f32.vlgmr.msrb.gmra.mxu1 %vm259_vm9, %v3654_v56 }
0x1ced   :  { %v2151_v8 = vpop.f32.mrf.mxu1  ;;  %v2131_v59 = vpop.f32.mrf.mxu0 }
0x1cee   :  { %v3662_v58 = vadd.f32 %v2151_v8, %v1322_v57  ;;  %v2154_v42 = vadd.f32 %v2131_v59, %v1293_v30  ;;  %v2487_v59 = vld [vmem:[%s3764_s8] ss:$0 sm:$0xff] }
0x1cf0   :  { %2668 = vtanh.f32 %v3662_v58  ;;  %v2450_v60 = vmul.f32 -1.442695, %v2154_v42  ;;  %v2451_v49 = vmul.f32 -1.442695, %v3662_v58 }
0x1cf2   :  { %2670 = vpow2.f32 %v2450_v60 }
0x1cf6   :  { %v2669_v63 = vpop.eup %2668 }
0x1cf7   :  { %2197 = vrot.lane.b32.xlu2 %v2669_v63, %s2817_s2 }
0x1cf8   :  { %v2671_v62 = vpop.eup %2670 }
0x1cf9   :  { %v2162_v61 = vadd.f32 1.0, %v2671_v62 }
0x1cfb   :  { %2672 = vrcp.f32 %v2162_v61  ;;  %vm2169_vm8 = vweird.f32 %v2162_v61  ;;  %v2173_v16 = vand.u32 2147483647, %v2162_v61 }
0x1cfd   :  { %vm2174_vm11 = vcmp.eq.f32.partialorder %v2173_v16, 8.507059e+37 }
0x1cff   :  { %1458 = vrot.lane.b32.xlu2 %v3478_v35, %s2817_s2 }
0x1d01   :  { %v2673_v5 = vpop.eup %2672 }
0x1d02   :  { %v2165_v13 = vmul.f32 %v2673_v5, %v2162_v61  ;;  %vm2170_vm7 = vweird.f32 %v2673_v5 }
0x1d03   :  { %vm2171_vm10 = vmor %vm2169_vm8, %vm2170_vm7 }
0x1d04   :  { %v2166_v0 = vsub.f32 1.0, %v2165_v13 }
0x1d06   :  { %v2167_v35 = vmul.f32 %v2673_v5, %v2166_v0 }
0x1d07   :  { %1782 = vrot.lane.b32.xlu2 %v3593_v47, %s2817_s2  ;;  %v2175_v47 = vand.u32 2147483648, %v2162_v61 }
0x1d08   :  { %v2168_v12 = vadd.f32 %v2673_v5, %v2167_v35 }
0x1d09   :  { %v2176_v23 = vor.u32 1.1754944e-38, %v2175_v47 }
0x1d0a   :  { %v2172_v21 = vsel %vm2171_vm10, %v2673_v5, %v2168_v12 }
0x1d0b   :  { %v2177_v17 = vsel %vm2174_vm11, %v2176_v23, %v2172_v21 }
0x1d0c   :  { %v2195_v50 = vmul.f32 %v2177_v17, %v3650_v3  ;;  %v2224_v3 = vld [vmem:[%s3763_s7 + $0x20] sm:$0xff] }
0x1d0f   :  { %2106 = vrot.lane.b32.xlu2 %v3654_v56, %s2817_s2 }
0x1d51   :  { %v2198_v39 = vpop.permute.xlu2 %2197 }
0x1d52   :  { %v2200_v22 = vmul.f32 %v2198_v39, %v2177_v17 }
0x1d54   :  { %2202 = vrot.lane.b32.xlu0 %v2200_v22, %s2817_s2 }
0x1d59   :  { %v1459_v19 = vpop.permute.xlu2 %1458 }
0x1d5a   :  { %1461 = vst.msk [vmem:[#allocation3 + $0x38] sm:$0xff] %vm367_vm2, %v1459_v19 }
0x1d5c   :  { %1566 = vrot.lane.b32.xlu0 %v3515_v38, %s2817_s2  ;;  %v2234_v38 = vld [vmem:[%s3763_s7 + $0x70] sm:$0xff] }
0x1d5d   :  { %2241 = vmatpush.msrb.mxu2 %v2234_v38 }
0x1d5f   :  { %2242 = vmatpush.msrb.mxu2 %v2233_v34 }
0x1d61   :  { %v1783_v26 = vpop.permute.xlu2 %1782 }
0x1d62   :  { %1785 = vst.msk [vmem:[#allocation3 + $0x20] sm:$0xff] %vm367_vm2, %v1783_v26 }
0x1d63   :  { %1888 = vst.msk [vmem:[#allocation3 + $0x20] sm:$0xff] %vm259_vm9, %v3618_v36 }
0x1d64   :  { %1890 = vrot.lane.b32.xlu0 %v3618_v36, %s2817_s2  ;;  %v2232_v36 = vld [vmem:[%s3763_s7 + $0x60] sm:$0xff] }
0x1d65   :  { %2243 = vmatpush.msrb.mxu2 %v2232_v36 }
0x1d67   :  { %2244 = vmatpush.msrb.mxu2 %v2231_v40 }
0x1d69   :  { %v2107_v27 = vpop.permute.xlu2 %2106  ;;  %2245 = vmatpush.msrb.mxu2 %v2230_v11 }
0x1d6a   :  { %2109 = vst.msk [vmem:[#allocation3 + $0x8] sm:$0xff] %vm367_vm2, %v2107_v27 }
0x1d6b   :  { %2246 = vmatpush.msrb.mxu2 %v2229_v41 }
0x1d6d   :  { %2247 = vmatpush.msrb.mxu2 %v2228_v6 }
0x1d6f   :  { %2248 = vmatpush.msrb.mxu2 %v2227_v43 }
0x1d71   :  { %2249 = vmatpush.msrb.mxu2 %v2226_v48 }
0x1d73   :  { %2250 = vmatpush.msrb.mxu2 %v2225_v54 }
0x1d75   :  { %2251 = vmatpush.msrb.mxu2 %v2224_v3 }
0x1dc6   :  { %v2203_v32 = vpop.permute.xlu0 %2202 }
0x1dc7   :  { %v2205_v44 = vadd.f32 %v2203_v32, %v2195_v50 }
0x1dc9   :  { %2674 = vtanh.f32 %v2205_v44 }
0x1dca   :  { %2676 = vpow2.f32 %v2451_v49 }
0x1dce   :  { %v1567_v45 = vpop.permute.xlu0 %1566 }
0x1dcf   :  { %v2675_v29 = vpop.eup %2674  ;;  %1569 = vst.msk [vmem:[#allocation3 + $0x30] sm:$0xff] %vm367_vm2, %v1567_v45 }
0x1dd0   :  { %2104 = vst.msk [vmem:[#allocation3 + $0x30] sm:$0xff] %vm259_vm9, %v3654_v56  ;;  %2208 = vrot.lane.b32.xlu1 %v2675_v29, %s2817_s2  ;;  %v2677_v51 = vpop.eup %2676 }
0x1dd1   :  { %v2163_v52 = vadd.f32 1.0, %v2677_v51 }
0x1dd3   :  { %2678 = vrcp.f32 %v2163_v52  ;;  %v2190_v24 = vand.u32 2147483648, %v2163_v52  ;;  %vm2184_vm13 = vweird.f32 %v2163_v52  ;;  %v2188_v20 = vand.u32 2147483647, %v2163_v52 }
0x1dd5   :  { %v2191_v18 = vor.u32 1.1754944e-38, %v2190_v24  ;;  %vm2189_vm15 = vcmp.eq.f32.partialorder %v2188_v20, 8.507059e+37 }
0x1dd6   :  { %v1891_v46 = vpop.permute.xlu0 %1890 }
0x1dd7   :  { %1893 = vst.msk [vmem:[#allocation3 + $0x18] sm:$0xff] %vm367_vm2, %v1891_v46 }
0x1dd8   :  { %1674 = vrot.lane.b32.xlu1 %v3550_v53, %s2817_s2  ;;  %v2223_v53 = vld [vmem:[%s3763_s7 + $0x18] sm:$0xff] }
0x1dd9   :  { %2252 = vmatpush.msrb.mxu2 %v2223_v53  ;;  %v2679_v10 = vpop.eup %2678 }
0x1dda   :  { %v2180_v55 = vmul.f32 %v2679_v10, %v2163_v52  ;;  %vm2185_vm12 = vweird.f32 %v2679_v10 }
0x1ddb   :  { %2253 = vmatpush.msrb.mxu2 %v2222_v14  ;;  %vm2186_vm14 = vmor %vm2184_vm13, %vm2185_vm12 }
0x1ddc   :  { %v2181_v2 = vsub.f32 1.0, %v2180_v55 }
0x1ddd   :  { %2254 = vmatpush.msrb.mxu2 %v2221_v37 }
0x1dde   :  { %v2182_v9 = vmul.f32 %v2679_v10, %v2181_v2 }
0x1ddf   :  { %2255 = vmatpush.msrb.mxu2 %v2220_v1 }
0x1de0   :  { %1998 = vrot.lane.b32.xlu1 %v3638_v25, %s2817_s2  ;;  %v2183_v7 = vadd.f32 %v2679_v10, %v2182_v9 }
0x1de2   :  { %v2187_v28 = vsel %vm2186_vm14, %v2679_v10, %v2183_v7 }
0x1de3   :  { %v2192_v31 = vsel %vm2189_vm15, %v2191_v18, %v2187_v28 }
0x1e42   :  { %v2209_v15 = vpop.permute.xlu1 %2208 }
0x1e43   :  { %v2211_v4 = vmul.f32 %v2209_v15, %v2192_v31 }
0x1e45   :  { %2212 = vst.msk [vmem:[#allocation3 + $0x38] sm:$0xff] %vm259_vm9, %v2211_v4  ;;  %2214 = vrot.lane.b32.xlu0 %v2211_v4, %s2817_s2  ;;  %s2818_s2 = smov [#allocation12]  }
0x1e46   :  { %s2267_s14 = sshll.u32 %s2818_s2, 4  ;;  %s2268_s14 = int_to_ptr.vmem [resolvable:$true] %s2267_s14 }
0x1e4a   :  { %v1675_v56 = vpop.permute.xlu1 %1674 }
0x1e4b   :  { %1677 = vst.msk [vmem:[#allocation3 + $0x28] sm:$0xff] %vm367_vm2, %v1675_v56 }
0x1e4c   :  { %1996 = vst.msk [vmem:[#allocation3 + $0x28] sm:$0xff] %vm259_vm9, %v3638_v25  ;;  %v2218_v57 = vld [vmem:[#allocation3 + $0x38] sm:$0xff]  ;;  %vm2260_vm9 = vcmask 25600  }
0x1e4d   :  { %v2219_v8 = vmax.f32 %v2218_v57, 0.0 }
0x1e4f   :  { %2256 = vmatmul.f32.vlgmr.msrb.gmra.mxu2 %v2219_v8 }
0x1e52   :  { %v1999_v58 = vpop.permute.xlu1 %1998 }
0x1e53   :  { %2001 = vst.msk [vmem:[#allocation3 + $0x10] sm:$0xff] %vm367_vm2, %v1999_v58 }
0x1eb7   :  { %v2215_v63 = vpop.permute.xlu0 %2214 }
0x1eb8   :  { %2217 = vst.msk [vmem:[#allocation3] sm:$0xff] %vm367_vm2, %v2215_v63 }
0x1ed2   :  { %v2257_v25 = vpop.f32.mrf.mxu2 }
0x1ed3   :  { %v2258_v30 = vadd.f32 %v2487_v59, %v2257_v25 }
0x1ed5   :  { %2261 = vst.msk [vmem:[#allocation12] sm:$0x3] %vm2260_vm9, %v2258_v30 }
0x1ed6   :  { %2272 = dma.vmem_to_hbm [thread:$0]  %s2268_s14, 32, %s2270_s17, [#allocation6]  }
0x1ed7   :  { %2806 = dma.done.wait [#allocation6], 32  }
0x1ed8   :  { %2807 = vsyncadd [#allocation6], 4294967264 }
0x1ed9   :  { %2277 = vsyncpa [#allocation5], 1 }
0x1eda   :  { %2278 = vsyncpa [#allocation8], 1 }
0x1edb   :  { %2279 = vsyncpa [#allocation11], 1 }
0x1edc   :  { %2280 = vsyncpa [#allocation6], 1 }

</bundles_post_ra>
